<compile_context>
chip_gen: v7x
topology: tpu7x:2x2x1
jax: 0.10.0
libtpu: 0.0.40
codegen_flags: <defaults>
</compile_context>

<pallas_src>
import functools
import math

import jax
import jax.numpy as jnp
from jax.experimental import pallas as pl
from jax.experimental.pallas import tpu as pltpu


def _round_up(x, m):
    return ((x + m - 1) // m) * m


def _vmem_capacity_bytes():
    try:
        return int(pltpu.get_tpu_info().vmem_capacity_bytes)
    except Exception:
        return 64 * 1024 * 1024  # conservative default (v7x per-core VMEM)


# ---------------------------------------------------------------------------
# Pallas kernel: windowed DFT, magnitude, mel projection, log-L1 partial sums.
# ---------------------------------------------------------------------------
def _mel_l1_kernel(xy_ref, basis_hbm_ref, fb_hbm_ref, o_ref,
                   basis_ref, fb_ref, acc_ref, copy_sem, *, eps, inv_denom):
    step = pl.program_id(1)

    @pl.when(step == 0)
    def _():
        # One-time copy of the grid-invariant operands into SINGLE-buffered VMEM
        # scratch (the default input pipeline would double-buffer the ~8 MB basis
        # at n_fft=2048, which is significant on v7x's 64 MiB VMEM).
        cb = pltpu.make_async_copy(basis_hbm_ref, basis_ref, copy_sem.at[0])
        cf = pltpu.make_async_copy(fb_hbm_ref, fb_ref, copy_sem.at[1])
        cb.start()
        cf.start()
        acc_ref[...] = jnp.zeros_like(acc_ref)
        o_ref[...] = jnp.zeros_like(o_ref)
        cb.wait()
        cf.wait()

    tm = xy_ref.shape[1]
    n_fft = xy_ref.shape[2]
    basis = basis_ref[...]                 # (n_fft, 2*F_pad) bf16: [win*cos | -win*sin]
    fb = fb_ref[...]                       # (F_pad, N_pad)   bf16 slaney mel filterbank
    f_pad = basis.shape[1] // 2
    n_pad = fb.shape[1]

    # x and y frame tiles stacked along the leading axis -> one wide MXU matmul
    # reuses the resident RHS for both signals. The (2, tm, n_fft)->(2*tm, n_fft)
    # reshape is layout-free (tm is a multiple of 32).
    frames = xy_ref[...].reshape(2 * tm, n_fft)
    spec = jnp.dot(frames, basis, preferred_element_type=jnp.float32)  # (2tm, 2F_pad)
    re, im = spec[:, :f_pad], spec[:, f_pad:]
    mag2 = re * re + im * im
    # bf16 sqrt: the magnitude feeds a bf16 matmul anyway; bf16 EUP is ~2x faster
    # on v6e/v7x.  TODO(synk): gate to f32 sqrt on v5e (no bf16 EUP).
    mag = jnp.sqrt(mag2.astype(jnp.bfloat16))                          # (2tm, F_pad)
    mel = jnp.dot(mag, fb, preferred_element_type=jnp.float32)         # (2tm, N_pad)
    x_mel, y_mel = mel[:tm], mel[tm:]

    # |log10(max(x,eps)) - log10(max(y,eps))| == |ln(x'/y')| / ln(10)  (pow == 1).
    # Exact divide (NOT pl.reciprocal(approx=True)): zero-padded rows / mel lanes
    # must give ratio exactly 1.0 so they contribute exactly 0; an approximate
    # reciprocal would bias the L1 mean through the heavy lane padding.
    ratio = jnp.maximum(x_mel, eps) / jnp.maximum(y_mel, eps)
    diff = jnp.abs(jnp.log(ratio)) * jnp.float32(1.0 / math.log(10.0))

    # Lane-wise partial reduction (pure VPU adds of 128-lane groups) into the
    # resident accumulator; no cross-lane XLU work in the hot loop.
    part = diff[:, 0:128]
    for g in range(1, n_pad // 128):
        part = part + diff[:, 128 * g:128 * (g + 1)]
    acc_ref[...] += part

    # Final sublane reduction + L1-mean scale folded into the last grid step;
    # the wrapper then needs a single jnp.sum over all resolutions.
    @pl.when(step == pl.num_programs(1) - 1)
    def _():
        red = acc_ref[...].reshape(tm // 8, 8, 128).sum(axis=0)        # (8, 128)
        o_ref[...] = red * jnp.float32(inv_denom)


# ---------------------------------------------------------------------------
# Trace-time constants (plain JAX glue).
# ---------------------------------------------------------------------------
def _windowed_dft_basis(n_fft, f_pad):
    """(n_fft, 2*F_pad) bf16 basis: [win*cos | -win*sin]; Nyquist bin dropped."""
    n = jnp.arange(n_fft, dtype=jnp.int32)
    k = jnp.arange(f_pad, dtype=jnp.int32)
    phase = (n[:, None] * k[None, :]) % n_fft           # exact argument reduction
    ang = (2.0 * math.pi / n_fft) * phase.astype(jnp.float32)
    # torch.hann_window default (periodic=True), win_length == n_fft.
    win = 0.5 - 0.5 * jnp.cos(2.0 * math.pi * n.astype(jnp.float32) / n_fft)
    valid = (k[None, :] < (n_fft // 2)).astype(jnp.float32)   # drop k == n_fft//2
    cos_b = jnp.cos(ang) * valid * win[:, None]
    sin_b = -jnp.sin(ang) * valid * win[:, None]
    return jnp.concatenate([cos_b, sin_b], axis=1).astype(jnp.bfloat16)


def _slaney_mel_filterbank(n_freq, n_mels, sample_rate, f_min=0.0, f_max=None):
    """torchaudio.functional.melscale_fbanks(norm='slaney', mel_scale='slaney')."""
    if f_max is None:
        f_max = sample_rate / 2.0
    f_sp = 200.0 / 3.0
    min_log_hz = 1000.0
    min_log_mel = min_log_hz / f_sp
    logstep = math.log(6.4) / 27.0

    def hz_to_mel(f):
        f = jnp.asarray(f, jnp.float32)
        return jnp.where(
            f >= min_log_hz,
            min_log_mel + jnp.log(jnp.maximum(f, min_log_hz) / min_log_hz) / logstep,
            f / f_sp)

    def mel_to_hz(m):
        return jnp.where(
            m >= min_log_mel,
            min_log_hz * jnp.exp(logstep * (m - min_log_mel)),
            f_sp * m)

    all_freqs = jnp.linspace(0.0, float(sample_rate // 2), n_freq)
    m_pts = jnp.linspace(hz_to_mel(f_min), hz_to_mel(f_max), n_mels + 2)
    f_pts = mel_to_hz(m_pts)

    f_diff = f_pts[1:] - f_pts[:-1]
    slopes = f_pts[None, :] - all_freqs[:, None]
    down = (-1.0 * slopes[:, :-2]) / f_diff[:-1]
    up = slopes[:, 2:] / f_diff[1:]
    fb = jnp.maximum(0.0, jnp.minimum(down, up))
    enorm = 2.0 / (f_pts[2:n_mels + 2] - f_pts[:n_mels])   # slaney area norm
    return fb * enorm[None, :]


def _frame_signals(x, y, n_fft, hop):
    """torch.stft(center=True, pad_mode='reflect') framing of stacked (x, y).

    Window is NOT applied (folded into the DFT basis).  Built from hop-strided
    slices + concat instead of an XLA gather.
    """
    assert n_fft % hop == 0
    b, _ = x.shape
    pad = n_fft // 2
    xy = jnp.stack([x, y], axis=0)                                    # (2, B, T)
    xyp = jnp.pad(xy, ((0, 0), (0, 0), (pad, pad)), mode="reflect")
    tp = xyp.shape[-1]
    n_frames = 1 + (tp - n_fft) // hop
    tail = (-tp) % hop                 # unused trailing samples; keeps reshape exact
    if tail:
        xyp = jnp.pad(xyp, ((0, 0), (0, 0), (0, tail)))
    n_chunks = xyp.shape[-1] // hop
    chunks = xyp.reshape(2, b, n_chunks, hop)
    n_fold = n_fft // hop                                             # == 4
    frames = jnp.concatenate(
        [chunks[:, :, j:j + n_frames, :] for j in range(n_fold)], axis=-1)
    # TODO(synk): move reflect-pad + overlapped framing fully in-kernel
    # (memory_space=pl.ANY signal + manual strip DMA, P4) to avoid materializing
    # this 4x-overlapping frame slab in HBM for the HBM-bound small resolutions.
    return frames.reshape(2, b * n_frames, n_fft).astype(jnp.bfloat16), n_frames


# ---------------------------------------------------------------------------
# Per-resolution mel L1 loss (power=1, norm/mel_scale='slaney', pow=1, log10).
# Returns a small pre-scaled partial block; caller does one final jnp.sum.
# ---------------------------------------------------------------------------
def _mel_l1_partials(x, y, n_fft, n_mels, sample_rate, clamp_eps=1e-5):
    hop = n_fft // 4
    b = x.shape[0]
    xyf, n_frames = _frame_signals(x, y, n_fft, hop)
    m = xyf.shape[1]

    # Nyquist bin dropped: its slaney filterbank row is exactly zero for
    # f_max == sample_rate/2, so omitting it is exact.
    n_keep = n_fft // 2
    f_pad = _round_up(n_keep, 128)
    n_pad = _round_up(n_mels, 128)

    basis = _windowed_dft_basis(n_fft, f_pad)                       # (n_fft, 2*f_pad) bf16
    fb = _slaney_mel_filterbank(n_fft // 2 + 1, n_mels, sample_rate)[:n_keep]
    fb_pad = jnp.zeros((f_pad, n_pad), jnp.float32)
    fb_pad = fb_pad.at[:n_keep, :n_mels].set(fb).astype(jnp.bfloat16)

    # Row tile: large for small n_fft (per-step overhead dominated), 256 at
    # n_fft=2048 so intermediates + single-buffered basis fit v7x VMEM.
    # TODO(synk): allow tm=384-512 at n_fft=2048 on v5e/v6e (128 MiB VMEM).
    tm_target = 512 if n_fft <= 512 else 256
    tm = max(32, min(tm_target, _round_up(m, 32)))
    # Split frames across the two v7x TensorCores only when there is enough work;
    # avoids padding M up to 2*tm on single-core v5e/v6e or tiny inputs.
    n_split = 2 if m > tm else 1
    m_pad = _round_up(m, n_split * tm)
    steps = m_pad // (n_split * tm)
    if m_pad != m:
        xyf = jnp.pad(xyf, ((0, 0), (0, m_pad - m), (0, 0)))

    # VMEM budget derived from the actual buffers (feedback: don't pin 48 MiB).
    in_block_b = 2 * tm * n_fft * 2
    basis_b = n_fft * (2 * f_pad) * 2
    fb_b = f_pad * n_pad * 2
    acc_b = tm * 128 * 4
    out_b = 2 * 8 * 128 * 4
    interm_b = 2 * (2 * tm) * (2 * f_pad) * 4 + (2 * tm) * f_pad * 2 \
        + 2 * (2 * tm) * n_pad * 4
    need = 2 * in_block_b + basis_b + fb_b + acc_b + out_b + interm_b
    vmem_limit = max(int(1.4 * need), 16 * 1024 * 1024)
    vmem_limit = min(vmem_limit, int(0.9 * _vmem_capacity_bytes()))

    flops = 2 * (2 * m_pad) * n_fft * (2 * f_pad) + 2 * (2 * m_pad) * f_pad * n_pad
    transcendentals = (2 * m_pad) * f_pad + m_pad * n_pad
    bytes_accessed = 2 * m_pad * n_fft * 2 + basis_b + fb_b + n_split * 8 * 128 * 4

    inv_denom = 1.0 / float(b * n_mels * n_frames)   # L1Loss mean over (B, n_mels, frames)
    kernel = functools.partial(_mel_l1_kernel, eps=float(clamp_eps), inv_denom=inv_denom)

    partials = pl.pallas_call(
        kernel,
        out_shape=jax.ShapeDtypeStruct((n_split * 8, 128), jnp.float32),
        grid_spec=pltpu.PrefetchScalarGridSpec(
            num_scalar_prefetch=0,
            grid=(n_split, steps),
            in_specs=[
                pl.BlockSpec((2, tm, n_fft), lambda c, i: (0, c * steps + i, 0)),
                pl.BlockSpec(memory_space=pl.ANY),   # DFT basis: HBM, copied once/core
                pl.BlockSpec(memory_space=pl.ANY),   # mel filterbank: HBM, copied once/core
            ],
            out_specs=pl.BlockSpec((8, 128), lambda c, i: (c, 0)),
            scratch_shapes=[
                pltpu.VMEM((n_fft, 2 * f_pad), jnp.bfloat16),   # single-buffered basis
                pltpu.VMEM((f_pad, n_pad), jnp.bfloat16),       # single-buffered fbank
                pltpu.VMEM((tm, 128), jnp.float32),             # resident accumulator
                pltpu.SemaphoreType.DMA((2,)),
            ],
        ),
        compiler_params=pltpu.CompilerParams(
            dimension_semantics=("parallel", "arbitrary"),
            vmem_limit_bytes=vmem_limit,
        ),
        cost_estimate=pl.CostEstimate(
            flops=flops,
            transcendentals=transcendentals,
            bytes_accessed=bytes_accessed),
    )(xyf, basis, fb_pad)

    # Padded rows / mel lanes contribute exactly 0; partials are pre-scaled by
    # 1/(B*n_mels*n_frames), so the caller only needs one global sum.
    return partials


def multi_resolution_mel_loss(x, y, n_mels_list, window_lengths,
                              sample_rate=16000, clamp_eps=1e-5):
    """Sum over resolutions of mean |log10(clamp(mel(x))) - log10(clamp(mel(y)))| (pow=1)."""
    partials = [
        _mel_l1_partials(x, y, win_len, n_mel, sample_rate, clamp_eps)
        for n_mel, win_len in zip(n_mels_list, window_lengths)
    ]
    # One XLA reduce for all resolutions (per-resolution scaling already folded in).
    return jnp.sum(jnp.concatenate(partials, axis=0))


if __name__ == "__main__":
    key = jax.random.PRNGKey(0)
    kx, ky = jax.random.split(key)
    B, T = 2, 2048
    x = 0.1 * jax.random.normal(kx, (B, T), dtype=jnp.float32)
    y = 0.1 * jax.random.normal(ky, (B, T), dtype=jnp.float32)

    # Scaled-down multi-resolution config (module defaults go up to n_fft=2048).
    n_mels = [5, 10, 20]
    window_lengths = [64, 128, 256]

    loss_fn = jax.jit(functools.partial(
        multi_resolution_mel_loss,
        n_mels_list=n_mels, window_lengths=window_lengths))
    loss = loss_fn(x, y)
    jax.block_until_ready(loss)
    print("KERNEL_OK")
</pallas_src>

<mosaic_0001>
module attributes {stable_mosaic.version = 11 : i64} {
  func.func @_mel_l1_kernel(%arg0: i32, %arg1: i32, %arg2: memref<2x160x128xbf16, #tpu.memory_space<vmem>>, %arg3: memref<128x256xbf16, #tpu.memory_space<any>>, %arg4: memref<128x128xbf16, #tpu.memory_space<any>>, %arg5: memref<8x128xf32, #tpu.memory_space<vmem>>, %arg6: memref<128x256xbf16, #tpu.memory_space<vmem>>, %arg7: memref<128x128xbf16, #tpu.memory_space<vmem>>, %arg8: memref<160x128xf32, #tpu.memory_space<vmem>>, %arg9: memref<2x!tpu.dma_semaphore, #tpu.memory_space<semaphore_mem>>) attributes {dimension_semantics = [#tpu.dimension_semantics<parallel>, #tpu.dimension_semantics<arbitrary>], iteration_bounds = array<i64: 1, 1>, scalar_prefetch = 0 : i64, scratch_operands = 4 : i64, tpu.core_type = #tpu.core_type<tc>, window_params = [{transform_indices = @transform_0, window_bounds = array<i64: 2, 160, 128>}, {}, {}, {transform_indices = @transform_3, window_bounds = array<i64: 8, 128>}]} {
    %c0_i32 = arith.constant 0 : i32
    %0 = arith.cmpi eq, %arg1, %c0_i32 : i32
    %1 = arith.extui %0 : i1 to i32
    %c0_i32_0 = arith.constant 0 : i32
    %2 = arith.cmpi ne, %1, %c0_i32_0 : i32
    scf.if %2 {
      %c0_i32_17 = arith.constant 0 : i32
      %33 = tpu.memref_slice %arg9[%c0_i32_17] : memref<2x!tpu.dma_semaphore, #tpu.memory_space<semaphore_mem>> -> memref<1x!tpu.dma_semaphore, #tpu.memory_space<semaphore_mem>>
      %34 = tpu.memref_squeeze %33 : memref<1x!tpu.dma_semaphore, #tpu.memory_space<semaphore_mem>> -> memref<!tpu.dma_semaphore, #tpu.memory_space<semaphore_mem>>
      tpu.enqueue_dma source(%arg3 : memref<128x256xbf16, #tpu.memory_space<any>>) target(%arg6 : memref<128x256xbf16, #tpu.memory_space<vmem>>) target_semaphore(%34 : memref<!tpu.dma_semaphore, #tpu.memory_space<semaphore_mem>>)
      %c1_i32 = arith.constant 1 : i32
      %35 = tpu.memref_slice %arg9[%c1_i32] : memref<2x!tpu.dma_semaphore, #tpu.memory_space<semaphore_mem>> -> memref<1x!tpu.dma_semaphore, #tpu.memory_space<semaphore_mem>>
      %36 = tpu.memref_squeeze %35 : memref<1x!tpu.dma_semaphore, #tpu.memory_space<semaphore_mem>> -> memref<!tpu.dma_semaphore, #tpu.memory_space<semaphore_mem>>
      tpu.enqueue_dma source(%arg4 : memref<128x128xbf16, #tpu.memory_space<any>>) target(%arg7 : memref<128x128xbf16, #tpu.memory_space<vmem>>) target_semaphore(%36 : memref<!tpu.dma_semaphore, #tpu.memory_space<semaphore_mem>>)
      %cst_18 = arith.constant 0.000000e+00 : f32
      %37 = vector.broadcast %cst_18 : f32 to vector<160x128xf32>
      %c0_19 = arith.constant 0 : index
      %c0_20 = arith.constant 0 : index
      %38 = vector.load %arg8[%c0_19, %c0_20] : memref<160x128xf32, #tpu.memory_space<vmem>>, vector<160x128xf32>
      tpu.vector_store %arg8[%c0_19, %c0_20], %37 {strides = array<i32>} : memref<160x128xf32, #tpu.memory_space<vmem>>, vector<160x128xf32>,
      %cst_21 = arith.constant 0.000000e+00 : f32
      %39 = vector.broadcast %cst_21 : f32 to vector<8x128xf32>
      %c0_22 = arith.constant 0 : index
      %c0_23 = arith.constant 0 : index
      %40 = vector.load %arg5[%c0_22, %c0_23] : memref<8x128xf32, #tpu.memory_space<vmem>>, vector<8x128xf32>
      tpu.vector_store %arg5[%c0_22, %c0_23], %39 {strides = array<i32>} : memref<8x128xf32, #tpu.memory_space<vmem>>, vector<8x128xf32>,
      %c0_i32_24 = arith.constant 0 : i32
      %41 = tpu.memref_slice %arg9[%c0_i32_24] : memref<2x!tpu.dma_semaphore, #tpu.memory_space<semaphore_mem>> -> memref<1x!tpu.dma_semaphore, #tpu.memory_space<semaphore_mem>>
      %42 = tpu.memref_squeeze %41 : memref<1x!tpu.dma_semaphore, #tpu.memory_space<semaphore_mem>> -> memref<!tpu.dma_semaphore, #tpu.memory_space<semaphore_mem>>
      tpu.wait_dma2 semaphore(%42 : memref<!tpu.dma_semaphore, #tpu.memory_space<semaphore_mem>>) src(%arg3 : memref<128x256xbf16, #tpu.memory_space<any>>) dst(%arg6 : memref<128x256xbf16, #tpu.memory_space<vmem>>)
      %c1_i32_25 = arith.constant 1 : i32
      %43 = tpu.memref_slice %arg9[%c1_i32_25] : memref<2x!tpu.dma_semaphore, #tpu.memory_space<semaphore_mem>> -> memref<1x!tpu.dma_semaphore, #tpu.memory_space<semaphore_mem>>
      %44 = tpu.memref_squeeze %43 : memref<1x!tpu.dma_semaphore, #tpu.memory_space<semaphore_mem>> -> memref<!tpu.dma_semaphore, #tpu.memory_space<semaphore_mem>>
      tpu.wait_dma2 semaphore(%44 : memref<!tpu.dma_semaphore, #tpu.memory_space<semaphore_mem>>) src(%arg4 : memref<128x128xbf16, #tpu.memory_space<any>>) dst(%arg7 : memref<128x128xbf16, #tpu.memory_space<vmem>>)
    } else {
    }
    %c0 = arith.constant 0 : index
    %c0_1 = arith.constant 0 : index
    %3 = vector.load %arg6[%c0, %c0_1] : memref<128x256xbf16, #tpu.memory_space<vmem>>, vector<128x256xbf16>
    %c0_2 = arith.constant 0 : index
    %c0_3 = arith.constant 0 : index
    %4 = vector.load %arg7[%c0_2, %c0_3] : memref<128x128xbf16, #tpu.memory_space<vmem>>, vector<128x128xbf16>
    %c0_4 = arith.constant 0 : index
    %c0_5 = arith.constant 0 : index
    %c0_6 = arith.constant 0 : index
    %5 = vector.load %arg2[%c0_4, %c0_5, %c0_6] : memref<2x160x128xbf16, #tpu.memory_space<vmem>>, vector<2x160x128xbf16>
    %6 = vector.shape_cast %5 : vector<2x160x128xbf16> to vector<320x128xbf16>
    %cst = arith.constant dense<0.000000e+00> : vector<320x256xf32>
    %7 = tpu.matmul %6, %3, %cst {dimension_numbers = #tpu.dot_dimension_numbers<[1], [0], [0], [1], [0, 0, 1, 1], [], []>} : vector<320x128xbf16>, vector<128x256xbf16>, vector<320x256xf32> -> vector<320x256xf32>
    %8 = vector.extract_strided_slice %7 {offsets = [0, 0], sizes = [320, 128], strides = [1, 1]} : vector<320x256xf32> to vector<320x128xf32>
    %9 = vector.extract_strided_slice %7 {offsets = [0, 128], sizes = [320, 128], strides = [1, 1]} : vector<320x256xf32> to vector<320x128xf32>
    %10 = arith.mulf %8, %8 : vector<320x128xf32>
    %11 = arith.mulf %9, %9 : vector<320x128xf32>
    %12 = arith.addf %10, %11 : vector<320x128xf32>
    %13 = arith.truncf %12 : vector<320x128xf32> to vector<320x128xbf16>
    %14 = math.sqrt %13 : vector<320x128xbf16>
    %cst_7 = arith.constant dense<0.000000e+00> : vector<320x128xf32>
    %15 = tpu.matmul %14, %4, %cst_7 {dimension_numbers = #tpu.dot_dimension_numbers<[1], [0], [0], [1], [0, 0, 1, 1], [], []>} : vector<320x128xbf16>, vector<128x128xbf16>, vector<320x128xf32> -> vector<320x128xf32>
    %16 = vector.extract_strided_slice %15 {offsets = [0, 0], sizes = [160, 128], strides = [1, 1]} : vector<320x128xf32> to vector<160x128xf32>
    %17 = vector.extract_strided_slice %15 {offsets = [160, 0], sizes = [160, 128], strides = [1, 1]} : vector<320x128xf32> to vector<160x128xf32>
    %cst_8 = arith.constant 9.99999974E-6 : f32
    %18 = vector.broadcast %cst_8 : f32 to vector<160x128xf32>
    %19 = arith.maximumf %16, %18 : vector<160x128xf32>
    %cst_9 = arith.constant 9.99999974E-6 : f32
    %20 = vector.broadcast %cst_9 : f32 to vector<160x128xf32>
    %21 = arith.maximumf %17, %20 : vector<160x128xf32>
    %22 = arith.divf %19, %21 : vector<160x128xf32>
    %23 = math.log %22 : vector<160x128xf32>
    %24 = math.absf %23 : vector<160x128xf32>
    %cst_10 = arith.constant 0.434294492 : f32
    %25 = vector.broadcast %cst_10 : f32 to vector<160x128xf32>
    %26 = arith.mulf %24, %25 : vector<160x128xf32>
    %c0_11 = arith.constant 0 : index
    %c0_12 = arith.constant 0 : index
    %27 = vector.load %arg8[%c0_11, %c0_12] : memref<160x128xf32, #tpu.memory_space<vmem>>, vector<160x128xf32>
    %28 = arith.addf %27, %26 : vector<160x128xf32>
    %c0_13 = arith.constant 0 : index
    %c0_14 = arith.constant 0 : index
    %29 = vector.load %arg8[%c0_13, %c0_14] : memref<160x128xf32, #tpu.memory_space<vmem>>, vector<160x128xf32>
    tpu.vector_store %arg8[%c0_13, %c0_14], %28 {strides = array<i32>} : memref<160x128xf32, #tpu.memory_space<vmem>>, vector<160x128xf32>,
    %c0_i32_15 = arith.constant 0 : i32
    %30 = arith.cmpi eq, %arg1, %c0_i32_15 : i32
    %31 = arith.extui %30 : i1 to i32
    %c0_i32_16 = arith.constant 0 : i32
    %32 = arith.cmpi ne, %31, %c0_i32_16 : i32
    scf.if %32 {
      %c0_17 = arith.constant 0 : index
      %c0_18 = arith.constant 0 : index
      %33 = vector.load %arg8[%c0_17, %c0_18] : memref<160x128xf32, #tpu.memory_space<vmem>>, vector<160x128xf32>
      %34 = vector.shape_cast %33 : vector<160x128xf32> to vector<20x8x128xf32>
      %cst_19 = arith.constant dense<0.000000e+00> : vector<8x128xf32>
      %35 = vector.multi_reduction <add>, %34, %cst_19 [0] : vector<20x8x128xf32> to vector<8x128xf32>
      %cst_20 = arith.constant 7.6923077E-4 : f32
      %36 = vector.broadcast %cst_20 : f32 to vector<8x128xf32>
      %37 = arith.mulf %35, %36 : vector<8x128xf32>
      %c0_21 = arith.constant 0 : index
      %c0_22 = arith.constant 0 : index
      %38 = vector.load %arg5[%c0_21, %c0_22] : memref<8x128xf32, #tpu.memory_space<vmem>>, vector<8x128xf32>
      tpu.vector_store %arg5[%c0_21, %c0_22], %37 {strides = array<i32>} : memref<8x128xf32, #tpu.memory_space<vmem>>, vector<8x128xf32>,
    } else {
    }
    return
  }
  func.func @transform_0(%arg0: i32, %arg1: i32) -> (i32, i32, i32) {
    %c1_i32 = arith.constant 1 : i32
    %0 = arith.muli %arg0, %c1_i32 : i32
    %1 = arith.addi %0, %arg1 : i32
    %c0_i32 = arith.constant 0 : i32
    %c0_i32_0 = arith.constant 0 : i32
    %c0_i32_1 = arith.constant 0 : i32
    return %c0_i32, %1, %c0_i32_0 : i32, i32, i32
  }
  func.func @transform_3(%arg0: i32, %arg1: i32) -> (i32, i32) {
    %c0_i32 = arith.constant 0 : i32
    %c0_i32_0 = arith.constant 0 : i32
    return %arg0, %c0_i32 : i32, i32
  }
}

module attributes {stable_mosaic.version = 11 : i64} {
  func.func @_mel_l1_kernel(%arg0: i32, %arg1: i32, %arg2: memref<2x288x64xbf16, #tpu.memory_space<vmem>>, %arg3: memref<64x256xbf16, #tpu.memory_space<any>>, %arg4: memref<128x128xbf16, #tpu.memory_space<any>>, %arg5: memref<8x128xf32, #tpu.memory_space<vmem>>, %arg6: memref<64x256xbf16, #tpu.memory_space<vmem>>, %arg7: memref<128x128xbf16, #tpu.memory_space<vmem>>, %arg8: memref<288x128xf32, #tpu.memory_space<vmem>>, %arg9: memref<2x!tpu.dma_semaphore, #tpu.memory_space<semaphore_mem>>) attributes {dimension_semantics = [#tpu.dimension_semantics<parallel>, #tpu.dimension_semantics<arbitrary>], iteration_bounds = array<i64: 1, 1>, scalar_prefetch = 0 : i64, scratch_operands = 4 : i64, tpu.core_type = #tpu.core_type<tc>, window_params = [{transform_indices = @transform_0, window_bounds = array<i64: 2, 288, 64>}, {}, {}, {transform_indices = @transform_3, window_bounds = array<i64: 8, 128>}]} {
    %c0_i32 = arith.constant 0 : i32
    %0 = arith.cmpi eq, %arg1, %c0_i32 : i32
    %1 = arith.extui %0 : i1 to i32
    %c0_i32_0 = arith.constant 0 : i32
    %2 = arith.cmpi ne, %1, %c0_i32_0 : i32
    scf.if %2 {
      %c0_i32_17 = arith.constant 0 : i32
      %33 = tpu.memref_slice %arg9[%c0_i32_17] : memref<2x!tpu.dma_semaphore, #tpu.memory_space<semaphore_mem>> -> memref<1x!tpu.dma_semaphore, #tpu.memory_space<semaphore_mem>>
      %34 = tpu.memref_squeeze %33 : memref<1x!tpu.dma_semaphore, #tpu.memory_space<semaphore_mem>> -> memref<!tpu.dma_semaphore, #tpu.memory_space<semaphore_mem>>
      tpu.enqueue_dma source(%arg3 : memref<64x256xbf16, #tpu.memory_space<any>>) target(%arg6 : memref<64x256xbf16, #tpu.memory_space<vmem>>) target_semaphore(%34 : memref<!tpu.dma_semaphore, #tpu.memory_space<semaphore_mem>>)
      %c1_i32 = arith.constant 1 : i32
      %35 = tpu.memref_slice %arg9[%c1_i32] : memref<2x!tpu.dma_semaphore, #tpu.memory_space<semaphore_mem>> -> memref<1x!tpu.dma_semaphore, #tpu.memory_space<semaphore_mem>>
      %36 = tpu.memref_squeeze %35 : memref<1x!tpu.dma_semaphore, #tpu.memory_space<semaphore_mem>> -> memref<!tpu.dma_semaphore, #tpu.memory_space<semaphore_mem>>
      tpu.enqueue_dma source(%arg4 : memref<128x128xbf16, #tpu.memory_space<any>>) target(%arg7 : memref<128x128xbf16, #tpu.memory_space<vmem>>) target_semaphore(%36 : memref<!tpu.dma_semaphore, #tpu.memory_space<semaphore_mem>>)
      %cst_18 = arith.constant 0.000000e+00 : f32
      %37 = vector.broadcast %cst_18 : f32 to vector<288x128xf32>
      %c0_19 = arith.constant 0 : index
      %c0_20 = arith.constant 0 : index
      %38 = vector.load %arg8[%c0_19, %c0_20] : memref<288x128xf32, #tpu.memory_space<vmem>>, vector<288x128xf32>
      tpu.vector_store %arg8[%c0_19, %c0_20], %37 {strides = array<i32>} : memref<288x128xf32, #tpu.memory_space<vmem>>, vector<288x128xf32>,
      %cst_21 = arith.constant 0.000000e+00 : f32
      %39 = vector.broadcast %cst_21 : f32 to vector<8x128xf32>
      %c0_22 = arith.constant 0 : index
      %c0_23 = arith.constant 0 : index
      %40 = vector.load %arg5[%c0_22, %c0_23] : memref<8x128xf32, #tpu.memory_space<vmem>>, vector<8x128xf32>
      tpu.vector_store %arg5[%c0_22, %c0_23], %39 {strides = array<i32>} : memref<8x128xf32, #tpu.memory_space<vmem>>, vector<8x128xf32>,
      %c0_i32_24 = arith.constant 0 : i32
      %41 = tpu.memref_slice %arg9[%c0_i32_24] : memref<2x!tpu.dma_semaphore, #tpu.memory_space<semaphore_mem>> -> memref<1x!tpu.dma_semaphore, #tpu.memory_space<semaphore_mem>>
      %42 = tpu.memref_squeeze %41 : memref<1x!tpu.dma_semaphore, #tpu.memory_space<semaphore_mem>> -> memref<!tpu.dma_semaphore, #tpu.memory_space<semaphore_mem>>
      tpu.wait_dma2 semaphore(%42 : memref<!tpu.dma_semaphore, #tpu.memory_space<semaphore_mem>>) src(%arg3 : memref<64x256xbf16, #tpu.memory_space<any>>) dst(%arg6 : memref<64x256xbf16, #tpu.memory_space<vmem>>)
      %c1_i32_25 = arith.constant 1 : i32
      %43 = tpu.memref_slice %arg9[%c1_i32_25] : memref<2x!tpu.dma_semaphore, #tpu.memory_space<semaphore_mem>> -> memref<1x!tpu.dma_semaphore, #tpu.memory_space<semaphore_mem>>
      %44 = tpu.memref_squeeze %43 : memref<1x!tpu.dma_semaphore, #tpu.memory_space<semaphore_mem>> -> memref<!tpu.dma_semaphore, #tpu.memory_space<semaphore_mem>>
      tpu.wait_dma2 semaphore(%44 : memref<!tpu.dma_semaphore, #tpu.memory_space<semaphore_mem>>) src(%arg4 : memref<128x128xbf16, #tpu.memory_space<any>>) dst(%arg7 : memref<128x128xbf16, #tpu.memory_space<vmem>>)
    } else {
    }
    %c0 = arith.constant 0 : index
    %c0_1 = arith.constant 0 : index
    %3 = vector.load %arg6[%c0, %c0_1] : memref<64x256xbf16, #tpu.memory_space<vmem>>, vector<64x256xbf16>
    %c0_2 = arith.constant 0 : index
    %c0_3 = arith.constant 0 : index
    %4 = vector.load %arg7[%c0_2, %c0_3] : memref<128x128xbf16, #tpu.memory_space<vmem>>, vector<128x128xbf16>
    %c0_4 = arith.constant 0 : index
    %c0_5 = arith.constant 0 : index
    %c0_6 = arith.constant 0 : index
    %5 = vector.load %arg2[%c0_4, %c0_5, %c0_6] : memref<2x288x64xbf16, #tpu.memory_space<vmem>>, vector<2x288x64xbf16>
    %6 = vector.shape_cast %5 : vector<2x288x64xbf16> to vector<576x64xbf16>
    %cst = arith.constant dense<0.000000e+00> : vector<576x256xf32>
    %7 = tpu.matmul %6, %3, %cst {dimension_numbers = #tpu.dot_dimension_numbers<[1], [0], [0], [1], [0, 0, 1, 1], [], []>} : vector<576x64xbf16>, vector<64x256xbf16>, vector<576x256xf32> -> vector<576x256xf32>
    %8 = vector.extract_strided_slice %7 {offsets = [0, 0], sizes = [576, 128], strides = [1, 1]} : vector<576x256xf32> to vector<576x128xf32>
    %9 = vector.extract_strided_slice %7 {offsets = [0, 128], sizes = [576, 128], strides = [1, 1]} : vector<576x256xf32> to vector<576x128xf32>
    %10 = arith.mulf %8, %8 : vector<576x128xf32>
    %11 = arith.mulf %9, %9 : vector<576x128xf32>
    %12 = arith.addf %10, %11 : vector<576x128xf32>
    %13 = arith.truncf %12 : vector<576x128xf32> to vector<576x128xbf16>
    %14 = math.sqrt %13 : vector<576x128xbf16>
    %cst_7 = arith.constant dense<0.000000e+00> : vector<576x128xf32>
    %15 = tpu.matmul %14, %4, %cst_7 {dimension_numbers = #tpu.dot_dimension_numbers<[1], [0], [0], [1], [0, 0, 1, 1], [], []>} : vector<576x128xbf16>, vector<128x128xbf16>, vector<576x128xf32> -> vector<576x128xf32>
    %16 = vector.extract_strided_slice %15 {offsets = [0, 0], sizes = [288, 128], strides = [1, 1]} : vector<576x128xf32> to vector<288x128xf32>
    %17 = vector.extract_strided_slice %15 {offsets = [288, 0], sizes = [288, 128], strides = [1, 1]} : vector<576x128xf32> to vector<288x128xf32>
    %cst_8 = arith.constant 9.99999974E-6 : f32
    %18 = vector.broadcast %cst_8 : f32 to vector<288x128xf32>
    %19 = arith.maximumf %16, %18 : vector<288x128xf32>
    %cst_9 = arith.constant 9.99999974E-6 : f32
    %20 = vector.broadcast %cst_9 : f32 to vector<288x128xf32>
    %21 = arith.maximumf %17, %20 : vector<288x128xf32>
    %22 = arith.divf %19, %21 : vector<288x128xf32>
    %23 = math.log %22 : vector<288x128xf32>
    %24 = math.absf %23 : vector<288x128xf32>
    %cst_10 = arith.constant 0.434294492 : f32
    %25 = vector.broadcast %cst_10 : f32 to vector<288x128xf32>
    %26 = arith.mulf %24, %25 : vector<288x128xf32>
    %c0_11 = arith.constant 0 : index
    %c0_12 = arith.constant 0 : index
    %27 = vector.load %arg8[%c0_11, %c0_12] : memref<288x128xf32, #tpu.memory_space<vmem>>, vector<288x128xf32>
    %28 = arith.addf %27, %26 : vector<288x128xf32>
    %c0_13 = arith.constant 0 : index
    %c0_14 = arith.constant 0 : index
    %29 = vector.load %arg8[%c0_13, %c0_14] : memref<288x128xf32, #tpu.memory_space<vmem>>, vector<288x128xf32>
    tpu.vector_store %arg8[%c0_13, %c0_14], %28 {strides = array<i32>} : memref<288x128xf32, #tpu.memory_space<vmem>>, vector<288x128xf32>,
    %c0_i32_15 = arith.constant 0 : i32
    %30 = arith.cmpi eq, %arg1, %c0_i32_15 : i32
    %31 = arith.extui %30 : i1 to i32
    %c0_i32_16 = arith.constant 0 : i32
    %32 = arith.cmpi ne, %31, %c0_i32_16 : i32
    scf.if %32 {
      %c0_17 = arith.constant 0 : index
      %c0_18 = arith.constant 0 : index
      %33 = vector.load %arg8[%c0_17, %c0_18] : memref<288x128xf32, #tpu.memory_space<vmem>>, vector<288x128xf32>
      %34 = vector.shape_cast %33 : vector<288x128xf32> to vector<36x8x128xf32>
      %cst_19 = arith.constant dense<0.000000e+00> : vector<8x128xf32>
      %35 = vector.multi_reduction <add>, %34, %cst_19 [0] : vector<36x8x128xf32> to vector<8x128xf32>
      %cst_20 = arith.constant 7.75193795E-4 : f32
      %36 = vector.broadcast %cst_20 : f32 to vector<8x128xf32>
      %37 = arith.mulf %35, %36 : vector<8x128xf32>
      %c0_21 = arith.constant 0 : index
      %c0_22 = arith.constant 0 : index
      %38 = vector.load %arg5[%c0_21, %c0_22] : memref<8x128xf32, #tpu.memory_space<vmem>>, vector<8x128xf32>
      tpu.vector_store %arg5[%c0_21, %c0_22], %37 {strides = array<i32>} : memref<8x128xf32, #tpu.memory_space<vmem>>, vector<8x128xf32>,
    } else {
    }
    return
  }
  func.func @transform_0(%arg0: i32, %arg1: i32) -> (i32, i32, i32) {
    %c1_i32 = arith.constant 1 : i32
    %0 = arith.muli %arg0, %c1_i32 : i32
    %1 = arith.addi %0, %arg1 : i32
    %c0_i32 = arith.constant 0 : i32
    %c0_i32_0 = arith.constant 0 : i32
    %c0_i32_1 = arith.constant 0 : i32
    return %c0_i32, %1, %c0_i32_0 : i32, i32, i32
  }
  func.func @transform_3(%arg0: i32, %arg1: i32) -> (i32, i32) {
    %c0_i32 = arith.constant 0 : i32
    %c0_i32_0 = arith.constant 0 : i32
    return %arg0, %c0_i32 : i32, i32
  }
}

module attributes {stable_mosaic.version = 11 : i64} {
  func.func @_mel_l1_kernel(%arg0: i32, %arg1: i32, %arg2: memref<2x96x256xbf16, #tpu.memory_space<vmem>>, %arg3: memref<256x256xbf16, #tpu.memory_space<any>>, %arg4: memref<128x128xbf16, #tpu.memory_space<any>>, %arg5: memref<8x128xf32, #tpu.memory_space<vmem>>, %arg6: memref<256x256xbf16, #tpu.memory_space<vmem>>, %arg7: memref<128x128xbf16, #tpu.memory_space<vmem>>, %arg8: memref<96x128xf32, #tpu.memory_space<vmem>>, %arg9: memref<2x!tpu.dma_semaphore, #tpu.memory_space<semaphore_mem>>) attributes {dimension_semantics = [#tpu.dimension_semantics<parallel>, #tpu.dimension_semantics<arbitrary>], iteration_bounds = array<i64: 1, 1>, scalar_prefetch = 0 : i64, scratch_operands = 4 : i64, tpu.core_type = #tpu.core_type<tc>, window_params = [{transform_indices = @transform_0, window_bounds = array<i64: 2, 96, 256>}, {}, {}, {transform_indices = @transform_3, window_bounds = array<i64: 8, 128>}]} {
    %c0_i32 = arith.constant 0 : i32
    %0 = arith.cmpi eq, %arg1, %c0_i32 : i32
    %1 = arith.extui %0 : i1 to i32
    %c0_i32_0 = arith.constant 0 : i32
    %2 = arith.cmpi ne, %1, %c0_i32_0 : i32
    scf.if %2 {
      %c0_i32_17 = arith.constant 0 : i32
      %33 = tpu.memref_slice %arg9[%c0_i32_17] : memref<2x!tpu.dma_semaphore, #tpu.memory_space<semaphore_mem>> -> memref<1x!tpu.dma_semaphore, #tpu.memory_space<semaphore_mem>>
      %34 = tpu.memref_squeeze %33 : memref<1x!tpu.dma_semaphore, #tpu.memory_space<semaphore_mem>> -> memref<!tpu.dma_semaphore, #tpu.memory_space<semaphore_mem>>
      tpu.enqueue_dma source(%arg3 : memref<256x256xbf16, #tpu.memory_space<any>>) target(%arg6 : memref<256x256xbf16, #tpu.memory_space<vmem>>) target_semaphore(%34 : memref<!tpu.dma_semaphore, #tpu.memory_space<semaphore_mem>>)
      %c1_i32 = arith.constant 1 : i32
      %35 = tpu.memref_slice %arg9[%c1_i32] : memref<2x!tpu.dma_semaphore, #tpu.memory_space<semaphore_mem>> -> memref<1x!tpu.dma_semaphore, #tpu.memory_space<semaphore_mem>>
      %36 = tpu.memref_squeeze %35 : memref<1x!tpu.dma_semaphore, #tpu.memory_space<semaphore_mem>> -> memref<!tpu.dma_semaphore, #tpu.memory_space<semaphore_mem>>
      tpu.enqueue_dma source(%arg4 : memref<128x128xbf16, #tpu.memory_space<any>>) target(%arg7 : memref<128x128xbf16, #tpu.memory_space<vmem>>) target_semaphore(%36 : memref<!tpu.dma_semaphore, #tpu.memory_space<semaphore_mem>>)
      %cst_18 = arith.constant 0.000000e+00 : f32
      %37 = vector.broadcast %cst_18 : f32 to vector<96x128xf32>
      %c0_19 = arith.constant 0 : index
      %c0_20 = arith.constant 0 : index
      %38 = vector.load %arg8[%c0_19, %c0_20] : memref<96x128xf32, #tpu.memory_space<vmem>>, vector<96x128xf32>
      tpu.vector_store %arg8[%c0_19, %c0_20], %37 {strides = array<i32>} : memref<96x128xf32, #tpu.memory_space<vmem>>, vector<96x128xf32>,
      %cst_21 = arith.constant 0.000000e+00 : f32
      %39 = vector.broadcast %cst_21 : f32 to vector<8x128xf32>
      %c0_22 = arith.constant 0 : index
      %c0_23 = arith.constant 0 : index
      %40 = vector.load %arg5[%c0_22, %c0_23] : memref<8x128xf32, #tpu.memory_space<vmem>>, vector<8x128xf32>
      tpu.vector_store %arg5[%c0_22, %c0_23], %39 {strides = array<i32>} : memref<8x128xf32, #tpu.memory_space<vmem>>, vector<8x128xf32>,
      %c0_i32_24 = arith.constant 0 : i32
      %41 = tpu.memref_slice %arg9[%c0_i32_24] : memref<2x!tpu.dma_semaphore, #tpu.memory_space<semaphore_mem>> -> memref<1x!tpu.dma_semaphore, #tpu.memory_space<semaphore_mem>>
      %42 = tpu.memref_squeeze %41 : memref<1x!tpu.dma_semaphore, #tpu.memory_space<semaphore_mem>> -> memref<!tpu.dma_semaphore, #tpu.memory_space<semaphore_mem>>
      tpu.wait_dma2 semaphore(%42 : memref<!tpu.dma_semaphore, #tpu.memory_space<semaphore_mem>>) src(%arg3 : memref<256x256xbf16, #tpu.memory_space<any>>) dst(%arg6 : memref<256x256xbf16, #tpu.memory_space<vmem>>)
      %c1_i32_25 = arith.constant 1 : i32
      %43 = tpu.memref_slice %arg9[%c1_i32_25] : memref<2x!tpu.dma_semaphore, #tpu.memory_space<semaphore_mem>> -> memref<1x!tpu.dma_semaphore, #tpu.memory_space<semaphore_mem>>
      %44 = tpu.memref_squeeze %43 : memref<1x!tpu.dma_semaphore, #tpu.memory_space<semaphore_mem>> -> memref<!tpu.dma_semaphore, #tpu.memory_space<semaphore_mem>>
      tpu.wait_dma2 semaphore(%44 : memref<!tpu.dma_semaphore, #tpu.memory_space<semaphore_mem>>) src(%arg4 : memref<128x128xbf16, #tpu.memory_space<any>>) dst(%arg7 : memref<128x128xbf16, #tpu.memory_space<vmem>>)
    } else {
    }
    %c0 = arith.constant 0 : index
    %c0_1 = arith.constant 0 : index
    %3 = vector.load %arg6[%c0, %c0_1] : memref<256x256xbf16, #tpu.memory_space<vmem>>, vector<256x256xbf16>
    %c0_2 = arith.constant 0 : index
    %c0_3 = arith.constant 0 : index
    %4 = vector.load %arg7[%c0_2, %c0_3] : memref<128x128xbf16, #tpu.memory_space<vmem>>, vector<128x128xbf16>
    %c0_4 = arith.constant 0 : index
    %c0_5 = arith.constant 0 : index
    %c0_6 = arith.constant 0 : index
    %5 = vector.load %arg2[%c0_4, %c0_5, %c0_6] : memref<2x96x256xbf16, #tpu.memory_space<vmem>>, vector<2x96x256xbf16>
    %6 = vector.shape_cast %5 : vector<2x96x256xbf16> to vector<192x256xbf16>
    %cst = arith.constant dense<0.000000e+00> : vector<192x256xf32>
    %7 = tpu.matmul %6, %3, %cst {dimension_numbers = #tpu.dot_dimension_numbers<[1], [0], [0], [1], [0, 0, 1, 1], [], []>} : vector<192x256xbf16>, vector<256x256xbf16>, vector<192x256xf32> -> vector<192x256xf32>
    %8 = vector.extract_strided_slice %7 {offsets = [0, 0], sizes = [192, 128], strides = [1, 1]} : vector<192x256xf32> to vector<192x128xf32>
    %9 = vector.extract_strided_slice %7 {offsets = [0, 128], sizes = [192, 128], strides = [1, 1]} : vector<192x256xf32> to vector<192x128xf32>
    %10 = arith.mulf %8, %8 : vector<192x128xf32>
    %11 = arith.mulf %9, %9 : vector<192x128xf32>
    %12 = arith.addf %10, %11 : vector<192x128xf32>
    %13 = arith.truncf %12 : vector<192x128xf32> to vector<192x128xbf16>
    %14 = math.sqrt %13 : vector<192x128xbf16>
    %cst_7 = arith.constant dense<0.000000e+00> : vector<192x128xf32>
    %15 = tpu.matmul %14, %4, %cst_7 {dimension_numbers = #tpu.dot_dimension_numbers<[1], [0], [0], [1], [0, 0, 1, 1], [], []>} : vector<192x128xbf16>, vector<128x128xbf16>, vector<192x128xf32> -> vector<192x128xf32>
    %16 = vector.extract_strided_slice %15 {offsets = [0, 0], sizes = [96, 128], strides = [1, 1]} : vector<192x128xf32> to vector<96x128xf32>
    %17 = vector.extract_strided_slice %15 {offsets = [96, 0], sizes = [96, 128], strides = [1, 1]} : vector<192x128xf32> to vector<96x128xf32>
    %cst_8 = arith.constant 9.99999974E-6 : f32
    %18 = vector.broadcast %cst_8 : f32 to vector<96x128xf32>
    %19 = arith.maximumf %16, %18 : vector<96x128xf32>
    %cst_9 = arith.constant 9.99999974E-6 : f32
    %20 = vector.broadcast %cst_9 : f32 to vector<96x128xf32>
    %21 = arith.maximumf %17, %20 : vector<96x128xf32>
    %22 = arith.divf %19, %21 : vector<96x128xf32>
    %23 = math.log %22 : vector<96x128xf32>
    %24 = math.absf %23 : vector<96x128xf32>
    %cst_10 = arith.constant 0.434294492 : f32
    %25 = vector.broadcast %cst_10 : f32 to vector<96x128xf32>
    %26 = arith.mulf %24, %25 : vector<96x128xf32>
    %c0_11 = arith.constant 0 : index
    %c0_12 = arith.constant 0 : index
    %27 = vector.load %arg8[%c0_11, %c0_12] : memref<96x128xf32, #tpu.memory_space<vmem>>, vector<96x128xf32>
    %28 = arith.addf %27, %26 : vector<96x128xf32>
    %c0_13 = arith.constant 0 : index
    %c0_14 = arith.constant 0 : index
    %29 = vector.load %arg8[%c0_13, %c0_14] : memref<96x128xf32, #tpu.memory_space<vmem>>, vector<96x128xf32>
    tpu.vector_store %arg8[%c0_13, %c0_14], %28 {strides = array<i32>} : memref<96x128xf32, #tpu.memory_space<vmem>>, vector<96x128xf32>,
    %c0_i32_15 = arith.constant 0 : i32
    %30 = arith.cmpi eq, %arg1, %c0_i32_15 : i32
    %31 = arith.extui %30 : i1 to i32
    %c0_i32_16 = arith.constant 0 : i32
    %32 = arith.cmpi ne, %31, %c0_i32_16 : i32
    scf.if %32 {
      %c0_17 = arith.constant 0 : index
      %c0_18 = arith.constant 0 : index
      %33 = vector.load %arg8[%c0_17, %c0_18] : memref<96x128xf32, #tpu.memory_space<vmem>>, vector<96x128xf32>
      %34 = vector.shape_cast %33 : vector<96x128xf32> to vector<12x8x128xf32>
      %cst_19 = arith.constant dense<0.000000e+00> : vector<8x128xf32>
      %35 = vector.multi_reduction <add>, %34, %cst_19 [0] : vector<12x8x128xf32> to vector<8x128xf32>
      %cst_20 = arith.constant 7.57575734E-4 : f32
      %36 = vector.broadcast %cst_20 : f32 to vector<8x128xf32>
      %37 = arith.mulf %35, %36 : vector<8x128xf32>
      %c0_21 = arith.constant 0 : index
      %c0_22 = arith.constant 0 : index
      %38 = vector.load %arg5[%c0_21, %c0_22] : memref<8x128xf32, #tpu.memory_space<vmem>>, vector<8x128xf32>
      tpu.vector_store %arg5[%c0_21, %c0_22], %37 {strides = array<i32>} : memref<8x128xf32, #tpu.memory_space<vmem>>, vector<8x128xf32>,
    } else {
    }
    return
  }
  func.func @transform_0(%arg0: i32, %arg1: i32) -> (i32, i32, i32) {
    %c1_i32 = arith.constant 1 : i32
    %0 = arith.muli %arg0, %c1_i32 : i32
    %1 = arith.addi %0, %arg1 : i32
    %c0_i32 = arith.constant 0 : i32
    %c0_i32_0 = arith.constant 0 : i32
    %c0_i32_1 = arith.constant 0 : i32
    return %c0_i32, %1, %c0_i32_0 : i32, i32, i32
  }
  func.func @transform_3(%arg0: i32, %arg1: i32) -> (i32, i32) {
    %c0_i32 = arith.constant 0 : i32
    %c0_i32_0 = arith.constant 0 : i32
    return %arg0, %c0_i32 : i32, i32
  }
}

</mosaic_0001>

<bundles_post_ra>
// kernel: multi_resolution_mel_loss.4
= control target key start
LH: loop header
LB: loop body
LE: loop exit
PB: predicated region body
PF: predicated region fallthrough
CT: control target
= control target key end

     0   :  { %s2188_s0 = inlined_call_operand.vmem [shape: bf16[2,160,128], index: 0, kind: input, shape index: {}]   ;;  %s2189_s1 = inlined_call_operand.vmem [shape: bf16[128,256], index: 1, kind: input, shape index: {}]   ;;  %s2190_s2 = inlined_call_operand.vmem [shape: bf16[128,128], index: 2, kind: input, shape index: {}]   ;;  %s2191_s3 = inlined_call_operand.vmem [shape: f32[8,128], index: 3, kind: output, shape index: {}]  }
   0x1   :  { %v54_v0 = vld [vmem:[%s2189_s1] sm:$0xf]  ;;  %v56_v1 = vld [vmem:[%s2189_s1 + $0x8] sm:$0xf]  ;;  %v58_v2 = vld [vmem:[%s2189_s1 + $0x4] sm:$0xf] }
   0x2   :  { %55 = vst [vmem:[#allocation2] sm:$0xf] %v54_v0  ;;  %57 = vst [vmem:[#allocation2 + $0x4] sm:$0xf] %v56_v1  ;;  %v60_v3 = vld [vmem:[%s2189_s1 + $0xc] sm:$0xff]   ;;  %v68_v6 = vld [vmem:[%s2189_s1 + $0x1c] sm:$0xff]  }
   0x3   :  { %59 = vst [vmem:[#allocation2 + $0x8] sm:$0xf] %v58_v2  ;;  %v64_v4 = vld [vmem:[%s2189_s1 + $0x18] sm:$0xf]  ;;  %v66_v5 = vld [vmem:[%s2189_s1 + $0x14] sm:$0xf] }
   0x4   :  { %61 = vst [vmem:[#allocation2 + $0xc] sm:$0xff] %v60_v3   ;;  %65 = vst [vmem:[#allocation2 + $0x14] sm:$0xf] %v64_v4  ;;  %v72_v7 = vld [vmem:[%s2189_s1 + $0x28] sm:$0xf]  ;;  %v76_v9 = vld [vmem:[%s2189_s1 + $0x2c] sm:$0xff]  }
   0x5   :  { %67 = vst [vmem:[#allocation2 + $0x18] sm:$0xf] %v66_v5  ;;  %v74_v8 = vld [vmem:[%s2189_s1 + $0x24] sm:$0xf]  ;;  %69 = vst [vmem:[#allocation2 + $0x1c] sm:$0xff] %v68_v6   ;;  %v84_v12 = vld [vmem:[%s2189_s1 + $0x3c] sm:$0xff]  }
   0x6   :  { %73 = vst [vmem:[#allocation2 + $0x24] sm:$0xf] %v72_v7  ;;  %75 = vst [vmem:[#allocation2 + $0x28] sm:$0xf] %v74_v8  ;;  %v80_v10 = vld [vmem:[%s2189_s1 + $0x38] sm:$0xf] }
   0x7   :  { %v82_v11 = vld [vmem:[%s2189_s1 + $0x34] sm:$0xf]  ;;  %77 = vst [vmem:[#allocation2 + $0x2c] sm:$0xff] %v76_v9   ;;  %81 = vst [vmem:[#allocation2 + $0x34] sm:$0xf] %v80_v10  ;;  %v92_v15 = vld [vmem:[%s2189_s1 + $0x4c] sm:$0xff]  }
   0x8   :  { %83 = vst [vmem:[#allocation2 + $0x38] sm:$0xf] %v82_v11  ;;  %v88_v13 = vld [vmem:[%s2189_s1 + $0x48] sm:$0xf]  ;;  %v90_v14 = vld [vmem:[%s2189_s1 + $0x44] sm:$0xf] }
   0x9   :  { %85 = vst [vmem:[#allocation2 + $0x3c] sm:$0xff] %v84_v12   ;;  %89 = vst [vmem:[#allocation2 + $0x44] sm:$0xf] %v88_v13  ;;  %v96_v16 = vld [vmem:[%s2189_s1 + $0x58] sm:$0xf]  ;;  %v100_v18 = vld [vmem:[%s2189_s1 + $0x5c] sm:$0xff]  }
   0xa   :  { %91 = vst [vmem:[#allocation2 + $0x48] sm:$0xf] %v90_v14  ;;  %v98_v17 = vld [vmem:[%s2189_s1 + $0x54] sm:$0xf]  ;;  %93 = vst [vmem:[#allocation2 + $0x4c] sm:$0xff] %v92_v15   ;;  %v108_v21 = vld [vmem:[%s2189_s1 + $0x6c] sm:$0xff]  }
   0xb   :  { %97 = vst [vmem:[#allocation2 + $0x54] sm:$0xf] %v96_v16  ;;  %99 = vst [vmem:[#allocation2 + $0x58] sm:$0xf] %v98_v17  ;;  %v104_v19 = vld [vmem:[%s2189_s1 + $0x68] sm:$0xf] }
   0xc   :  { %v106_v20 = vld [vmem:[%s2189_s1 + $0x64] sm:$0xf]  ;;  %101 = vst [vmem:[#allocation2 + $0x5c] sm:$0xff] %v100_v18   ;;  %105 = vst [vmem:[#allocation2 + $0x64] sm:$0xf] %v104_v19 }
   0xd   :  { %107 = vst [vmem:[#allocation2 + $0x68] sm:$0xf] %v106_v20  ;;  %v112_v22 = vld [vmem:[%s2189_s1 + $0x78] sm:$0xf]  ;;  %v114_v23 = vld [vmem:[%s2189_s1 + $0x74] sm:$0xf] }
   0xe   :  { %109 = vst [vmem:[#allocation2 + $0x6c] sm:$0xff] %v108_v21   ;;  %113 = vst [vmem:[#allocation2 + $0x74] sm:$0xf] %v112_v22  ;;  %v116_v24 = vld [vmem:[%s2189_s1 + $0x7c] sm:$0xf] }
   0xf   :  { %115 = vst [vmem:[#allocation2 + $0x78] sm:$0xf] %v114_v23  ;;  %117 = vst [vmem:[#allocation2 + $0x7c] sm:$0xf] %v116_v24 }
  0x10   :  { %212 = vsyncadd [#allocation5], 2048  ;;  %v1945_v25 = vld [vmem:[%s2190_s2] sm:$0xff]  ;;  %v1950_v26 = vld [vmem:[%s2190_s2 + $0x8] sm:$0xff] }
  0x11   :  { %v1955_v27 = vld [vmem:[%s2190_s2 + $0x10] sm:$0xff]  ;;  %v1960_v28 = vld [vmem:[%s2190_s2 + $0x18] sm:$0xff]  ;;  %v1965_v29 = vld [vmem:[%s2190_s2 + $0x20] sm:$0xff] }
  0x12   :  { %v1970_v30 = vld [vmem:[%s2190_s2 + $0x28] sm:$0xff]  ;;  %v1975_v31 = vld [vmem:[%s2190_s2 + $0x30] sm:$0xff]  ;;  %v1980_v32 = vld [vmem:[%s2190_s2 + $0x38] sm:$0xff] }
  0x13   :  { %269 = vsyncadd [#allocation5 + $0x1], 1024  ;;  %v1845_v33 = vmov 0.0  }
  0x14   :  { %290 = vst [vmem:[%s2191_s3] sm:$0xff] %v1845_v33 }
  0x15   :  { %1841 = dma.done.wait [#allocation5], 2048 }
  0x16   :  { %1842 = vsyncadd [#allocation5], 4294965248 }
  0x17   :  { %1843 = dma.done.wait [#allocation5 + $0x1], 1024 }
  0x18   :  { %1844 = vsyncadd [#allocation5 + $0x1], 4294966272  ;;  %v1846_v34 = vmov 0   ;;  %v299_v35 = vld [vmem:[#allocation2 + $0x8] sm:$0xff]  ;;  %v298_v36 = vld [vmem:[#allocation2] sm:$0xff] }
  0x19   :  { %514 = vmatprep.mubr.bf16.mxu0 %v1846_v34  ;;  %664 = vmatprep.mubr.bf16.mxu1 %v1846_v34  ;;  %v301_v37 = vld [vmem:[#allocation2 + $0x18] sm:$0xff]  ;;  %v300_v38 = vld [vmem:[#allocation2 + $0x10] sm:$0xff]  ;;  %v303_v39 = vld [vmem:[#allocation2 + $0x28] sm:$0xff] }
  0x1a   :  { %482 = vmatprep.subr.bf16.mxu0 %v299_v35  ;;  %1683 = vmatprep.subr.bf16.mxu1 %v299_v35  ;;  %v302_v40 = vld [vmem:[#allocation2 + $0x20] sm:$0xff]  ;;  %v305_v41 = vld [vmem:[#allocation2 + $0x38] sm:$0xff]  ;;  %v304_v42 = vld [vmem:[#allocation2 + $0x30] sm:$0xff] }
  0x1b   :  { %483 = vmatpush1.bf16.msra.mxu0 %v298_v36  ;;  %1691 = vmatpush1.bf16.msra.mxu1 %v298_v36  ;;  %v307_v43 = vld [vmem:[#allocation2 + $0x48] sm:$0xff]  ;;  %v306_v44 = vld [vmem:[#allocation2 + $0x40] sm:$0xff]  ;;  %v309_v45 = vld [vmem:[#allocation2 + $0x58] sm:$0xff] }
  0x1c   :  { %484 = vmatprep.subr.bf16.mxu0 %v301_v37  ;;  %1684 = vmatprep.subr.bf16.mxu1 %v301_v37  ;;  %v308_v46 = vld [vmem:[#allocation2 + $0x50] sm:$0xff]  ;;  %v311_v47 = vld [vmem:[#allocation2 + $0x68] sm:$0xff]  ;;  %v310_v48 = vld [vmem:[#allocation2 + $0x60] sm:$0xff] }
  0x1d   :  { %v313_v49 = vld [vmem:[#allocation2 + $0x78] sm:$0xff]  ;;  %v312_v50 = vld [vmem:[#allocation2 + $0x70] sm:$0xff]  ;;  %v1701_v51 = vld [vmem:[%s2188_s0] sm:$0xff]  }
  0x1e   :  { %v1712_v52 = vld [vmem:[%s2188_s0 + $0x78] sm:$0xff]   ;;  %v1702_v53 = vld [vmem:[%s2188_s0 + $0x8] sm:$0xff]   ;;  %v1714_v54 = vld [vmem:[%s2188_s0 + $0x80] sm:$0xff]  }
  0x1f   :  { %485 = vmatpush1.bf16.msra.mxu0 %v300_v38  ;;  %1692 = vmatpush1.bf16.msra.mxu1 %v300_v38  ;;  %v1703_v55 = vld [vmem:[%s2188_s0 + $0x10] sm:$0xff]   ;;  %v1716_v56 = vld [vmem:[%s2188_s0 + $0x88] sm:$0xff]   ;;  %v1704_v57 = vld [vmem:[%s2188_s0 + $0x18] sm:$0xff]  }
  0x20   :  { %486 = vmatprep.subr.bf16.mxu0 %v303_v39  ;;  %1685 = vmatprep.subr.bf16.mxu1 %v303_v39  ;;  %v1718_v58 = vld [vmem:[%s2188_s0 + $0x90] sm:$0xff]   ;;  %v1705_v59 = vld [vmem:[%s2188_s0 + $0x20] sm:$0xff]   ;;  %v1720_v60 = vld [vmem:[%s2188_s0 + $0x98] sm:$0xff]  }
  0x21   :  { %v1706_v61 = vld [vmem:[%s2188_s0 + $0x28] sm:$0xff]   ;;  %v1707_v62 = vld [vmem:[%s2188_s0 + $0x30] sm:$0xff]   ;;  %v1708_v63 = vld [vmem:[%s2188_s0 + $0x38] sm:$0xff]  }
  0x22   :  { %v1709_v0 = vld [vmem:[%s2188_s0 + $0x40] sm:$0xff]   ;;  %v1710_v1 = vld [vmem:[%s2188_s0 + $0x48] sm:$0xff]   ;;  %v1711_v2 = vld [vmem:[%s2188_s0 + $0x50] sm:$0xff]  }
  0x23   :  { %487 = vmatpush1.bf16.msra.mxu0 %v302_v40  ;;  %1693 = vmatpush1.bf16.msra.mxu1 %v302_v40  ;;  %v1713_v3 = vld [vmem:[%s2188_s0 + $0x58] sm:$0xff]   ;;  %v1715_v4 = vld [vmem:[%s2188_s0 + $0x60] sm:$0xff]   ;;  %v1717_v5 = vld [vmem:[%s2188_s0 + $0x68] sm:$0xff]  }
  0x24   :  { %488 = vmatprep.subr.bf16.mxu0 %v305_v41  ;;  %1686 = vmatprep.subr.bf16.mxu1 %v305_v41  ;;  %v1719_v6 = vld [vmem:[%s2188_s0 + $0x70] sm:$0xff]  }
  0x27   :  { %489 = vmatpush1.bf16.msra.mxu0 %v304_v42  ;;  %1694 = vmatpush1.bf16.msra.mxu1 %v304_v42 }
  0x28   :  { %490 = vmatprep.subr.bf16.mxu0 %v307_v43  ;;  %1687 = vmatprep.subr.bf16.mxu1 %v307_v43 }
  0x2b   :  { %491 = vmatpush1.bf16.msra.mxu0 %v306_v44  ;;  %1695 = vmatpush1.bf16.msra.mxu1 %v306_v44 }
  0x2c   :  { %492 = vmatprep.subr.bf16.mxu0 %v309_v45  ;;  %1688 = vmatprep.subr.bf16.mxu1 %v309_v45 }
  0x2f   :  { %493 = vmatpush1.bf16.msra.mxu0 %v308_v46  ;;  %1696 = vmatpush1.bf16.msra.mxu1 %v308_v46 }
  0x30   :  { %494 = vmatprep.subr.bf16.mxu0 %v311_v47  ;;  %1689 = vmatprep.subr.bf16.mxu1 %v311_v47 }
  0x33   :  { %495 = vmatpush1.bf16.msra.mxu0 %v310_v48  ;;  %1697 = vmatpush1.bf16.msra.mxu1 %v310_v48 }
  0x34   :  { %496 = vmatprep.subr.bf16.mxu0 %v313_v49  ;;  %1690 = vmatprep.subr.bf16.mxu1 %v313_v49 }
  0x37   :  { %497 = vmatpush1.bf16.msra.mxu0 %v312_v50  ;;  %1698 = vmatpush1.bf16.msra.mxu1 %v312_v50 }
  0x38   :  { %1627 = vmatprep.subr.bf16.mxu1 %v1945_v25 }
  0x3a   :  { %515 = vmatmul.mubr.bf16.vlgmr.msra.gmra.mrb[0].mxu0 %v1701_v51  ;;  %665 = vmatmul.mubr.bf16.vlgmr.msra.gmra.mrb[0].mxu1 %v1712_v52 }
  0x3b   :  { %524 = vmatprep.mubr.bf16.mxu0 %v1846_v34  ;;  %674 = vmatprep.mubr.bf16.mxu1 %v1846_v34 }
  0x3c   :  { %1628 = vmatpush3.bf16.msra.mxu1 %v1945_v25 }
  0x3d   :  { %1629 = vmatprep.subr.bf16.mxu1 %v1950_v26 }
  0x40   :  { %1630 = vmatpush3.bf16.msra.mxu1 %v1950_v26 }
  0x41   :  { %1631 = vmatprep.subr.bf16.mxu1 %v1955_v27 }
  0x42   :  { %525 = vmatmul.mubr.bf16.gmra.mrb[4].mxu0 %v1702_v53  ;;  %675 = vmatmul.mubr.bf16.gmra.mrb[4].mxu1 %v1714_v54 }
  0x43   :  { %534 = vmatprep.mubr.bf16.mxu0 %v1846_v34  ;;  %684 = vmatprep.mubr.bf16.mxu1 %v1846_v34 }
  0x44   :  { %1632 = vmatpush3.bf16.msra.mxu1 %v1955_v27 }
  0x45   :  { %1633 = vmatprep.subr.bf16.mxu1 %v1960_v28 }
  0x48   :  { %1634 = vmatpush3.bf16.msra.mxu1 %v1960_v28 }
  0x49   :  { %1635 = vmatprep.subr.bf16.mxu1 %v1965_v29 }
  0x4a   :  { %535 = vmatmul.mubr.bf16.gmra.mrb[8].mxu0 %v1703_v55  ;;  %685 = vmatmul.mubr.bf16.gmra.mrb[8].mxu1 %v1716_v56 }
  0x4b   :  { %544 = vmatprep.mubr.bf16.mxu0 %v1846_v34  ;;  %694 = vmatprep.mubr.bf16.mxu1 %v1846_v34 }
  0x4c   :  { %1636 = vmatpush3.bf16.msra.mxu1 %v1965_v29 }
  0x4d   :  { %1637 = vmatprep.subr.bf16.mxu1 %v1970_v30 }
  0x50   :  { %1638 = vmatpush3.bf16.msra.mxu1 %v1970_v30 }
  0x51   :  { %1639 = vmatprep.subr.bf16.mxu1 %v1975_v31 }
  0x52   :  { %545 = vmatmul.mubr.bf16.gmra.mrb[12].mxu0 %v1704_v57  ;;  %695 = vmatmul.mubr.bf16.gmra.mrb[12].mxu1 %v1718_v58 }
  0x53   :  { %554 = vmatprep.mubr.bf16.mxu0 %v1846_v34  ;;  %704 = vmatprep.mubr.bf16.mxu1 %v1846_v34 }
  0x54   :  { %1640 = vmatpush3.bf16.msra.mxu1 %v1975_v31 }
  0x55   :  { %1641 = vmatprep.subr.bf16.mxu1 %v1980_v32 }
  0x58   :  { %1642 = vmatpush3.bf16.msra.mxu1 %v1980_v32 }
  0x5a   :  { %555 = vmatmul.mubr.bf16.gmra.mrb[16].mxu0 %v1705_v59  ;;  %705 = vmatmul.mubr.bf16.gmra.mrb[16].mxu1 %v1720_v60 }
  0x5b   :  { %564 = vmatprep.mubr.bf16.mxu0 %v1846_v34 }
  0x62   :  { %565 = vmatmul.mubr.bf16.gmra.mrb[20].mxu0 %v1706_v61 }
  0x63   :  { %574 = vmatprep.mubr.bf16.mxu0 %v1846_v34 }
  0x6a   :  { %575 = vmatmul.mubr.bf16.gmra.mrb[24].mxu0 %v1707_v62 }
  0x6b   :  { %584 = vmatprep.mubr.bf16.mxu0 %v1846_v34 }
  0x72   :  { %585 = vmatmul.mubr.bf16.gmra.mrb[28].mxu0 %v1708_v63 }
  0x73   :  { %594 = vmatprep.mubr.bf16.mxu0 %v1846_v34 }
  0x7a   :  { %595 = vmatmul.mubr.bf16.gmra.mrb[32].mxu0 %v1709_v0 }
  0x7b   :  { %604 = vmatprep.mubr.bf16.mxu0 %v1846_v34 }
  0x82   :  { %605 = vmatmul.mubr.bf16.gmra.mrb[36].mxu0 %v1710_v1 }
  0x83   :  { %614 = vmatprep.mubr.bf16.mxu0 %v1846_v34 }
  0x8a   :  { %615 = vmatmul.mubr.bf16.gmra.mrb[40].mxu0 %v1711_v2 }
  0x8b   :  { %624 = vmatprep.mubr.bf16.mxu0 %v1846_v34 }
  0x92   :  { %625 = vmatmul.mubr.bf16.gmra.mrb[44].mxu0 %v1713_v3 }
  0x93   :  { %634 = vmatprep.mubr.bf16.mxu0 %v1846_v34 }
  0x9a   :  { %635 = vmatmul.mubr.bf16.gmra.mrb[48].mxu0 %v1715_v4 }
  0x9b   :  { %644 = vmatprep.mubr.bf16.mxu0 %v1846_v34 }
  0xa2   :  { %645 = vmatmul.mubr.bf16.gmra.mrb[52].mxu0 %v1717_v5 }
  0xa3   :  { %654 = vmatprep.mubr.bf16.mxu0 %v1846_v34 }
  0xaa   :  { %655 = vmatmul.mubr.bf16.gmra.mrb[56].mxu0 %v1719_v6 }
 0x10d   :  { %v516_v7 = vpop.f32.mrb[0].mxu0  ;;  %v666_v8 = vpop.f32.mrb[0].mxu1 }
 0x10e   :  { %v715_v9 = vmul.f32 %v516_v7, %v516_v7  ;;  %v518_v10 = vpop.f32.mrb[1].mxu0  ;;  %v745_v11 = vmul.f32 %v666_v8, %v666_v8  ;;  %v668_v12 = vpop.f32.mrb[1].mxu1 }
 0x10f   :  { %v755_v13 = vmul.f32 %v518_v10, %v518_v10  ;;  %v520_v14 = vpop.f32.mrb[2].mxu0  ;;  %v785_v15 = vmul.f32 %v668_v12, %v668_v12  ;;  %v670_v16 = vpop.f32.mrb[2].mxu1 }
 0x110   :  { %v716_v17 = vmul.f32 %v520_v14, %v520_v14  ;;  %v522_v18 = vpop.f32.mrb[3].mxu0  ;;  %v746_v19 = vmul.f32 %v670_v16, %v670_v16  ;;  %v672_v20 = vpop.f32.mrb[3].mxu1 }
 0x111   :  { %v795_v21 = vadd.f32 %v755_v13, %v715_v9  ;;  %v756_v22 = vmul.f32 %v522_v18, %v522_v18  ;;  %v825_v23 = vadd.f32 %v785_v15, %v745_v11  ;;  %v786_v24 = vmul.f32 %v672_v20, %v672_v20 }
 0x113   :  { %v796_v25 = vadd.f32 %v756_v22, %v716_v17  ;;  %v826_v26 = vadd.f32 %v786_v24, %v746_v19 }
 0x115   :  { %v835_v27 = vpack.c.bf16 %v796_v25, %v795_v21  ;;  %v526_v28 = vpop.f32.mrb[4].mxu0  ;;  %v2081_v29 = vpack.c.bf16 %v826_v26, %v825_v23  ;;  %v676_v30 = vpop.f32.mrb[4].mxu1 }
 0x116   :  { %v717_v31 = vmul.f32 %v526_v28, %v526_v28  ;;  %v528_v32 = vpop.f32.mrb[5].mxu0  ;;  %v747_v33 = vmul.f32 %v676_v30, %v676_v30  ;;  %v678_v34 = vpop.f32.mrb[5].mxu1 }
 0x117   :  { %v757_v35 = vmul.f32 %v528_v32, %v528_v32  ;;  %v530_v36 = vpop.f32.mrb[6].mxu0  ;;  %1721 = vrsqrt.bf16 %v835_v27  ;;  %v680_v37 = vpop.f32.mrb[6].mxu1  ;;  %v787_v40 = vmul.f32 %v678_v34, %v678_v34  ;;  %vm858_vm0 = vcmp.eq.bf16.partialorder %v835_v27, 2139127680 }
 0x118   :  { %v718_v38 = vmul.f32 %v530_v36, %v530_v36  ;;  %v532_v39 = vpop.f32.mrb[7].mxu0  ;;  %v748_v41 = vmul.f32 %v680_v37, %v680_v37  ;;  %v682_v42 = vpop.f32.mrb[7].mxu1  ;;  %v863_v9 = vand.u32 2147516416, %v835_v27  ;;  %vm861_vm1 = vcmp.eq.bf16.partialorder %v835_v27, 0 }
 0x119   :  { %v797_v43 = vadd.f32 %v757_v35, %v717_v31  ;;  %v758_v44 = vmul.f32 %v532_v39, %v532_v39  ;;  %v788_v45 = vmul.f32 %v682_v42, %v682_v42  ;;  %v827_v46 = vadd.f32 %v787_v40, %v747_v33 }
 0x11b   :  { %v798_v47 = vadd.f32 %v758_v44, %v718_v38  ;;  %v828_v48 = vadd.f32 %v788_v45, %v748_v41 }
 0x11d   :  { %v2083_v49 = vpack.c.bf16 %v798_v47, %v797_v43  ;;  %v536_v50 = vpop.f32.mrb[8].mxu0  ;;  %v2085_v51 = vpack.c.bf16 %v828_v48, %v827_v46  ;;  %v686_v52 = vpop.f32.mrb[8].mxu1 }
 0x11e   :  { %v719_v53 = vmul.f32 %v536_v50, %v536_v50  ;;  %v538_v54 = vpop.f32.mrb[9].mxu0  ;;  %v749_v55 = vmul.f32 %v686_v52, %v686_v52  ;;  %v688_v56 = vpop.f32.mrb[9].mxu1 }
 0x11f   :  { %1723 = vrsqrt.bf16 %v2083_v49  ;;  %v759_v57 = vmul.f32 %v538_v54, %v538_v54  ;;  %v540_v58 = vpop.f32.mrb[10].mxu0  ;;  %v690_v59 = vpop.f32.mrb[10].mxu1  ;;  %v789_v62 = vmul.f32 %v688_v56, %v688_v56  ;;  %vm869_vm2 = vcmp.eq.bf16.partialorder %v2083_v49, 2139127680 }
 0x120   :  { %v720_v60 = vmul.f32 %v540_v58, %v540_v58  ;;  %v542_v61 = vpop.f32.mrb[11].mxu0  ;;  %v750_v63 = vmul.f32 %v690_v59, %v690_v59  ;;  %v692_v0 = vpop.f32.mrb[11].mxu1  ;;  %v874_v37 = vand.u32 2147516416, %v2083_v49  ;;  %vm872_vm3 = vcmp.eq.bf16.partialorder %v2083_v49, 0 }
 0x121   :  { %v799_v1 = vadd.f32 %v759_v57, %v719_v53  ;;  %v760_v2 = vmul.f32 %v542_v61, %v542_v61  ;;  %v790_v3 = vmul.f32 %v692_v0, %v692_v0  ;;  %v829_v5 = vadd.f32 %v789_v62, %v749_v55 }
 0x122   :  { %v1722_v4 = vpop.eup %1721 }
 0x123   :  { %v800_v6 = vadd.f32 %v760_v2, %v720_v60  ;;  %v856_v7 = vmul.bf16 %v1722_v4, %v835_v27  ;;  %v830_v8 = vadd.f32 %v790_v3, %v750_v63 }
 0x125   :  { %v2088_v10 = vpack.c.bf16 %v800_v6, %v799_v1  ;;  %v546_v11 = vpop.f32.mrb[12].mxu0  ;;  %v859_v12 = vsel %vm858_vm0, %v835_v27, %v856_v7  ;;  %v2090_v13 = vpack.c.bf16 %v830_v8, %v829_v5  ;;  %v696_v14 = vpop.f32.mrb[12].mxu1 }
 0x126   :  { %v721_v15 = vmul.f32 %v546_v11, %v546_v11  ;;  %v548_v16 = vpop.f32.mrb[13].mxu0  ;;  %v865_v17 = vsel %vm861_vm1, %v863_v9, %v859_v12  ;;  %v751_v18 = vmul.f32 %v696_v14, %v696_v14  ;;  %v698_v19 = vpop.f32.mrb[13].mxu1 }
 0x127   :  { %v761_v20 = vmul.f32 %v548_v16, %v548_v16  ;;  %v550_v21 = vpop.f32.mrb[14].mxu0  ;;  %1643 = vmatprep.mubr.bf16.mxu1 %v865_v17  ;;  %1725 = vrsqrt.bf16 %v2088_v10  ;;  %v700_v22 = vpop.f32.mrb[14].mxu1  ;;  %v791_v25 = vmul.f32 %v698_v19, %v698_v19  ;;  %vm880_vm4 = vcmp.eq.bf16.partialorder %v2088_v10, 2139127680 }
 0x128   :  { %v722_v23 = vmul.f32 %v550_v21, %v550_v21  ;;  %v552_v24 = vpop.f32.mrb[15].mxu0  ;;  %v752_v26 = vmul.f32 %v700_v22, %v700_v22  ;;  %v702_v28 = vpop.f32.mrb[15].mxu1  ;;  %v885_v1 = vand.u32 2147516416, %v2088_v10  ;;  %vm883_vm5 = vcmp.eq.bf16.partialorder %v2088_v10, 0 }
 0x129   :  { %v801_v27 = vadd.f32 %v761_v20, %v721_v15  ;;  %v762_v30 = vmul.f32 %v552_v24, %v552_v24  ;;  %v792_v31 = vmul.f32 %v702_v28, %v702_v28  ;;  %v831_v33 = vadd.f32 %v791_v25, %v751_v18 }
 0x12a   :  { %v1724_v32 = vpop.eup %1723 }
 0x12b   :  { %v802_v34 = vadd.f32 %v762_v30, %v722_v23  ;;  %v867_v35 = vmul.bf16 %v1724_v32, %v2083_v49  ;;  %v832_v36 = vadd.f32 %v792_v31, %v752_v26 }
 0x12d   :  { %v838_v38 = vpack.c.bf16 %v802_v34, %v801_v27  ;;  %v556_v39 = vpop.f32.mrb[16].mxu0  ;;  %v870_v40 = vsel %vm869_vm2, %v2083_v49, %v867_v35  ;;  %v2098_v41 = vpack.c.bf16 %v832_v36, %v831_v33  ;;  %v706_v42 = vpop.f32.mrb[16].mxu1 }
 0x12e   :  { %v723_v43 = vmul.f32 %v556_v39, %v556_v39  ;;  %v558_v44 = vpop.f32.mrb[17].mxu0  ;;  %v876_v45 = vsel %vm872_vm3, %v874_v37, %v870_v40  ;;  %v753_v46 = vmul.f32 %v706_v42, %v706_v42  ;;  %v708_v47 = vpop.f32.mrb[17].mxu1 }
 0x12f   :  { %v763_v48 = vmul.f32 %v558_v44, %v558_v44  ;;  %v560_v50 = vpop.f32.mrb[18].mxu0  ;;  %1644 = vmatmul.mubr.bf16.vlgmr.msra.gmra.mrb[20].mxu1 %v876_v45  ;;  %1727 = vrsqrt.bf16 %v838_v38  ;;  %v710_v52 = vpop.f32.mrb[18].mxu1  ;;  %v793_v55 = vmul.f32 %v708_v47, %v708_v47  ;;  %vm891_vm6 = vcmp.eq.bf16.partialorder %v838_v38, 2139127680 }
 0x130   :  { %v724_v53 = vmul.f32 %v560_v50, %v560_v50  ;;  %v562_v54 = vpop.f32.mrb[19].mxu0  ;;  %v754_v56 = vmul.f32 %v710_v52, %v710_v52  ;;  %v712_v57 = vpop.f32.mrb[19].mxu1  ;;  %v896_v20 = vand.u32 2147516416, %v838_v38  ;;  %vm894_vm7 = vcmp.eq.bf16.partialorder %v838_v38, 0 }
 0x131   :  { %v803_v58 = vadd.f32 %v763_v48, %v723_v43  ;;  %v764_v49 = vmul.f32 %v562_v54, %v562_v54  ;;  %v794_v59 = vmul.f32 %v712_v57, %v712_v57  ;;  %v833_v61 = vadd.f32 %v793_v55, %v753_v46 }
 0x132   :  { %v1726_v60 = vpop.eup %1725 }
 0x133   :  { %v804_v62 = vadd.f32 %v764_v49, %v724_v53  ;;  %v878_v63 = vmul.bf16 %v1726_v60, %v2088_v10  ;;  %v834_v0 = vadd.f32 %v794_v59, %v754_v56 }
 0x135   :  { %v839_v2 = vpack.c.bf16 %v804_v62, %v803_v58  ;;  %v566_v3 = vpop.f32.mrb[20].mxu0  ;;  %v881_v4 = vsel %vm880_vm4, %v2088_v10, %v878_v63  ;;  %v2105_v5 = vpack.c.bf16 %v834_v0, %v833_v61 }
 0x136   :  { %v725_v6 = vmul.f32 %v566_v3, %v566_v3  ;;  %v568_v7 = vpop.f32.mrb[21].mxu0  ;;  %v887_v8 = vsel %vm883_vm5, %v885_v1, %v881_v4 }
 0x137   :  { %v765_v9 = vmul.f32 %v568_v7, %v568_v7  ;;  %v570_v11 = vpop.f32.mrb[22].mxu0  ;;  %1647 = vmatprep.mubr.bf16.mxu1 %v887_v8  ;;  %1729 = vrsqrt.bf16 %v839_v2  ;;  %vm902_vm8 = vcmp.eq.bf16.partialorder %v839_v2, 2139127680  ;;  %v907_v36 = vand.u32 2147516416, %v839_v2 }
 0x138   :  { %v726_v12 = vmul.f32 %v570_v11, %v570_v11  ;;  %v572_v14 = vpop.f32.mrb[23].mxu0  ;;  %vm905_vm9 = vcmp.eq.bf16.partialorder %v839_v2, 0 }
 0x139   :  { %v805_v15 = vadd.f32 %v765_v9, %v725_v6  ;;  %v766_v16 = vmul.f32 %v572_v14, %v572_v14 }
 0x13a   :  { %v1728_v17 = vpop.eup %1727 }
 0x13b   :  { %v806_v18 = vadd.f32 %v766_v16, %v726_v12  ;;  %v889_v19 = vmul.bf16 %v1728_v17, %v838_v38 }
 0x13d   :  { %v840_v21 = vpack.c.bf16 %v806_v18, %v805_v15  ;;  %v576_v10 = vpop.f32.mrb[24].mxu0  ;;  %v892_v22 = vsel %vm891_vm6, %v838_v38, %v889_v19 }
 0x13e   :  { %v727_v23 = vmul.f32 %v576_v10, %v576_v10  ;;  %v578_v24 = vpop.f32.mrb[25].mxu0  ;;  %v898_v25 = vsel %vm894_vm7, %v896_v20, %v892_v22 }
 0x13f   :  { %v767_v26 = vmul.f32 %v578_v24, %v578_v24  ;;  %v580_v28 = vpop.f32.mrb[26].mxu0  ;;  %1648 = vmatmul.mubr.bf16.gmra.mrb[24].mxu1 %v898_v25  ;;  %1731 = vrsqrt.bf16 %v840_v21  ;;  %vm913_vm10 = vcmp.eq.bf16.partialorder %v840_v21, 2139127680  ;;  %v918_v55 = vand.u32 2147516416, %v840_v21 }
 0x140   :  { %v728_v27 = vmul.f32 %v580_v28, %v580_v28  ;;  %v582_v30 = vpop.f32.mrb[27].mxu0  ;;  %vm916_vm11 = vcmp.eq.bf16.partialorder %v840_v21, 0 }
 0x141   :  { %v807_v31 = vadd.f32 %v767_v26, %v727_v23  ;;  %v768_v32 = vmul.f32 %v582_v30, %v582_v30 }
 0x142   :  { %v1730_v33 = vpop.eup %1729 }
 0x143   :  { %v808_v34 = vadd.f32 %v768_v32, %v728_v27  ;;  %v900_v35 = vmul.bf16 %v1730_v33, %v839_v2 }
 0x145   :  { %v841_v37 = vpack.c.bf16 %v808_v34, %v807_v31  ;;  %v586_v39 = vpop.f32.mrb[28].mxu0  ;;  %v903_v40 = vsel %vm902_vm8, %v839_v2, %v900_v35 }
 0x146   :  { %v729_v38 = vmul.f32 %v586_v39, %v586_v39  ;;  %v588_v42 = vpop.f32.mrb[29].mxu0  ;;  %v909_v43 = vsel %vm905_vm9, %v907_v36, %v903_v40 }
 0x147   :  { %v769_v44 = vmul.f32 %v588_v42, %v588_v42  ;;  %v590_v45 = vpop.f32.mrb[30].mxu0  ;;  %1651 = vmatprep.mubr.bf16.mxu1 %v909_v43  ;;  %1733 = vrsqrt.bf16 %v841_v37  ;;  %vm924_vm12 = vcmp.eq.bf16.partialorder %v841_v37, 2139127680  ;;  %v929_v7 = vand.u32 2147516416, %v841_v37 }
 0x148   :  { %v730_v46 = vmul.f32 %v590_v45, %v590_v45  ;;  %v592_v47 = vpop.f32.mrb[31].mxu0  ;;  %vm927_vm13 = vcmp.eq.bf16.partialorder %v841_v37, 0 }
 0x149   :  { %v809_v48 = vadd.f32 %v769_v44, %v729_v38  ;;  %v770_v50 = vmul.f32 %v592_v47, %v592_v47 }
 0x14a   :  { %v1732_v52 = vpop.eup %1731 }
 0x14b   :  { %v810_v53 = vadd.f32 %v770_v50, %v730_v46  ;;  %v911_v54 = vmul.bf16 %v1732_v52, %v840_v21 }
 0x14d   :  { %v842_v56 = vpack.c.bf16 %v810_v53, %v809_v48  ;;  %v596_v57 = vpop.f32.mrb[32].mxu0  ;;  %v914_v58 = vsel %vm913_vm10, %v840_v21, %v911_v54 }
 0x14e   :  { %v731_v49 = vmul.f32 %v596_v57, %v596_v57  ;;  %v598_v59 = vpop.f32.mrb[33].mxu0  ;;  %v920_v60 = vsel %vm916_vm11, %v918_v55, %v914_v58 }
 0x14f   :  { %v771_v61 = vmul.f32 %v598_v59, %v598_v59  ;;  %v600_v62 = vpop.f32.mrb[34].mxu0  ;;  %1652 = vmatmul.mubr.bf16.gmra.mrb[28].mxu1 %v920_v60  ;;  %1735 = vrsqrt.bf16 %v842_v56  ;;  %vm935_vm14 = vcmp.eq.bf16.partialorder %v842_v56, 2139127680  ;;  %v940_v24 = vand.u32 2147516416, %v842_v56 }
 0x150   :  { %v732_v63 = vmul.f32 %v600_v62, %v600_v62  ;;  %v602_v0 = vpop.f32.mrb[35].mxu0  ;;  %vm938_vm15 = vcmp.eq.bf16.partialorder %v842_v56, 0 }
 0x151   :  { %v811_v1 = vadd.f32 %v771_v61, %v731_v49  ;;  %v772_v2 = vmul.f32 %v602_v0, %v602_v0 }
 0x152   :  { %v1734_v3 = vpop.eup %1733 }
 0x153   :  { %v812_v4 = vadd.f32 %v772_v2, %v732_v63  ;;  %v922_v6 = vmul.bf16 %v1734_v3, %v841_v37 }
 0x155   :  { %v843_v8 = vpack.c.bf16 %v812_v4, %v811_v1  ;;  %v606_v9 = vpop.f32.mrb[36].mxu0  ;;  %v925_v11 = vsel %vm924_vm12, %v841_v37, %v922_v6  ;;  %vm1023_vm12 = vcmp.eq.bf16.partialorder %v2081_v29, 2139127680 }
 0x156   :  { %v733_v12 = vmul.f32 %v606_v9, %v606_v9  ;;  %v608_v14 = vpop.f32.mrb[37].mxu0  ;;  %v931_v15 = vsel %vm927_vm13, %v929_v7, %v925_v11  ;;  %vm1034_vm13 = vcmp.eq.bf16.partialorder %v2085_v51, 2139127680 }
 0x157   :  { %v773_v16 = vmul.f32 %v608_v14, %v608_v14  ;;  %v610_v17 = vpop.f32.mrb[38].mxu0  ;;  %1655 = vmatprep.mubr.bf16.mxu1 %v931_v15  ;;  %1737 = vrsqrt.bf16 %v843_v8  ;;  %vm946_vm0 = vcmp.eq.bf16.partialorder %v843_v8, 2139127680  ;;  %v951_v42 = vand.u32 2147516416, %v843_v8 }
 0x158   :  { %v734_v18 = vmul.f32 %v610_v17, %v610_v17  ;;  %v612_v19 = vpop.f32.mrb[39].mxu0  ;;  %vm949_vm1 = vcmp.eq.bf16.partialorder %v843_v8, 0 }
 0x159   :  { %v813_v20 = vadd.f32 %v773_v16, %v733_v12  ;;  %v774_v21 = vmul.f32 %v612_v19, %v612_v19 }
 0x15a   :  { %v1736_v10 = vpop.eup %1735 }
 0x15b   :  { %v814_v22 = vadd.f32 %v774_v21, %v734_v18  ;;  %v933_v23 = vmul.bf16 %v1736_v10, %v842_v56 }
 0x15d   :  { %v844_v25 = vpack.c.bf16 %v814_v22, %v813_v20  ;;  %v616_v26 = vpop.f32.mrb[40].mxu0  ;;  %v936_v28 = vsel %vm935_vm14, %v842_v56, %v933_v23  ;;  %vm1026_vm14 = vcmp.eq.bf16.partialorder %v2081_v29, 0 }
 0x15e   :  { %v735_v27 = vmul.f32 %v616_v26, %v616_v26  ;;  %v618_v30 = vpop.f32.mrb[41].mxu0  ;;  %v942_v31 = vsel %vm938_vm15, %v940_v24, %v936_v28 }
 0x15f   :  { %v775_v32 = vmul.f32 %v618_v30, %v618_v30  ;;  %v620_v33 = vpop.f32.mrb[42].mxu0  ;;  %1656 = vmatmul.mubr.bf16.gmra.mrb[32].mxu1 %v942_v31  ;;  %1739 = vrsqrt.bf16 %v844_v25  ;;  %vm957_vm2 = vcmp.eq.bf16.partialorder %v844_v25, 2139127680  ;;  %v962_v59 = vand.u32 2147516416, %v844_v25 }
 0x160   :  { %v736_v34 = vmul.f32 %v620_v33, %v620_v33  ;;  %v622_v35 = vpop.f32.mrb[43].mxu0  ;;  %vm960_vm3 = vcmp.eq.bf16.partialorder %v844_v25, 0 }
 0x161   :  { %v815_v36 = vadd.f32 %v775_v32, %v735_v27  ;;  %v776_v37 = vmul.f32 %v622_v35, %v622_v35 }
 0x162   :  { %v1738_v39 = vpop.eup %1737 }
 0x163   :  { %v816_v40 = vadd.f32 %v776_v37, %v736_v34  ;;  %v944_v38 = vmul.bf16 %v1738_v39, %v843_v8 }
 0x165   :  { %v845_v43 = vpack.c.bf16 %v816_v40, %v815_v36  ;;  %v626_v44 = vpop.f32.mrb[44].mxu0  ;;  %v947_v45 = vsel %vm946_vm0, %v843_v8, %v944_v38 }
 0x166   :  { %v737_v46 = vmul.f32 %v626_v44, %v626_v44  ;;  %v628_v47 = vpop.f32.mrb[45].mxu0  ;;  %v953_v48 = vsel %vm949_vm1, %v951_v42, %v947_v45  ;;  %vm1037_vm1 = vcmp.eq.bf16.partialorder %v2085_v51, 0 }
 0x167   :  { %v777_v50 = vmul.f32 %v628_v47, %v628_v47  ;;  %v630_v52 = vpop.f32.mrb[46].mxu0  ;;  %1659 = vmatprep.mubr.bf16.mxu1 %v953_v48  ;;  %1741 = vrsqrt.bf16 %v845_v43  ;;  %vm968_vm4 = vcmp.eq.bf16.partialorder %v845_v43, 2139127680  ;;  %v973_v14 = vand.u32 2147516416, %v845_v43 }
 0x168   :  { %v738_v53 = vmul.f32 %v630_v52, %v630_v52  ;;  %v632_v54 = vpop.f32.mrb[47].mxu0  ;;  %vm971_vm5 = vcmp.eq.bf16.partialorder %v845_v43, 0 }
 0x169   :  { %v817_v55 = vadd.f32 %v777_v50, %v737_v46  ;;  %v778_v56 = vmul.f32 %v632_v54, %v632_v54 }
 0x16a   :  { %v1740_v57 = vpop.eup %1739 }
 0x16b   :  { %v818_v58 = vadd.f32 %v778_v56, %v738_v53  ;;  %v955_v49 = vmul.bf16 %v1740_v57, %v844_v25 }
 0x16d   :  { %v846_v60 = vpack.c.bf16 %v818_v58, %v817_v55  ;;  %v636_v61 = vpop.f32.mrb[48].mxu0  ;;  %v958_v62 = vsel %vm957_vm2, %v844_v25, %v955_v49  ;;  %vm1045_vm2 = vcmp.eq.bf16.partialorder %v2090_v13, 2139127680 }
 0x16e   :  { %v739_v63 = vmul.f32 %v636_v61, %v636_v61  ;;  %v638_v0 = vpop.f32.mrb[49].mxu0  ;;  %v964_v1 = vsel %vm960_vm3, %v962_v59, %v958_v62  ;;  %vm1056_vm3 = vcmp.eq.bf16.partialorder %v2098_v41, 2139127680 }
 0x16f   :  { %v779_v2 = vmul.f32 %v638_v0, %v638_v0  ;;  %v640_v3 = vpop.f32.mrb[50].mxu0  ;;  %1660 = vmatmul.mubr.bf16.gmra.mrb[36].mxu1 %v964_v1  ;;  %1743 = vrsqrt.bf16 %v846_v60  ;;  %vm979_vm6 = vcmp.eq.bf16.partialorder %v846_v60, 2139127680  ;;  %v984_v30 = vand.u32 2147516416, %v846_v60 }
 0x170   :  { %v740_v4 = vmul.f32 %v640_v3, %v640_v3  ;;  %v642_v6 = vpop.f32.mrb[51].mxu0  ;;  %vm982_vm7 = vcmp.eq.bf16.partialorder %v846_v60, 0 }
 0x171   :  { %v819_v7 = vadd.f32 %v779_v2, %v739_v63  ;;  %v780_v8 = vmul.f32 %v642_v6, %v642_v6  ;;  %v1028_v63 = vand.u32 2147516416, %v2081_v29  ;;  %v1039_v2 = vand.u32 2147516416, %v2085_v51 }
 0x172   :  { %v1742_v9 = vpop.eup %1741 }
 0x173   :  { %v820_v11 = vadd.f32 %v780_v8, %v740_v4  ;;  %v966_v12 = vmul.bf16 %v1742_v9, %v845_v43 }
 0x175   :  { %v847_v15 = vpack.c.bf16 %v820_v11, %v819_v7  ;;  %v646_v16 = vpop.f32.mrb[52].mxu0  ;;  %v969_v17 = vsel %vm968_vm4, %v845_v43, %v966_v12  ;;  %vm1048_vm4 = vcmp.eq.bf16.partialorder %v2090_v13, 0 }
 0x176   :  { %v741_v18 = vmul.f32 %v646_v16, %v646_v16  ;;  %v648_v19 = vpop.f32.mrb[53].mxu0  ;;  %v975_v20 = vsel %vm971_vm5, %v973_v14, %v969_v17  ;;  %v1050_v14 = vand.u32 2147516416, %v2090_v13  ;;  %vm1059_vm5 = vcmp.eq.bf16.partialorder %v2098_v41, 0 }
 0x177   :  { %v781_v21 = vmul.f32 %v648_v19, %v648_v19  ;;  %v650_v10 = vpop.f32.mrb[54].mxu0  ;;  %1663 = vmatprep.mubr.bf16.mxu1 %v975_v20  ;;  %1745 = vrsqrt.bf16 %v847_v15  ;;  %vm990_vm8 = vcmp.eq.bf16.partialorder %v847_v15, 2139127680  ;;  %v995_v47 = vand.u32 2147516416, %v847_v15 }
 0x178   :  { %v742_v22 = vmul.f32 %v650_v10, %v650_v10  ;;  %v652_v23 = vpop.f32.mrb[55].mxu0  ;;  %vm993_vm9 = vcmp.eq.bf16.partialorder %v847_v15, 0 }
 0x179   :  { %v821_v24 = vadd.f32 %v781_v21, %v741_v18  ;;  %v782_v25 = vmul.f32 %v652_v23, %v652_v23  ;;  %v1072_v21 = vand.u32 2147516416, %v2105_v5 }
 0x17a   :  { %v1744_v26 = vpop.eup %1743 }
 0x17b   :  { %v822_v28 = vadd.f32 %v782_v25, %v742_v22  ;;  %v977_v27 = vmul.bf16 %v1744_v26, %v846_v60 }
 0x17d   :  { %v848_v31 = vpack.c.bf16 %v822_v28, %v821_v24  ;;  %v656_v32 = vpop.f32.mrb[56].mxu0  ;;  %v980_v33 = vsel %vm979_vm6, %v846_v60, %v977_v27  ;;  %vm1067_vm6 = vcmp.eq.bf16.partialorder %v2105_v5, 2139127680 }
 0x17e   :  { %v743_v34 = vmul.f32 %v656_v32, %v656_v32  ;;  %v658_v35 = vpop.f32.mrb[57].mxu0  ;;  %v986_v36 = vsel %vm982_vm7, %v984_v30, %v980_v33  ;;  %vm1070_vm7 = vcmp.eq.bf16.partialorder %v2105_v5, 0 }
 0x17f   :  { %v783_v37 = vmul.f32 %v658_v35, %v658_v35  ;;  %v660_v39 = vpop.f32.mrb[58].mxu0  ;;  %1664 = vmatmul.mubr.bf16.gmra.mrb[40].mxu1 %v986_v36  ;;  %1747 = vrsqrt.bf16 %v848_v31  ;;  %vm1001_vm10 = vcmp.eq.bf16.partialorder %v848_v31, 2139127680  ;;  %v1006_v55 = vand.u32 2147516416, %v848_v31 }
 0x180   :  { %v744_v40 = vmul.f32 %v660_v39, %v660_v39  ;;  %v662_v38 = vpop.f32.mrb[59].mxu0  ;;  %1749 = vrsqrt.bf16 %v2081_v29  ;;  %vm1004_vm11 = vcmp.eq.bf16.partialorder %v848_v31, 0 }
 0x181   :  { %v823_v42 = vadd.f32 %v783_v37, %v743_v34  ;;  %v784_v43 = vmul.f32 %v662_v38, %v662_v38  ;;  %1751 = vrsqrt.bf16 %v2085_v51 }
 0x182   :  { %v1746_v44 = vpop.eup %1745 }
 0x183   :  { %v824_v45 = vadd.f32 %v784_v43, %v744_v40  ;;  %v988_v46 = vmul.bf16 %v1746_v44, %v847_v15 }
 0x185   :  { %v849_v48 = vpack.c.bf16 %v824_v45, %v823_v42  ;;  %v991_v50 = vsel %vm990_vm8, %v847_v15, %v988_v46 }
 0x186   :  { %v997_v52 = vsel %vm993_vm9, %v995_v47, %v991_v50 }
 0x187   :  { %1667 = vmatprep.mubr.bf16.mxu1 %v997_v52  ;;  %1753 = vrsqrt.bf16 %v849_v48  ;;  %vm1012_vm15 = vcmp.eq.bf16.partialorder %v849_v48, 2139127680  ;;  %v1017_v0 = vand.u32 2147516416, %v849_v48  ;;  %vm1015_vm0 = vcmp.eq.bf16.partialorder %v849_v48, 0 }
 0x188   :  { %1755 = vrsqrt.bf16 %v2090_v13 }
 0x189   :  { %1757 = vrsqrt.bf16 %v2098_v41 }
 0x18a   :  { %v1748_v53 = vpop.eup %1747  ;;  %1759 = vrsqrt.bf16 %v2105_v5 }
 0x18b   :  { %v999_v54 = vmul.bf16 %v1748_v53, %v848_v31  ;;  %v1750_v56 = vpop.eup %1749 }
 0x18c   :  { %v1752_v58 = vpop.eup %1751  ;;  %v1021_v59 = vmul.bf16 %v1750_v56, %v2081_v29 }
 0x18d   :  { %v1002_v57 = vsel %vm1001_vm10, %v848_v31, %v999_v54  ;;  %v1032_v60 = vmul.bf16 %v1752_v58, %v2085_v51 }
 0x18e   :  { %v1008_v49 = vsel %vm1004_vm11, %v1006_v55, %v1002_v57  ;;  %v1024_v1 = vsel %vm1023_vm12, %v2081_v29, %v1021_v59 }
 0x18f   :  { %1668 = vmatmul.mubr.bf16.gmra.mrb[44].mxu1 %v1008_v49  ;;  %v1035_v6 = vsel %vm1034_vm13, %v2085_v51, %v1032_v60  ;;  %v1030_v9 = vsel %vm1026_vm14, %v1028_v63, %v1024_v1  ;;  %v1061_v51 = vand.u32 2147516416, %v2098_v41 }
 0x190   :  { %v1041_v11 = vsel %vm1037_vm1, %v1039_v2, %v1035_v6 }
 0x192   :  { %v1754_v61 = vpop.eup %1753 }
 0x193   :  { %v1010_v62 = vmul.bf16 %v1754_v61, %v849_v48  ;;  %v1756_v3 = vpop.eup %1755 }
 0x194   :  { %v1758_v7 = vpop.eup %1757  ;;  %v1043_v12 = vmul.bf16 %v1756_v3, %v2090_v13 }
 0x195   :  { %v1013_v4 = vsel %vm1012_vm15, %v849_v48, %v1010_v62  ;;  %v1054_v29 = vmul.bf16 %v1758_v7, %v2098_v41  ;;  %v1760_v16 = vpop.eup %1759 }
 0x196   :  { %v1019_v8 = vsel %vm1015_vm0, %v1017_v0, %v1013_v4  ;;  %v1046_v15 = vsel %vm1045_vm2, %v2090_v13, %v1043_v12  ;;  %v1065_v20 = vmul.bf16 %v1760_v16, %v2105_v5 }
 0x197   :  { %1671 = vmatprep.mubr.bf16.mxu1 %v1019_v8  ;;  %v1057_v17 = vsel %vm1056_vm3, %v2098_v41, %v1054_v29  ;;  %v1052_v18 = vsel %vm1048_vm4, %v1050_v14, %v1046_v15 }
 0x198   :  { %1672 = vmatmul.mubr.bf16.gmra.mrb[48].mxu1 %v1030_v9  ;;  %v1063_v19 = vsel %vm1059_vm5, %v1061_v51, %v1057_v17  ;;  %v1068_v10 = vsel %vm1067_vm6, %v2105_v5, %v1065_v20 }
 0x199   :  { %1675 = vmatprep.mubr.bf16.mxu1 %v1041_v11  ;;  %v1074_v13 = vsel %vm1070_vm7, %v1072_v21, %v1068_v10 }
 0x1a0   :  { %1676 = vmatmul.mubr.bf16.gmra.mrb[52].mxu1 %v1052_v18 }
 0x1a1   :  { %1679 = vmatprep.mubr.bf16.mxu1 %v1063_v19 }
 0x1a8   :  { %1680 = vmatmul.mubr.bf16.gmra.mrb[56].mxu1 %v1074_v13 }
 0x202   :  { %v1645_v22 = vpop.f32.mrb[20].mxu1 }
 0x203   :  { %v1109_v23 = vpop.f32.mrb[21].mxu1  ;;  %v1270_v52 = vmax.f32 %v1645_v22, 1e-05 }
 0x204   :  { %v1646_v24 = vpop.f32.mrb[22].mxu1  ;;  %v1268_v54 = vmax.f32 %v1109_v23, 1e-05 }
 0x205   :  { %v1112_v41 = vpop.f32.mrb[23].mxu1  ;;  %v1271_v56 = vmax.f32 %v1646_v24, 1e-05 }
 0x206   :  { %v1269_v49 = vmax.f32 %v1112_v41, 1e-05 }
 0x212   :  { %v2137_v25 = vpop.f32.mrb[24].mxu1 }
 0x213   :  { %v2139_v26 = vpop.f32.mrb[25].mxu1  ;;  %v1274_v21 = vmax.f32 %v2137_v25, 1e-05 }
 0x214   :  { %v2141_v28 = vpop.f32.mrb[26].mxu1  ;;  %v1272_v23 = vmax.f32 %v2139_v26, 1e-05 }
 0x215   :  { %v2143_v27 = vpop.f32.mrb[27].mxu1 }
 0x222   :  { %v2145_v30 = vpop.f32.mrb[28].mxu1 }
 0x223   :  { %v2147_v31 = vpop.f32.mrb[29].mxu1 }
 0x224   :  { %v2149_v32 = vpop.f32.mrb[30].mxu1 }
 0x225   :  { %v2151_v5 = vpop.f32.mrb[31].mxu1 }
 0x232   :  { %v2153_v33 = vpop.f32.mrb[32].mxu1 }
 0x233   :  { %v2155_v34 = vpop.f32.mrb[33].mxu1 }
 0x234   :  { %v2157_v35 = vpop.f32.mrb[34].mxu1 }
 0x235   :  { %v2159_v36 = vpop.f32.mrb[35].mxu1 }
 0x242   :  { %v2161_v37 = vpop.f32.mrb[36].mxu1 }
 0x243   :  { %v2163_v39 = vpop.f32.mrb[37].mxu1 }
 0x244   :  { %v2165_v40 = vpop.f32.mrb[38].mxu1 }
 0x245   :  { %v2167_v38 = vpop.f32.mrb[39].mxu1 }
 0x252   :  { %v1665_v42 = vpop.f32.mrb[40].mxu1 }
 0x253   :  { %v1290_v43 = vmax.f32 %v1665_v42, 1e-05  ;;  %v1189_v44 = vpop.f32.mrb[41].mxu1 }
 0x254   :  { %v1288_v45 = vmax.f32 %v1189_v44, 1e-05  ;;  %v1666_v46 = vpop.f32.mrb[42].mxu1 }
 0x255   :  { %1761 = vrcp.f32 %v1290_v43  ;;  %v1291_v47 = vmax.f32 %v1666_v46, 1e-05  ;;  %v1192_v48 = vpop.f32.mrb[43].mxu1  ;;  %v1275_v43 = vmax.f32 %v2141_v28, 1e-05 }
 0x256   :  { %1763 = vrcp.f32 %v1288_v45  ;;  %v1289_v50 = vmax.f32 %v1192_v48, 1e-05  ;;  %v1273_v46 = vmax.f32 %v2143_v27, 1e-05 }
 0x257   :  { %1765 = vrcp.f32 %v1291_v47 }
 0x258   :  { %1767 = vrcp.f32 %v1289_v50 }
 0x25f   :  { %v1762_v53 = vpop.eup %1761 }
 0x260   :  { %v1764_v55 = vpop.eup %1763  ;;  %v1313_v57 = vmul.f32 %v1762_v53, %v1270_v52 }
 0x261   :  { %v1766_v58 = vpop.eup %1765  ;;  %v1309_v59 = vmul.f32 %v1764_v55, %v1268_v54 }
 0x262   :  { %v1768_v60 = vpop.eup %1767  ;;  %1769 = vlog2.f32 %v1313_v57  ;;  %v1315_v61 = vmul.f32 %v1766_v58, %v1271_v56  ;;  %v1669_v62 = vpop.f32.mrb[44].mxu1 }
 0x263   :  { %1771 = vlog2.f32 %v1309_v59  ;;  %v1311_v63 = vmul.f32 %v1768_v60, %v1269_v49  ;;  %v1294_v0 = vmax.f32 %v1669_v62, 1e-05  ;;  %v1205_v1 = vpop.f32.mrb[45].mxu1  ;;  %v1278_v62 = vmax.f32 %v2145_v30, 1e-05 }
 0x264   :  { %1773 = vlog2.f32 %v1315_v61  ;;  %v1292_v2 = vmax.f32 %v1205_v1, 1e-05  ;;  %v1670_v3 = vpop.f32.mrb[46].mxu1  ;;  %v1276_v1 = vmax.f32 %v2147_v31, 1e-05 }
 0x265   :  { %1775 = vlog2.f32 %v1311_v63  ;;  %v1295_v4 = vmax.f32 %v1670_v3, 1e-05  ;;  %v1208_v6 = vpop.f32.mrb[47].mxu1 }
 0x266   :  { %1777 = vrcp.f32 %v1294_v0  ;;  %v1293_v7 = vmax.f32 %v1208_v6, 1e-05  ;;  %v1279_v6 = vmax.f32 %v2149_v32, 1e-05 }
 0x267   :  { %1779 = vrcp.f32 %v1292_v2 }
 0x268   :  { %1781 = vrcp.f32 %v1295_v4 }
 0x269   :  { %1783 = vrcp.f32 %v1293_v7 }
 0x26b   :  { %v1673_v8 = vpop.f32.mrb[48].mxu1 }
 0x26c   :  { %v1770_v9 = vpop.eup %1769  ;;  %v1298_v11 = vmax.f32 %v1673_v8, 1e-05  ;;  %v1221_v12 = vpop.f32.mrb[49].mxu1 }
 0x26d   :  { %v1772_v29 = vpop.eup %1771  ;;  %v1353_v14 = vmul.f32 0.6931472, %v1770_v9  ;;  %v1296_v15 = vmax.f32 %v1221_v12, 1e-05  ;;  %v1674_v51 = vpop.f32.mrb[50].mxu1 }
 0x26e   :  { %v1774_v16 = vpop.eup %1773  ;;  %v1349_v17 = vmul.f32 0.6931472, %v1772_v29  ;;  %1785 = vrcp.f32 %v1298_v11  ;;  %v1299_v18 = vmax.f32 %v1674_v51, 1e-05  ;;  %v1224_v19 = vpop.f32.mrb[51].mxu1 }
 0x26f   :  { %v1776_v20 = vpop.eup %1775  ;;  %v1355_v10 = vmul.f32 0.6931472, %v1774_v16  ;;  %1787 = vrcp.f32 %v1296_v15  ;;  %v1297_v13 = vmax.f32 %v1224_v19, 1e-05  ;;  %v1390_v47 = vand.u32 2147483647, %v1353_v14 }
 0x270   :  { %v1778_v22 = vpop.eup %1777  ;;  %v1388_v24 = vand.u32 2147483647, %v1349_v17  ;;  %v1351_v41 = vmul.f32 0.6931472, %v1776_v20  ;;  %1789 = vrcp.f32 %v1299_v18  ;;  %v1277_v9 = vmax.f32 %v2151_v5, 1e-05 }
 0x271   :  { %v1780_v42 = vpop.eup %1779  ;;  %v1321_v44 = vmul.f32 %v1778_v22, %v1274_v21  ;;  %1791 = vrcp.f32 %v1297_v13  ;;  %v1391_v53 = vand.u32 2147483647, %v1355_v10  ;;  %v1410_v59 = vmul.f32 0.4342945, %v1390_v47 }
 0x272   :  { %v1782_v45 = vpop.eup %1781  ;;  %v1389_v48 = vand.u32 2147483647, %v1351_v41  ;;  %v1317_v25 = vmul.f32 %v1780_v42, %v1272_v23  ;;  %v1408_v52 = vmul.f32 0.4342945, %v1388_v24  ;;  %v1282_v23 = vmax.f32 %v2153_v33, 1e-05 }
 0x273   :  { %v1784_v50 = vpop.eup %1783  ;;  %1793 = vlog2.f32 %v1321_v44  ;;  %v1323_v54 = vmul.f32 %v1782_v45, %v1275_v43  ;;  %v1677_v26 = vpop.f32.mrb[52].mxu1  ;;  %v1411_v2 = vmul.f32 0.4342945, %v1391_v53  ;;  %v1280_v42 = vmax.f32 %v2155_v34, 1e-05 }
 0x274   :  { %v1409_v55 = vmul.f32 0.4342945, %v1389_v48  ;;  %1795 = vlog2.f32 %v1317_v25  ;;  %v1319_v56 = vmul.f32 %v1784_v50, %v1273_v46  ;;  %v1302_v57 = vmax.f32 %v1677_v26, 1e-05  ;;  %v1237_v58 = vpop.f32.mrb[53].mxu1 }
 0x275   :  { %1797 = vlog2.f32 %v1323_v54  ;;  %v1300_v28 = vmax.f32 %v1237_v58, 1e-05  ;;  %v1678_v49 = vpop.f32.mrb[54].mxu1  ;;  %v1283_v46 = vmax.f32 %v2157_v35, 1e-05 }
 0x276   :  { %v1511_v60 = vadd.f32 %v1409_v55, %v1408_v52  ;;  %1799 = vlog2.f32 %v1319_v56  ;;  %v1303_v27 = vmax.f32 %v1678_v49, 1e-05  ;;  %v1240_v61 = vpop.f32.mrb[55].mxu1  ;;  %v1281_v47 = vmax.f32 %v2159_v36, 1e-05 }
 0x277   :  { %1801 = vrcp.f32 %v1302_v57  ;;  %v1301_v63 = vmax.f32 %v1240_v61, 1e-05  ;;  %v1286_v61 = vmax.f32 %v2161_v37, 1e-05 }
 0x278   :  { %v1786_v0 = vpop.eup %1785  ;;  %v1512_v3 = vadd.f32 %v1511_v60, %v1410_v59  ;;  %1803 = vrcp.f32 %v1300_v28 }
 0x279   :  { %v1788_v4 = vpop.eup %1787  ;;  %v1329_v7 = vmul.f32 %v1786_v0, %v1278_v62  ;;  %1805 = vrcp.f32 %v1303_v27  ;;  %v1284_v62 = vmax.f32 %v2163_v39, 1e-05 }
 0x27a   :  { %v1790_v8 = vpop.eup %1789  ;;  %v1513_v11 = vadd.f32 %v1512_v3, %v1411_v2  ;;  %v1325_v12 = vmul.f32 %v1788_v4, %v1276_v1  ;;  %1807 = vrcp.f32 %v1301_v63 }
 0x27b   :  { %v1792_v30 = vpop.eup %1791  ;;  %1809 = vlog2.f32 %v1329_v7  ;;  %v1331_v29 = vmul.f32 %v1790_v8, %v1279_v6  ;;  %v1681_v14 = vpop.f32.mrb[56].mxu1  ;;  %v1287_v7 = vmax.f32 %v2165_v40, 1e-05  ;;  %v1285_v8 = vmax.f32 %v2167_v38, 1e-05 }
 0x27c   :  { %1811 = vlog2.f32 %v1325_v12  ;;  %v1327_v31 = vmul.f32 %v1792_v30, %v1277_v9  ;;  %v1306_v15 = vmax.f32 %v1681_v14, 1e-05  ;;  %v1253_v51 = vpop.f32.mrb[57].mxu1 }
 0x27d   :  { %v1794_v16 = vpop.eup %1793  ;;  %1813 = vlog2.f32 %v1331_v29  ;;  %v1304_v17 = vmax.f32 %v1253_v51, 1e-05  ;;  %v1682_v32 = vpop.f32.mrb[58].mxu1 }
 0x27e   :  { %v1796_v18 = vpop.eup %1795  ;;  %1815 = vlog2.f32 %v1327_v31  ;;  %v1307_v19 = vmax.f32 %v1682_v32, 1e-05  ;;  %v1256_v20 = vpop.f32.mrb[59].mxu1  ;;  %v1361_v21 = vmul.f32 0.6931472, %v1794_v16 }
 0x27f   :  { %v1798_v5 = vpop.eup %1797  ;;  %v1357_v10 = vmul.f32 0.6931472, %v1796_v18  ;;  %1817 = vrcp.f32 %v1306_v15  ;;  %v1305_v13 = vmax.f32 %v1256_v20, 1e-05 }
 0x280   :  { %v1800_v22 = vpop.eup %1799  ;;  %v1363_v24 = vmul.f32 0.6931472, %v1798_v5  ;;  %1819 = vrcp.f32 %v1304_v17  ;;  %v1394_v50 = vand.u32 2147483647, %v1361_v21 }
 0x281   :  { %v1802_v41 = vpop.eup %1801  ;;  %v1392_v43 = vand.u32 2147483647, %v1357_v10  ;;  %v1359_v44 = vmul.f32 0.6931472, %v1800_v22  ;;  %1821 = vrcp.f32 %v1307_v19 }
 0x282   :  { %v1804_v45 = vpop.eup %1803  ;;  %v1337_v48 = vmul.f32 %v1802_v41, %v1282_v23  ;;  %1823 = vrcp.f32 %v1305_v13  ;;  %v1395_v26 = vand.u32 2147483647, %v1363_v24  ;;  %v1414_v49 = vmul.f32 0.4342945, %v1394_v50 }
 0x283   :  { %v1806_v25 = vpop.eup %1805  ;;  %v1412_v52 = vmul.f32 0.4342945, %v1392_v43  ;;  %v1393_v53 = vand.u32 2147483647, %v1359_v44  ;;  %v1333_v33 = vmul.f32 %v1804_v45, %v1280_v42 }
 0x284   :  { %v1808_v54 = vpop.eup %1807  ;;  %1825 = vlog2.f32 %v1337_v48  ;;  %v1339_v55 = vmul.f32 %v1806_v25, %v1283_v46  ;;  %v1415_v1 = vmul.f32 0.4342945, %v1395_v26 }
 0x285   :  { %v1810_v34 = vpop.eup %1809  ;;  %v1514_v56 = vadd.f32 %v1513_v11, %v1412_v52  ;;  %v1413_v57 = vmul.f32 0.4342945, %v1393_v53  ;;  %1827 = vlog2.f32 %v1333_v33  ;;  %v1335_v58 = vmul.f32 %v1808_v54, %v1281_v47 }
 0x286   :  { %v1812_v28 = vpop.eup %1811  ;;  %v1369_v35 = vmul.f32 0.6931472, %v1810_v34  ;;  %1829 = vlog2.f32 %v1339_v55 }
 0x287   :  { %v1814_v36 = vpop.eup %1813  ;;  %v1515_v59 = vadd.f32 %v1514_v56, %v1413_v57  ;;  %v1365_v60 = vmul.f32 0.6931472, %v1812_v28  ;;  %1831 = vlog2.f32 %v1335_v58 }
 0x288   :  { %v1816_v27 = vpop.eup %1815  ;;  %v1371_v63 = vmul.f32 0.6931472, %v1814_v36  ;;  %v1398_v9 = vand.u32 2147483647, %v1369_v35 }
 0x289   :  { %v1818_v0 = vpop.eup %1817  ;;  %v1516_v2 = vadd.f32 %v1515_v59, %v1414_v49  ;;  %v1396_v3 = vand.u32 2147483647, %v1365_v60  ;;  %v1367_v4 = vmul.f32 0.6931472, %v1816_v27 }
 0x28a   :  { %v1820_v6 = vpop.eup %1819  ;;  %v1345_v11 = vmul.f32 %v1818_v0, %v1286_v61  ;;  %v1399_v39 = vand.u32 2147483647, %v1371_v63  ;;  %v1418_v18 = vmul.f32 0.4342945, %v1398_v9 }
 0x28b   :  { %v1822_v12 = vpop.eup %1821  ;;  %v1416_v30 = vmul.f32 0.4342945, %v1396_v3  ;;  %v1517_v29 = vadd.f32 %v1516_v2, %v1415_v1  ;;  %v1397_v14 = vand.u32 2147483647, %v1367_v4  ;;  %v1341_v37 = vmul.f32 %v1820_v6, %v1284_v62 }
 0x28c   :  { %v1824_v31 = vpop.eup %1823  ;;  %1833 = vlog2.f32 %v1345_v11  ;;  %v1347_v15 = vmul.f32 %v1822_v12, %v1287_v7  ;;  %v1419_v10 = vmul.f32 0.4342945, %v1399_v39 }
 0x28d   :  { %v1518_v51 = vadd.f32 %v1517_v29, %v1416_v30  ;;  %v1417_v16 = vmul.f32 0.4342945, %v1397_v14  ;;  %1835 = vlog2.f32 %v1341_v37  ;;  %v1343_v17 = vmul.f32 %v1824_v31, %v1285_v8 }
 0x28e   :  { %v1826_v32 = vpop.eup %1825  ;;  %1837 = vlog2.f32 %v1347_v15 }
 0x28f   :  { %v1828_v40 = vpop.eup %1827  ;;  %v1519_v38 = vadd.f32 %v1518_v51, %v1417_v16  ;;  %1839 = vlog2.f32 %v1343_v17  ;;  %v1377_v20 = vmul.f32 0.6931472, %v1826_v32 }
 0x290   :  { %v1830_v19 = vpop.eup %1829  ;;  %v1373_v5 = vmul.f32 0.6931472, %v1828_v40 }
 0x291   :  { %v1832_v21 = vpop.eup %1831  ;;  %v1520_v13 = vadd.f32 %v1519_v38, %v1418_v18  ;;  %v1379_v22 = vmul.f32 0.6931472, %v1830_v19  ;;  %v1402_v42 = vand.u32 2147483647, %v1377_v20 }
 0x292   :  { %v1400_v23 = vand.u32 2147483647, %v1373_v5  ;;  %v1375_v24 = vmul.f32 0.6931472, %v1832_v21 }
 0x293   :  { %v1521_v41 = vadd.f32 %v1520_v13, %v1419_v10  ;;  %v1403_v45 = vand.u32 2147483647, %v1379_v22  ;;  %v1422_v52 = vmul.f32 0.4342945, %v1402_v42 }
 0x294   :  { %v1420_v43 = vmul.f32 0.4342945, %v1400_v23  ;;  %v1401_v44 = vand.u32 2147483647, %v1375_v24 }
 0x295   :  { %v1423_v55 = vmul.f32 0.4342945, %v1403_v45 }
 0x296   :  { %v1834_v46 = vpop.eup %1833  ;;  %v1522_v47 = vadd.f32 %v1521_v41, %v1420_v43  ;;  %v1421_v48 = vmul.f32 0.4342945, %v1401_v44 }
 0x297   :  { %v1836_v25 = vpop.eup %1835  ;;  %v1385_v33 = vmul.f32 0.6931472, %v1834_v46 }
 0x298   :  { %v1838_v50 = vpop.eup %1837  ;;  %v1523_v53 = vadd.f32 %v1522_v47, %v1421_v48  ;;  %v1381_v54 = vmul.f32 0.6931472, %v1836_v25 }
 0x299   :  { %v1840_v26 = vpop.eup %1839  ;;  %v1387_v57 = vmul.f32 0.6931472, %v1838_v50  ;;  %v1406_v28 = vand.u32 2147483647, %v1385_v33 }
 0x29a   :  { %v1524_v34 = vadd.f32 %v1523_v53, %v1422_v52  ;;  %v1404_v56 = vand.u32 2147483647, %v1381_v54  ;;  %v1383_v58 = vmul.f32 0.6931472, %v1840_v26 }
 0x29b   :  { %v1407_v60 = vand.u32 2147483647, %v1387_v57  ;;  %v1426_v61 = vmul.f32 0.4342945, %v1406_v28 }
 0x29c   :  { %v1424_v35 = vmul.f32 0.4342945, %v1404_v56  ;;  %v1525_v36 = vadd.f32 %v1524_v34, %v1423_v55  ;;  %v1405_v49 = vand.u32 2147483647, %v1383_v58 }
 0x29d   :  { %v1427_v63 = vmul.f32 0.4342945, %v1407_v60 }
 0x29e   :  { %v1526_v59 = vadd.f32 %v1525_v36, %v1424_v35  ;;  %v1425_v27 = vmul.f32 0.4342945, %v1405_v49 }
 0x2a0   :  { %v1527_v62 = vadd.f32 %v1526_v59, %v1425_v27 }
 0x2a2   :  { %v1528_v0 = vadd.f32 %v1527_v62, %v1426_v61 }
 0x2a4   :  { %v1529_v1 = vadd.f32 %v1528_v0, %v1427_v63 }
 0x2a6   :  { %v1530_v2 = vmul.f32 0.00076923077, %v1529_v1 }
 0x2a8   :  { %1531 = vst [vmem:[%s2191_s3] sm:$0xff] %v1530_v2 }
 0x2a9   :  { %1536 = vsyncmov [#allocation5] }
 0x2ac   :  { %s1537_s9 = vpop.sfrf %1536 }
 0x2ad   :  { %p1597_p0 = scmp.ne.s32.totalorder %s1537_s9, 0 }
 0x2af   :  { %1541 = shalt.err (%p1597_p0)  }
 0x2b0   :  { %1543 = vsyncmov [#allocation5 + $0x1] }
 0x2b3   :  { %s1544_s10 = vpop.sfrf %1543 }
 0x2b4   :  { %p1598_p1 = scmp.ne.s32.totalorder %s1544_s10, 0 }
 0x2b6   :  { %1548 = shalt.err (%p1598_p1)  }

// kernel: multi_resolution_mel_loss.3
= control target key start
LH: loop header
LB: loop body
LE: loop exit
PB: predicated region body
PF: predicated region fallthrough
CT: control target
= control target key end

     0   :  { %s3522_s0 = inlined_call_operand.vmem [shape: bf16[2,288,64], index: 0, kind: input, shape index: {}]   ;;  %s3523_s1 = inlined_call_operand.vmem [shape: bf16[64,256], index: 1, kind: input, shape index: {}]   ;;  %s3524_s2 = inlined_call_operand.vmem [shape: bf16[128,128], index: 2, kind: input, shape index: {}]   ;;  %s3525_s3 = inlined_call_operand.vmem [shape: f32[8,128], index: 3, kind: output, shape index: {}]  }
   0x1   :  { %v54_v0 = vld [vmem:[%s3523_s1] sm:$0xf]  ;;  %v56_v1 = vld [vmem:[%s3523_s1 + $0x8] sm:$0xf]  ;;  %v58_v2 = vld [vmem:[%s3523_s1 + $0x4] sm:$0xf] }
   0x2   :  { %55 = vst [vmem:[#allocation2] sm:$0xf] %v54_v0  ;;  %57 = vst [vmem:[#allocation2 + $0x4] sm:$0xf] %v56_v1  ;;  %v60_v3 = vld [vmem:[%s3523_s1 + $0xc] sm:$0xff]   ;;  %v68_v6 = vld [vmem:[%s3523_s1 + $0x1c] sm:$0xff]  }
   0x3   :  { %59 = vst [vmem:[#allocation2 + $0x8] sm:$0xf] %v58_v2  ;;  %v64_v4 = vld [vmem:[%s3523_s1 + $0x18] sm:$0xf]  ;;  %v66_v5 = vld [vmem:[%s3523_s1 + $0x14] sm:$0xf] }
   0x4   :  { %61 = vst [vmem:[#allocation2 + $0xc] sm:$0xff] %v60_v3   ;;  %65 = vst [vmem:[#allocation2 + $0x14] sm:$0xf] %v64_v4  ;;  %v72_v7 = vld [vmem:[%s3523_s1 + $0x28] sm:$0xf]  ;;  %v76_v9 = vld [vmem:[%s3523_s1 + $0x2c] sm:$0xff]  }
   0x5   :  { %67 = vst [vmem:[#allocation2 + $0x18] sm:$0xf] %v66_v5  ;;  %v74_v8 = vld [vmem:[%s3523_s1 + $0x24] sm:$0xf]  ;;  %69 = vst [vmem:[#allocation2 + $0x1c] sm:$0xff] %v68_v6  }
   0x6   :  { %73 = vst [vmem:[#allocation2 + $0x24] sm:$0xf] %v72_v7  ;;  %75 = vst [vmem:[#allocation2 + $0x28] sm:$0xf] %v74_v8  ;;  %v80_v10 = vld [vmem:[%s3523_s1 + $0x38] sm:$0xf] }
   0x7   :  { %v82_v11 = vld [vmem:[%s3523_s1 + $0x34] sm:$0xf]  ;;  %77 = vst [vmem:[#allocation2 + $0x2c] sm:$0xff] %v76_v9   ;;  %81 = vst [vmem:[#allocation2 + $0x34] sm:$0xf] %v80_v10 }
   0x8   :  { %83 = vst [vmem:[#allocation2 + $0x38] sm:$0xf] %v82_v11  ;;  %v84_v12 = vld [vmem:[%s3523_s1 + $0x3c] sm:$0xf] }
   0x9   :  { %85 = vst [vmem:[#allocation2 + $0x3c] sm:$0xf] %v84_v12 }
   0xa   :  { %148 = vsyncadd [#allocation5], 1024  ;;  %v182_v13 = vld [vmem:[%s3524_s2] sm:$0xff]  ;;  %v3046_v14 = vld [vmem:[%s3524_s2 + $0x8] sm:$0xff] }
   0xb   :  { %v3051_v15 = vld [vmem:[%s3524_s2 + $0x10] sm:$0xff]  ;;  %v3056_v16 = vld [vmem:[%s3524_s2 + $0x18] sm:$0xff]  ;;  %v3061_v17 = vld [vmem:[%s3524_s2 + $0x20] sm:$0xff] }
   0xc   :  { %v3066_v18 = vld [vmem:[%s3524_s2 + $0x28] sm:$0xff]  ;;  %v3071_v19 = vld [vmem:[%s3524_s2 + $0x30] sm:$0xff]  ;;  %v3076_v20 = vld [vmem:[%s3524_s2 + $0x38] sm:$0xff] }
   0xd   :  { %205 = vsyncadd [#allocation5 + $0x1], 1024  ;;  %v2979_v21 = vmov 0.0  }
   0xe   :  { %242 = vst [vmem:[%s3525_s3] sm:$0xff] %v2979_v21 }
   0xf   :  { %2975 = dma.done.wait [#allocation5], 1024 }
  0x10   :  { %2976 = vsyncadd [#allocation5], 4294966272 }
  0x11   :  { %2977 = dma.done.wait [#allocation5 + $0x1], 1024 }
  0x12   :  { %2978 = vsyncadd [#allocation5 + $0x1], 4294966272  ;;  %v2980_v22 = vmov 0   ;;  %v252_v23 = vld [vmem:[#allocation2 + $0x8] sm:$0xff]  ;;  %v251_v24 = vld [vmem:[#allocation2] sm:$0xff]  ;;  %vm519_vm0 = vcmask 523264  }
  0x13   :  { %660 = vmatprep.mubr.bf16.mxu0 %v2980_v22  ;;  %930 = vmatprep.mubr.bf16.mxu1 %v2980_v22  ;;  %v254_v25 = vld [vmem:[#allocation2 + $0x18] sm:$0xff]  ;;  %v253_v26 = vld [vmem:[#allocation2 + $0x10] sm:$0xff]  ;;  %v256_v27 = vld [vmem:[#allocation2 + $0x28] sm:$0xff] }
  0x14   :  { %628 = vmatprep.subr.bf16.mxu0 %v252_v23  ;;  %2713 = vmatprep.subr.bf16.mxu1 %v252_v23  ;;  %v255_v28 = vld [vmem:[#allocation2 + $0x20] sm:$0xff]  ;;  %v258_v29 = vld [vmem:[#allocation2 + $0x38] sm:$0xff]  ;;  %v257_v30 = vld [vmem:[#allocation2 + $0x30] sm:$0xff] }
  0x15   :  { %629 = vmatpush1.bf16.msra.mxu0 %v251_v24  ;;  %2717 = vmatpush1.bf16.msra.mxu1 %v251_v24  ;;  %v2723_v31 = vld [vmem:[%s3522_s0] sm:$0xff]   ;;  %v2724_v32 = vld [vmem:[%s3522_s0 + $0x8] sm:$0xff]   ;;  %v2725_v33 = vld [vmem:[%s3522_s0 + $0x10] sm:$0xff]  }
  0x16   :  { %630 = vmatprep.subr.bf16.mxu0 %v254_v25  ;;  %2714 = vmatprep.subr.bf16.mxu1 %v254_v25  ;;  %v2726_v34 = vld [vmem:[%s3522_s0 + $0x18] sm:$0xff]   ;;  %v2727_v35 = vld [vmem:[%s3522_s0 + $0x20] sm:$0xff]   ;;  %v2728_v37 = vld [vmem:[%s3522_s0 + $0x28] sm:$0xff]  }
  0x17   :  { %v2744_v36 = vld [vmem:[%s3522_s0 + $0xd8] sm:$0xff]   ;;  %v2746_v38 = vld [vmem:[%s3522_s0 + $0xe0] sm:$0xff]   ;;  %v2729_v39 = vld [vmem:[%s3522_s0 + $0x30] sm:$0xff]  }
  0x18   :  { %v2748_v40 = vld [vmem:[%s3522_s0 + $0xe8] sm:$0xff]   ;;  %v2730_v41 = vld [vmem:[%s3522_s0 + $0x38] sm:$0xff]   ;;  %v2750_v42 = vld [vmem:[%s3522_s0 + $0xf0] sm:$0xff]  }
  0x19   :  { %631 = vmatpush1.bf16.msra.mxu0 %v253_v26  ;;  %2718 = vmatpush1.bf16.msra.mxu1 %v253_v26  ;;  %v2731_v43 = vld [vmem:[%s3522_s0 + $0x40] sm:$0xff]   ;;  %v2752_v44 = vld [vmem:[%s3522_s0 + $0xf8] sm:$0xff]   ;;  %v2732_v45 = vld [vmem:[%s3522_s0 + $0x48] sm:$0xff]  }
  0x1a   :  { %632 = vmatprep.subr.bf16.mxu0 %v256_v27  ;;  %2715 = vmatprep.subr.bf16.mxu1 %v256_v27  ;;  %v2754_v46 = vld [vmem:[%s3522_s0 + $0x100] sm:$0xff]   ;;  %v2733_v47 = vld [vmem:[%s3522_s0 + $0x50] sm:$0xff]   ;;  %v2756_v48 = vld [vmem:[%s3522_s0 + $0x108] sm:$0xff]  }
  0x1b   :  { %v2734_v49 = vld [vmem:[%s3522_s0 + $0x58] sm:$0xff]   ;;  %v2757_v50 = vld [vmem:[%s3522_s0 + $0x110] sm:$0xff]   ;;  %v2735_v51 = vld [vmem:[%s3522_s0 + $0x60] sm:$0xff]  }
  0x1c   :  { %v2758_v52 = vld [vmem:[%s3522_s0 + $0x118] sm:$0xff]   ;;  %v2736_v53 = vld [vmem:[%s3522_s0 + $0x68] sm:$0xff]   ;;  %v2737_v54 = vld [vmem:[%s3522_s0 + $0x70] sm:$0xff]  }
  0x1d   :  { %633 = vmatpush1.bf16.msra.mxu0 %v255_v28  ;;  %2719 = vmatpush1.bf16.msra.mxu1 %v255_v28  ;;  %v2738_v55 = vld [vmem:[%s3522_s0 + $0x78] sm:$0xff]   ;;  %v2739_v56 = vld [vmem:[%s3522_s0 + $0x80] sm:$0xff]   ;;  %v2740_v57 = vld [vmem:[%s3522_s0 + $0x88] sm:$0xff]  }
  0x1e   :  { %634 = vmatprep.subr.bf16.mxu0 %v258_v29  ;;  %2716 = vmatprep.subr.bf16.mxu1 %v258_v29  ;;  %v2741_v58 = vld [vmem:[%s3522_s0 + $0x90] sm:$0xff]   ;;  %v2742_v59 = vld [vmem:[%s3522_s0 + $0x98] sm:$0xff]   ;;  %v2743_v60 = vld [vmem:[%s3522_s0 + $0xa0] sm:$0xff]  }
  0x1f   :  { %v2745_v61 = vld [vmem:[%s3522_s0 + $0xa8] sm:$0xff]   ;;  %v2747_v62 = vld [vmem:[%s3522_s0 + $0xb0] sm:$0xff]   ;;  %v2749_v63 = vld [vmem:[%s3522_s0 + $0xb8] sm:$0xff]  }
  0x20   :  { %v2751_v0 = vld [vmem:[%s3522_s0 + $0xc0] sm:$0xff]   ;;  %v2753_v1 = vld [vmem:[%s3522_s0 + $0xc8] sm:$0xff]   ;;  %v2755_v2 = vld [vmem:[%s3522_s0 + $0xd0] sm:$0xff]  }
  0x21   :  { %635 = vmatpush1.bf16.msra.mxu0 %v257_v30  ;;  %2720 = vmatpush1.bf16.msra.mxu1 %v257_v30 }
  0x22   :  { %2625 = vmatprep.subr.bf16.mxu1 %v182_v13 }
  0x24   :  { %2543 = vmatmul.mubr.msk.bf16.vlgmr.msra.gmra.mrb[0].mxu0 %vm519_vm0, %v2723_v31  ;;  %2570 = vmatmul.mubr.msk.bf16.vlgmr.msra.gmra.mrb[0].mxu1 %vm519_vm0, %v2744_v36 }
  0x25   :  { %670 = vmatprep.mubr.bf16.mxu0 %v2980_v22  ;;  %940 = vmatprep.mubr.bf16.mxu1 %v2980_v22 }
  0x26   :  { %2626 = vmatpush3.bf16.msra.mxu1 %v182_v13 }
  0x27   :  { %2627 = vmatprep.subr.bf16.mxu1 %v3046_v14 }
  0x2a   :  { %2628 = vmatpush3.bf16.msra.mxu1 %v3046_v14 }
  0x2b   :  { %2629 = vmatprep.subr.bf16.mxu1 %v3051_v15 }
  0x2c   :  { %2544 = vmatmul.mubr.msk.bf16.gmra.mrb[4].mxu0 %vm519_vm0, %v2724_v32  ;;  %2571 = vmatmul.mubr.msk.bf16.gmra.mrb[4].mxu1 %vm519_vm0, %v2746_v38 }
  0x2d   :  { %680 = vmatprep.mubr.bf16.mxu0 %v2980_v22  ;;  %950 = vmatprep.mubr.bf16.mxu1 %v2980_v22 }
  0x2e   :  { %2630 = vmatpush3.bf16.msra.mxu1 %v3051_v15 }
  0x2f   :  { %2631 = vmatprep.subr.bf16.mxu1 %v3056_v16 }
  0x32   :  { %2632 = vmatpush3.bf16.msra.mxu1 %v3056_v16 }
  0x33   :  { %2633 = vmatprep.subr.bf16.mxu1 %v3061_v17 }
  0x34   :  { %2545 = vmatmul.mubr.msk.bf16.gmra.mrb[8].mxu0 %vm519_vm0, %v2725_v33  ;;  %2572 = vmatmul.mubr.msk.bf16.gmra.mrb[8].mxu1 %vm519_vm0, %v2748_v40 }
  0x35   :  { %690 = vmatprep.mubr.bf16.mxu0 %v2980_v22  ;;  %960 = vmatprep.mubr.bf16.mxu1 %v2980_v22 }
  0x36   :  { %2634 = vmatpush3.bf16.msra.mxu1 %v3061_v17 }
  0x37   :  { %2635 = vmatprep.subr.bf16.mxu1 %v3066_v18 }
  0x3a   :  { %2636 = vmatpush3.bf16.msra.mxu1 %v3066_v18 }
  0x3b   :  { %2637 = vmatprep.subr.bf16.mxu1 %v3071_v19 }
  0x3c   :  { %2546 = vmatmul.mubr.msk.bf16.gmra.mrb[12].mxu0 %vm519_vm0, %v2726_v34  ;;  %2573 = vmatmul.mubr.msk.bf16.gmra.mrb[12].mxu1 %vm519_vm0, %v2750_v42 }
  0x3d   :  { %700 = vmatprep.mubr.bf16.mxu0 %v2980_v22  ;;  %970 = vmatprep.mubr.bf16.mxu1 %v2980_v22 }
  0x3e   :  { %2638 = vmatpush3.bf16.msra.mxu1 %v3071_v19 }
  0x3f   :  { %2639 = vmatprep.subr.bf16.mxu1 %v3076_v20 }
  0x42   :  { %2640 = vmatpush3.bf16.msra.mxu1 %v3076_v20 }
  0x44   :  { %2547 = vmatmul.mubr.msk.bf16.gmra.mrb[16].mxu0 %vm519_vm0, %v2727_v35  ;;  %2574 = vmatmul.mubr.msk.bf16.gmra.mrb[16].mxu1 %vm519_vm0, %v2752_v44 }
  0x45   :  { %710 = vmatprep.mubr.bf16.mxu0 %v2980_v22  ;;  %980 = vmatprep.mubr.bf16.mxu1 %v2980_v22 }
  0x4c   :  { %2548 = vmatmul.mubr.msk.bf16.gmra.mrb[20].mxu0 %vm519_vm0, %v2728_v37  ;;  %2575 = vmatmul.mubr.msk.bf16.gmra.mrb[20].mxu1 %vm519_vm0, %v2754_v46 }
  0x4d   :  { %720 = vmatprep.mubr.bf16.mxu0 %v2980_v22  ;;  %990 = vmatprep.mubr.bf16.mxu1 %v2980_v22 }
  0x54   :  { %2549 = vmatmul.mubr.msk.bf16.gmra.mrb[24].mxu0 %vm519_vm0, %v2729_v39  ;;  %2576 = vmatmul.mubr.msk.bf16.gmra.mrb[24].mxu1 %vm519_vm0, %v2756_v48 }
  0x55   :  { %730 = vmatprep.mubr.bf16.mxu0 %v2980_v22  ;;  %1000 = vmatprep.mubr.bf16.mxu1 %v2980_v22 }
  0x5c   :  { %2550 = vmatmul.mubr.msk.bf16.gmra.mrb[28].mxu0 %vm519_vm0, %v2730_v41  ;;  %2577 = vmatmul.mubr.msk.bf16.gmra.mrb[28].mxu1 %vm519_vm0, %v2757_v50 }
  0x5d   :  { %740 = vmatprep.mubr.bf16.mxu0 %v2980_v22  ;;  %1010 = vmatprep.mubr.bf16.mxu1 %v2980_v22 }
  0x64   :  { %2551 = vmatmul.mubr.msk.bf16.gmra.mrb[32].mxu0 %vm519_vm0, %v2731_v43  ;;  %2578 = vmatmul.mubr.msk.bf16.gmra.mrb[32].mxu1 %vm519_vm0, %v2758_v52 }
  0x65   :  { %750 = vmatprep.mubr.bf16.mxu0 %v2980_v22 }
  0x6c   :  { %2552 = vmatmul.mubr.msk.bf16.gmra.mrb[36].mxu0 %vm519_vm0, %v2732_v45 }
  0x6d   :  { %760 = vmatprep.mubr.bf16.mxu0 %v2980_v22 }
  0x74   :  { %2553 = vmatmul.mubr.msk.bf16.gmra.mrb[40].mxu0 %vm519_vm0, %v2733_v47 }
  0x75   :  { %770 = vmatprep.mubr.bf16.mxu0 %v2980_v22 }
  0x7c   :  { %2554 = vmatmul.mubr.msk.bf16.gmra.mrb[44].mxu0 %vm519_vm0, %v2734_v49 }
  0x7d   :  { %780 = vmatprep.mubr.bf16.mxu0 %v2980_v22 }
  0x84   :  { %2555 = vmatmul.mubr.msk.bf16.gmra.mrb[48].mxu0 %vm519_vm0, %v2735_v51 }
  0x85   :  { %790 = vmatprep.mubr.bf16.mxu0 %v2980_v22 }
  0x8c   :  { %2556 = vmatmul.mubr.msk.bf16.gmra.mrb[52].mxu0 %vm519_vm0, %v2736_v53 }
  0x8d   :  { %800 = vmatprep.mubr.bf16.mxu0 %v2980_v22 }
  0x94   :  { %2557 = vmatmul.mubr.msk.bf16.gmra.mrb[56].mxu0 %vm519_vm0, %v2737_v54 }
  0x95   :  { %810 = vmatprep.mubr.bf16.mxu0 %v2980_v22 }
  0x9c   :  { %2558 = vmatmul.mubr.msk.bf16.gmra.mrb[60].mxu0 %vm519_vm0, %v2738_v55 }
  0x9d   :  { %820 = vmatprep.mubr.bf16.mxu0 %v2980_v22 }
  0xa4   :  { %2559 = vmatmul.mubr.msk.bf16.gmra.mrb[64].mxu0 %vm519_vm0, %v2739_v56 }
  0xa5   :  { %830 = vmatprep.mubr.bf16.mxu0 %v2980_v22 }
  0xac   :  { %2560 = vmatmul.mubr.msk.bf16.gmra.mrb[68].mxu0 %vm519_vm0, %v2740_v57 }
  0xad   :  { %840 = vmatprep.mubr.bf16.mxu0 %v2980_v22 }
  0xb4   :  { %2561 = vmatmul.mubr.msk.bf16.gmra.mrb[72].mxu0 %vm519_vm0, %v2741_v58 }
  0xb5   :  { %850 = vmatprep.mubr.bf16.mxu0 %v2980_v22 }
  0xbc   :  { %2562 = vmatmul.mubr.msk.bf16.gmra.mrb[76].mxu0 %vm519_vm0, %v2742_v59 }
  0xbd   :  { %860 = vmatprep.mubr.bf16.mxu0 %v2980_v22 }
  0xc4   :  { %2563 = vmatmul.mubr.msk.bf16.gmra.mrb[80].mxu0 %vm519_vm0, %v2743_v60 }
  0xc5   :  { %870 = vmatprep.mubr.bf16.mxu0 %v2980_v22 }
  0xcc   :  { %2564 = vmatmul.mubr.msk.bf16.gmra.mrb[84].mxu0 %vm519_vm0, %v2745_v61 }
  0xcd   :  { %880 = vmatprep.mubr.bf16.mxu0 %v2980_v22 }
  0xd4   :  { %2565 = vmatmul.mubr.msk.bf16.gmra.mrb[88].mxu0 %vm519_vm0, %v2747_v62 }
  0xd5   :  { %890 = vmatprep.mubr.bf16.mxu0 %v2980_v22 }
  0xdc   :  { %2566 = vmatmul.mubr.msk.bf16.gmra.mrb[92].mxu0 %vm519_vm0, %v2749_v63 }
  0xdd   :  { %900 = vmatprep.mubr.bf16.mxu0 %v2980_v22 }
  0xe4   :  { %2567 = vmatmul.mubr.msk.bf16.gmra.mrb[96].mxu0 %vm519_vm0, %v2751_v0 }
  0xe5   :  { %910 = vmatprep.mubr.bf16.mxu0 %v2980_v22 }
  0xec   :  { %2568 = vmatmul.mubr.msk.bf16.gmra.mrb[100].mxu0 %vm519_vm0, %v2753_v1 }
  0xed   :  { %920 = vmatprep.mubr.bf16.mxu0 %v2980_v22 }
  0xf4   :  { %2569 = vmatmul.mubr.msk.bf16.gmra.mrb[104].mxu0 %vm519_vm0, %v2755_v2 }
  0xf7   :  { %v662_v3 = vpop.f32.mrb[0].mxu0  ;;  %v932_v60 = vpop.f32.mrb[0].mxu1 }
  0xf8   :  { %v1021_v4 = vmul.f32 %v662_v3, %v662_v3  ;;  %v664_v5 = vpop.f32.mrb[1].mxu0  ;;  %v934_v63 = vpop.f32.mrb[1].mxu1  ;;  %v1075_v2 = vmul.f32 %v932_v60, %v932_v60 }
  0xf9   :  { %v1093_v6 = vmul.f32 %v664_v5, %v664_v5  ;;  %v666_v7 = vpop.f32.mrb[2].mxu0  ;;  %v936_v3 = vpop.f32.mrb[2].mxu1 }
  0xfa   :  { %v1022_v8 = vmul.f32 %v666_v7, %v666_v7  ;;  %v668_v9 = vpop.f32.mrb[3].mxu0  ;;  %v1076_v7 = vmul.f32 %v936_v3, %v936_v3 }
  0xfb   :  { %v1165_v10 = vadd.f32 %v1093_v6, %v1021_v4  ;;  %v1094_v11 = vmul.f32 %v668_v9, %v668_v9  ;;  %v1147_v6 = vmul.f32 %v934_v63, %v934_v63 }
  0xfd   :  { %v1166_v12 = vadd.f32 %v1094_v11, %v1022_v8  ;;  %v938_v8 = vpop.f32.mrb[3].mxu1 }
  0xff   :  { %v1237_v13 = vpack.c.bf16 %v1166_v12, %v1165_v10  ;;  %v672_v14 = vpop.f32.mrb[4].mxu0  ;;  %v1148_v10 = vmul.f32 %v938_v8, %v938_v8 }
 0x100   :  { %v1023_v15 = vmul.f32 %v672_v14, %v672_v14  ;;  %v674_v16 = vpop.f32.mrb[5].mxu0 }
 0x101   :  { %v1095_v17 = vmul.f32 %v674_v16, %v674_v16  ;;  %v676_v18 = vpop.f32.mrb[6].mxu0  ;;  %2759 = vrsqrt.bf16 %v1237_v13  ;;  %vm1276_vm1 = vcmp.eq.bf16.partialorder %v1237_v13, 2139127680  ;;  %v1281_v37 = vand.u32 2147516416, %v1237_v13 }
 0x102   :  { %v1024_v19 = vmul.f32 %v676_v18, %v676_v18  ;;  %v678_v20 = vpop.f32.mrb[7].mxu0  ;;  %vm1279_vm2 = vcmp.eq.bf16.partialorder %v1237_v13, 0 }
 0x103   :  { %v1167_v21 = vadd.f32 %v1095_v17, %v1023_v15  ;;  %v1096_v22 = vmul.f32 %v678_v20, %v678_v20  ;;  %v1220_v15 = vadd.f32 %v1148_v10, %v1076_v7 }
 0x105   :  { %v1168_v23 = vadd.f32 %v1096_v22, %v1024_v19 }
 0x107   :  { %v1238_v24 = vpack.c.bf16 %v1168_v23, %v1167_v21  ;;  %v682_v25 = vpop.f32.mrb[8].mxu0  ;;  %v942_v23 = vpop.f32.mrb[4].mxu1 }
 0x108   :  { %v1025_v26 = vmul.f32 %v682_v25, %v682_v25  ;;  %v684_v27 = vpop.f32.mrb[9].mxu0 }
 0x109   :  { %2761 = vrsqrt.bf16 %v1238_v24  ;;  %v1097_v28 = vmul.f32 %v684_v27, %v684_v27  ;;  %v686_v29 = vpop.f32.mrb[10].mxu0  ;;  %vm1287_vm3 = vcmp.eq.bf16.partialorder %v1238_v24, 2139127680  ;;  %v1292_v53 = vand.u32 2147516416, %v1238_v24 }
 0x10a   :  { %v1026_v30 = vmul.f32 %v686_v29, %v686_v29  ;;  %v688_v31 = vpop.f32.mrb[11].mxu0  ;;  %vm1290_vm4 = vcmp.eq.bf16.partialorder %v1238_v24, 0  ;;  %v1077_v29 = vmul.f32 %v942_v23, %v942_v23 }
 0x10b   :  { %v1169_v32 = vadd.f32 %v1097_v28, %v1025_v26  ;;  %v1098_v33 = vmul.f32 %v688_v31, %v688_v31  ;;  %v944_v26 = vpop.f32.mrb[5].mxu1 }
 0x10c   :  { %v2760_v34 = vpop.eup %2759 }
 0x10d   :  { %v1170_v35 = vadd.f32 %v1098_v33, %v1026_v30  ;;  %v1274_v36 = vmul.bf16 %v2760_v34, %v1237_v13  ;;  %v946_v30 = vpop.f32.mrb[6].mxu1  ;;  %v1149_v33 = vmul.f32 %v944_v26, %v944_v26 }
 0x10e   :  { %v1078_v34 = vmul.f32 %v946_v30, %v946_v30 }
 0x10f   :  { %v1239_v38 = vpack.c.bf16 %v1170_v35, %v1169_v32  ;;  %v692_v39 = vpop.f32.mrb[12].mxu0  ;;  %v1277_v40 = vsel %vm1276_vm1, %v1237_v13, %v1274_v36  ;;  %v1219_v13 = vadd.f32 %v1147_v6, %v1075_v2  ;;  %v948_v35 = vpop.f32.mrb[7].mxu1 }
 0x110   :  { %v1027_v41 = vmul.f32 %v692_v39, %v692_v39  ;;  %v694_v42 = vpop.f32.mrb[13].mxu0  ;;  %v1283_v43 = vsel %vm1279_vm2, %v1281_v37, %v1277_v40  ;;  %v1150_v37 = vmul.f32 %v948_v35, %v948_v35  ;;  %v1221_v40 = vadd.f32 %v1149_v33, %v1077_v29 }
 0x111   :  { %v1099_v44 = vmul.f32 %v694_v42, %v694_v42  ;;  %v696_v45 = vpop.f32.mrb[14].mxu0  ;;  %2641 = vmatprep.mubr.bf16.mxu1 %v1283_v43  ;;  %2763 = vrsqrt.bf16 %v1239_v38  ;;  %vm1298_vm5 = vcmp.eq.bf16.partialorder %v1239_v38, 2139127680  ;;  %v1303_v14 = vand.u32 2147516416, %v1239_v38 }
 0x112   :  { %v1028_v46 = vmul.f32 %v696_v45, %v696_v45  ;;  %v698_v47 = vpop.f32.mrb[15].mxu0  ;;  %vm1301_vm6 = vcmp.eq.bf16.partialorder %v1239_v38, 0  ;;  %v3280_v22 = vpack.c.bf16 %v1220_v15, %v1219_v13  ;;  %v1222_v42 = vadd.f32 %v1150_v37, %v1078_v34 }
 0x113   :  { %v1171_v48 = vadd.f32 %v1099_v44, %v1027_v41  ;;  %v1100_v49 = vmul.f32 %v698_v47, %v698_v47 }
 0x114   :  { %v2762_v50 = vpop.eup %2761 }
 0x115   :  { %v1172_v51 = vadd.f32 %v1100_v49, %v1028_v46  ;;  %v1285_v52 = vmul.bf16 %v2762_v50, %v1238_v24  ;;  %v3290_v49 = vpack.c.bf16 %v1222_v42, %v1221_v40  ;;  %v952_v50 = vpop.f32.mrb[8].mxu1 }
 0x117   :  { %v3275_v54 = vpack.c.bf16 %v1172_v51, %v1171_v48  ;;  %v702_v55 = vpop.f32.mrb[16].mxu0  ;;  %v1288_v56 = vsel %vm1287_vm3, %v1238_v24, %v1285_v52 }
 0x118   :  { %v1029_v57 = vmul.f32 %v702_v55, %v702_v55  ;;  %v704_v58 = vpop.f32.mrb[17].mxu0  ;;  %v1294_v59 = vsel %vm1290_vm4, %v1292_v53, %v1288_v56  ;;  %v954_v53 = vpop.f32.mrb[9].mxu1 }
 0x119   :  { %v1101_v61 = vmul.f32 %v704_v58, %v704_v58  ;;  %v706_v62 = vpop.f32.mrb[18].mxu0  ;;  %2642 = vmatmul.mubr.bf16.vlgmr.msra.gmra.mrb[36].mxu1 %v1294_v59  ;;  %2765 = vrsqrt.bf16 %v3275_v54  ;;  %vm1309_vm7 = vcmp.eq.bf16.partialorder %v3275_v54, 2139127680  ;;  %v1314_v41 = vand.u32 2147516416, %v3275_v54  ;;  %v956_v58 = vpop.f32.mrb[10].mxu1 }
 0x11a   :  { %v1030_v0 = vmul.f32 %v706_v62, %v706_v62  ;;  %v708_v1 = vpop.f32.mrb[19].mxu0  ;;  %vm1312_vm8 = vcmp.eq.bf16.partialorder %v3275_v54, 0  ;;  %v958_v62 = vpop.f32.mrb[11].mxu1 }
 0x11b   :  { %v1173_v4 = vadd.f32 %v1101_v61, %v1029_v57  ;;  %v1102_v5 = vmul.f32 %v708_v1, %v708_v1  ;;  %v1079_v57 = vmul.f32 %v952_v50, %v952_v50  ;;  %v1151_v61 = vmul.f32 %v954_v53, %v954_v53  ;;  %v962_v13 = vpop.f32.mrb[12].mxu1 }
 0x11c   :  { %v2764_v9 = vpop.eup %2763 }
 0x11d   :  { %v1174_v11 = vadd.f32 %v1102_v5, %v1030_v0  ;;  %v1296_v12 = vmul.bf16 %v2764_v9, %v1239_v38  ;;  %v1152_v0 = vmul.f32 %v958_v62, %v958_v62  ;;  %v1223_v3 = vadd.f32 %v1151_v61, %v1079_v57 }
 0x11f   :  { %v3278_v16 = vpack.c.bf16 %v1174_v11, %v1173_v4  ;;  %v712_v17 = vpop.f32.mrb[20].mxu0  ;;  %v1299_v18 = vsel %vm1298_vm5, %v1239_v38, %v1296_v12 }
 0x120   :  { %v1031_v19 = vmul.f32 %v712_v17, %v712_v17  ;;  %v714_v20 = vpop.f32.mrb[21].mxu0  ;;  %v1305_v21 = vsel %vm1301_vm6, %v1303_v14, %v1299_v18  ;;  %v964_v17 = vpop.f32.mrb[13].mxu1 }
 0x121   :  { %v1103_v24 = vmul.f32 %v714_v20, %v714_v20  ;;  %v716_v25 = vpop.f32.mrb[22].mxu0  ;;  %2645 = vmatprep.mubr.bf16.mxu1 %v1305_v21  ;;  %2767 = vrsqrt.bf16 %v3278_v16  ;;  %vm1320_vm9 = vcmp.eq.bf16.partialorder %v3278_v16, 2139127680  ;;  %v1325_v4 = vand.u32 2147516416, %v3278_v16  ;;  %v966_v21 = vpop.f32.mrb[14].mxu1 }
 0x122   :  { %v1032_v27 = vmul.f32 %v716_v25, %v716_v25  ;;  %v718_v28 = vpop.f32.mrb[23].mxu0  ;;  %vm1323_vm10 = vcmp.eq.bf16.partialorder %v3278_v16, 0  ;;  %v1081_v20 = vmul.f32 %v962_v13, %v962_v13  ;;  %v1153_v25 = vmul.f32 %v964_v17, %v964_v17  ;;  %v968_v26 = vpop.f32.mrb[15].mxu1 }
 0x123   :  { %v1175_v31 = vadd.f32 %v1103_v24, %v1031_v19  ;;  %v1104_v32 = vmul.f32 %v718_v28, %v718_v28  ;;  %v1154_v28 = vmul.f32 %v968_v26, %v968_v26 }
 0x124   :  { %v2766_v36 = vpop.eup %2765 }
 0x125   :  { %v1176_v38 = vadd.f32 %v1104_v32, %v1032_v27  ;;  %v1307_v39 = vmul.bf16 %v2766_v36, %v3275_v54 }
 0x127   :  { %v3286_v43 = vpack.c.bf16 %v1176_v38, %v1175_v31  ;;  %v722_v44 = vpop.f32.mrb[24].mxu0  ;;  %v1310_v45 = vsel %vm1309_vm7, %v3275_v54, %v1307_v39  ;;  %v1080_v54 = vmul.f32 %v956_v58, %v956_v58  ;;  %v1225_v31 = vadd.f32 %v1153_v25, %v1081_v20 }
 0x128   :  { %v1033_v46 = vmul.f32 %v722_v44, %v722_v44  ;;  %v724_v47 = vpop.f32.mrb[25].mxu0  ;;  %v1316_v48 = vsel %vm1312_vm8, %v1314_v41, %v1310_v45  ;;  %v972_v41 = vpop.f32.mrb[16].mxu1 }
 0x129   :  { %v1105_v51 = vmul.f32 %v724_v47, %v724_v47  ;;  %v726_v52 = vpop.f32.mrb[26].mxu0  ;;  %2646 = vmatmul.mubr.bf16.gmra.mrb[40].mxu1 %v1316_v48  ;;  %2769 = vrsqrt.bf16 %v3286_v43  ;;  %v1224_v5 = vadd.f32 %v1152_v0, %v1080_v54  ;;  %vm1331_vm11 = vcmp.eq.bf16.partialorder %v3286_v43, 2139127680  ;;  %v974_v45 = vpop.f32.mrb[17].mxu1 }
 0x12a   :  { %v1034_v55 = vmul.f32 %v726_v52, %v726_v52  ;;  %v728_v56 = vpop.f32.mrb[27].mxu0  ;;  %v1336_v32 = vand.u32 2147516416, %v3286_v43  ;;  %vm1334_vm12 = vcmp.eq.bf16.partialorder %v3286_v43, 0  ;;  %v1083_v48 = vmul.f32 %v972_v41, %v972_v41  ;;  %v976_v50 = vpop.f32.mrb[18].mxu1 }
 0x12b   :  { %v1177_v59 = vadd.f32 %v1105_v51, %v1033_v46  ;;  %v1106_v60 = vmul.f32 %v728_v56, %v728_v56  ;;  %v3300_v12 = vpack.c.bf16 %v1224_v5, %v1223_v3  ;;  %v1155_v53 = vmul.f32 %v974_v45, %v974_v45 }
 0x12c   :  { %v2768_v63 = vpop.eup %2767 }
 0x12d   :  { %v1178_v1 = vadd.f32 %v1106_v60, %v1034_v55  ;;  %v1318_v2 = vmul.bf16 %v2768_v63, %v3278_v16  ;;  %v978_v55 = vpop.f32.mrb[19].mxu1  ;;  %v1227_v60 = vadd.f32 %v1155_v53, %v1083_v48 }
 0x12e   :  { %v1156_v57 = vmul.f32 %v978_v55, %v978_v55  ;;  %v982_v5 = vpop.f32.mrb[20].mxu1 }
 0x12f   :  { %v3296_v6 = vpack.c.bf16 %v1178_v1, %v1177_v59  ;;  %v732_v7 = vpop.f32.mrb[28].mxu0  ;;  %v1321_v8 = vsel %vm1320_vm9, %v3278_v16, %v1318_v2  ;;  %v1082_v16 = vmul.f32 %v966_v21, %v966_v21  ;;  %v1085_v13 = vmul.f32 %v982_v5, %v982_v5 }
 0x130   :  { %v1035_v9 = vmul.f32 %v732_v7, %v732_v7  ;;  %v734_v10 = vpop.f32.mrb[29].mxu0  ;;  %v1327_v11 = vsel %vm1323_vm10, %v1325_v4, %v1321_v8 }
 0x131   :  { %v1107_v14 = vmul.f32 %v734_v10, %v734_v10  ;;  %v736_v15 = vpop.f32.mrb[30].mxu0  ;;  %2649 = vmatprep.mubr.bf16.mxu1 %v1327_v11  ;;  %2771 = vrsqrt.bf16 %v3296_v6  ;;  %v1226_v33 = vadd.f32 %v1154_v28, %v1082_v16  ;;  %vm1342_vm13 = vcmp.eq.bf16.partialorder %v3296_v6, 2139127680 }
 0x132   :  { %v1036_v18 = vmul.f32 %v736_v15, %v736_v15  ;;  %v738_v19 = vpop.f32.mrb[31].mxu0  ;;  %v1347_v61 = vand.u32 2147516416, %v3296_v6  ;;  %vm1345_vm14 = vcmp.eq.bf16.partialorder %v3296_v6, 0 }
 0x133   :  { %v1179_v23 = vadd.f32 %v1107_v14, %v1035_v9  ;;  %v1108_v24 = vmul.f32 %v738_v19, %v738_v19  ;;  %v3310_v40 = vpack.c.bf16 %v1226_v33, %v1225_v31  ;;  %v984_v9 = vpop.f32.mrb[21].mxu1 }
 0x134   :  { %v2770_v27 = vpop.eup %2769  ;;  %v986_v14 = vpop.f32.mrb[22].mxu1 }
 0x135   :  { %v1180_v29 = vadd.f32 %v1108_v24, %v1036_v18  ;;  %v1329_v30 = vmul.bf16 %v2770_v27, %v3286_v43  ;;  %v1157_v18 = vmul.f32 %v984_v9, %v984_v9  ;;  %v988_v19 = vpop.f32.mrb[23].mxu1 }
 0x136   :  { %v1158_v21 = vmul.f32 %v988_v19, %v988_v19 }
 0x137   :  { %v3306_v34 = vpack.c.bf16 %v1180_v29, %v1179_v23  ;;  %v742_v35 = vpop.f32.mrb[32].mxu0  ;;  %v1332_v36 = vsel %vm1331_vm11, %v3286_v43, %v1329_v30  ;;  %v1084_v43 = vmul.f32 %v976_v50, %v976_v50  ;;  %v1229_v25 = vadd.f32 %v1157_v18, %v1085_v13 }
 0x138   :  { %v1037_v37 = vmul.f32 %v742_v35, %v742_v35  ;;  %v744_v38 = vpop.f32.mrb[33].mxu0  ;;  %v1338_v39 = vsel %vm1334_vm12, %v1336_v32, %v1332_v36  ;;  %v992_v35 = vpop.f32.mrb[24].mxu1 }
 0x139   :  { %v1109_v42 = vmul.f32 %v744_v38, %v744_v38  ;;  %v746_v44 = vpop.f32.mrb[34].mxu0  ;;  %2650 = vmatmul.mubr.bf16.gmra.mrb[44].mxu1 %v1338_v39  ;;  %2773 = vrsqrt.bf16 %v3306_v34  ;;  %v1228_v54 = vadd.f32 %v1156_v57, %v1084_v43  ;;  %vm1353_vm15 = vcmp.eq.bf16.partialorder %v3306_v34, 2139127680  ;;  %v994_v38 = vpop.f32.mrb[25].mxu1 }
 0x13a   :  { %v1038_v46 = vmul.f32 %v746_v44, %v746_v44  ;;  %v748_v47 = vpop.f32.mrb[35].mxu0  ;;  %v1358_v16 = vand.u32 2147516416, %v3306_v34  ;;  %vm1356_vm0 = vcmp.eq.bf16.partialorder %v3306_v34, 0  ;;  %v996_v44 = vpop.f32.mrb[26].mxu1 }
 0x13b   :  { %v1181_v51 = vadd.f32 %v1109_v42, %v1037_v37  ;;  %v1110_v52 = vmul.f32 %v748_v47, %v748_v47  ;;  %v3320_v4 = vpack.c.bf16 %v1228_v54, %v1227_v60  ;;  %v1087_v42 = vmul.f32 %v992_v35, %v992_v35  ;;  %v998_v48 = vpop.f32.mrb[27].mxu1 }
 0x13c   :  { %v2772_v56 = vpop.eup %2771  ;;  %v1159_v47 = vmul.f32 %v994_v38, %v994_v38  ;;  %v1002_v60 = vpop.f32.mrb[28].mxu1 }
 0x13d   :  { %v1182_v58 = vadd.f32 %v1110_v52, %v1038_v46  ;;  %v1340_v59 = vmul.bf16 %v2772_v56, %v3296_v6 }
 0x13e   :  { %v1231_v43 = vadd.f32 %v1159_v47, %v1087_v42 }
 0x13f   :  { %v3316_v62 = vpack.c.bf16 %v1182_v58, %v1181_v51  ;;  %v752_v63 = vpop.f32.mrb[36].mxu0  ;;  %v1343_v0 = vsel %vm1342_vm13, %v3296_v6, %v1340_v59  ;;  %v1086_v6 = vmul.f32 %v986_v14, %v986_v14  ;;  %v1160_v51 = vmul.f32 %v998_v48, %v998_v48 }
 0x140   :  { %v1039_v1 = vmul.f32 %v752_v63, %v752_v63  ;;  %v754_v2 = vpop.f32.mrb[37].mxu0  ;;  %v1349_v3 = vsel %vm1345_vm14, %v1347_v61, %v1343_v0 }
 0x141   :  { %v1111_v7 = vmul.f32 %v754_v2, %v754_v2  ;;  %v756_v8 = vpop.f32.mrb[38].mxu0  ;;  %2653 = vmatprep.mubr.bf16.mxu1 %v1349_v3  ;;  %2775 = vrsqrt.bf16 %v3316_v62  ;;  %v1230_v26 = vadd.f32 %v1158_v21, %v1086_v6  ;;  %vm1364_vm1 = vcmp.eq.bf16.partialorder %v3316_v62, 2139127680  ;;  %v1004_v2 = vpop.f32.mrb[29].mxu1 }
 0x142   :  { %v1040_v10 = vmul.f32 %v756_v8, %v756_v8  ;;  %v758_v11 = vpop.f32.mrb[39].mxu0  ;;  %v1369_v55 = vand.u32 2147516416, %v3316_v62  ;;  %vm1367_vm2 = vcmp.eq.bf16.partialorder %v3316_v62, 0 }
 0x143   :  { %v1183_v15 = vadd.f32 %v1111_v7, %v1039_v1  ;;  %v1112_v17 = vmul.f32 %v758_v11, %v758_v11  ;;  %v3330_v33 = vpack.c.bf16 %v1230_v26, %v1229_v25  ;;  %v1089_v1 = vmul.f32 %v1002_v60, %v1002_v60  ;;  %v1006_v7 = vpop.f32.mrb[30].mxu1 }
 0x144   :  { %v2774_v20 = vpop.eup %2773  ;;  %v1090_v11 = vmul.f32 %v1006_v7, %v1006_v7  ;;  %v1008_v13 = vpop.f32.mrb[31].mxu1 }
 0x145   :  { %v1184_v23 = vadd.f32 %v1112_v17, %v1040_v10  ;;  %v1351_v24 = vmul.bf16 %v2774_v20, %v3306_v34  ;;  %v1161_v10 = vmul.f32 %v1004_v2, %v1004_v2  ;;  %v1012_v26 = vpop.f32.mrb[32].mxu1 }
 0x147   :  { %v3326_v27 = vpack.c.bf16 %v1184_v23, %v1183_v15  ;;  %v762_v28 = vpop.f32.mrb[40].mxu0  ;;  %v1354_v29 = vsel %vm1353_vm15, %v3306_v34, %v1351_v24  ;;  %v1088_v34 = vmul.f32 %v996_v44, %v996_v44  ;;  %v1162_v15 = vmul.f32 %v1008_v13, %v1008_v13 }
 0x148   :  { %v1041_v30 = vmul.f32 %v762_v28, %v762_v28  ;;  %v764_v31 = vpop.f32.mrb[41].mxu0  ;;  %v1360_v32 = vsel %vm1356_vm0, %v1358_v16, %v1354_v29  ;;  %v1233_v18 = vadd.f32 %v1161_v10, %v1089_v1 }
 0x149   :  { %v1113_v36 = vmul.f32 %v764_v31, %v764_v31  ;;  %v766_v37 = vpop.f32.mrb[42].mxu0  ;;  %2654 = vmatmul.mubr.bf16.gmra.mrb[48].mxu1 %v1360_v32  ;;  %2777 = vrsqrt.bf16 %v3326_v27  ;;  %v1232_v56 = vadd.f32 %v1160_v51, %v1088_v34  ;;  %v1234_v20 = vadd.f32 %v1162_v15, %v1090_v11  ;;  %v1014_v32 = vpop.f32.mrb[33].mxu1 }
 0x14a   :  { %v1042_v39 = vmul.f32 %v766_v37, %v766_v37  ;;  %v768_v41 = vpop.f32.mrb[43].mxu0  ;;  %vm1375_vm3 = vcmp.eq.bf16.partialorder %v3326_v27, 2139127680  ;;  %v1380_v21 = vand.u32 2147516416, %v3326_v27  ;;  %vm1378_vm4 = vcmp.eq.bf16.partialorder %v3326_v27, 0  ;;  %v1016_v37 = vpop.f32.mrb[34].mxu1 }
 0x14b   :  { %v1185_v45 = vadd.f32 %v1113_v36, %v1041_v30  ;;  %v1114_v46 = vmul.f32 %v768_v41, %v768_v41  ;;  %v3340_v0 = vpack.c.bf16 %v1232_v56, %v1231_v43  ;;  %v3348_v16 = vpack.c.bf16 %v1234_v20, %v1233_v18  ;;  %v1018_v44 = vpop.f32.mrb[35].mxu1 }
 0x14c   :  { %v2776_v50 = vpop.eup %2775  ;;  %v1091_v31 = vmul.f32 %v1012_v26, %v1012_v26  ;;  %v1163_v41 = vmul.f32 %v1014_v32, %v1014_v32  ;;  %v1092_v42 = vmul.f32 %v1016_v37, %v1016_v37 }
 0x14d   :  { %v1186_v52 = vadd.f32 %v1114_v46, %v1042_v39  ;;  %v1362_v53 = vmul.bf16 %v2776_v50, %v3316_v62  ;;  %v1164_v46 = vmul.f32 %v1018_v44, %v1018_v44 }
 0x14e   :  { %v1235_v34 = vadd.f32 %v1163_v41, %v1091_v31 }
 0x14f   :  { %v3336_v57 = vpack.c.bf16 %v1186_v52, %v1185_v45  ;;  %v772_v58 = vpop.f32.mrb[44].mxu0  ;;  %v1365_v59 = vsel %vm1364_vm1, %v3316_v62, %v1362_v53  ;;  %v1236_v51 = vadd.f32 %v1164_v46, %v1092_v42 }
 0x150   :  { %v1043_v61 = vmul.f32 %v772_v58, %v772_v58  ;;  %v774_v54 = vpop.f32.mrb[45].mxu0  ;;  %v1371_v63 = vsel %vm1367_vm2, %v1369_v55, %v1365_v59 }
 0x151   :  { %v1115_v3 = vmul.f32 %v774_v54, %v774_v54  ;;  %v776_v5 = vpop.f32.mrb[46].mxu0  ;;  %2657 = vmatprep.mubr.bf16.mxu1 %v1371_v63  ;;  %2779 = vrsqrt.bf16 %v3336_v57  ;;  %vm1386_vm5 = vcmp.eq.bf16.partialorder %v3336_v57, 2139127680  ;;  %v1391_v52 = vand.u32 2147516416, %v3336_v57 }
 0x152   :  { %v1044_v8 = vmul.f32 %v776_v5, %v776_v5  ;;  %v778_v9 = vpop.f32.mrb[47].mxu0  ;;  %vm1389_vm6 = vcmp.eq.bf16.partialorder %v3336_v57, 0  ;;  %v3355_v56 = vpack.c.bf16 %v1236_v51, %v1235_v34 }
 0x153   :  { %v1187_v62 = vadd.f32 %v1115_v3, %v1043_v61  ;;  %v1116_v14 = vmul.f32 %v778_v9, %v778_v9 }
 0x154   :  { %v2778_v17 = vpop.eup %2777 }
 0x155   :  { %v1188_v6 = vadd.f32 %v1116_v14, %v1044_v8  ;;  %v1373_v19 = vmul.bf16 %v2778_v17, %v3326_v27 }
 0x157   :  { %v1248_v23 = vpack.c.bf16 %v1188_v6, %v1187_v62  ;;  %v782_v24 = vpop.f32.mrb[48].mxu0  ;;  %v1376_v25 = vsel %vm1375_vm3, %v3326_v27, %v1373_v19 }
 0x158   :  { %v1045_v28 = vmul.f32 %v782_v24, %v782_v24  ;;  %v784_v29 = vpop.f32.mrb[49].mxu0  ;;  %v1382_v30 = vsel %vm1378_vm4, %v1380_v21, %v1376_v25 }
 0x159   :  { %v1117_v35 = vmul.f32 %v784_v29, %v784_v29  ;;  %v786_v36 = vpop.f32.mrb[50].mxu0  ;;  %2658 = vmatmul.mubr.bf16.gmra.mrb[52].mxu1 %v1382_v30  ;;  %2781 = vrsqrt.bf16 %v1248_v23  ;;  %vm1397_vm7 = vcmp.eq.bf16.partialorder %v1248_v23, 2139127680  ;;  %v1402_v9 = vand.u32 2147516416, %v1248_v23 }
 0x15a   :  { %v1046_v38 = vmul.f32 %v786_v36, %v786_v36  ;;  %v788_v39 = vpop.f32.mrb[51].mxu0  ;;  %vm1400_vm8 = vcmp.eq.bf16.partialorder %v1248_v23, 0 }
 0x15b   :  { %v1189_v45 = vadd.f32 %v1117_v35, %v1045_v28  ;;  %v1118_v27 = vmul.f32 %v788_v39, %v788_v39 }
 0x15c   :  { %v2780_v47 = vpop.eup %2779 }
 0x15d   :  { %v1190_v48 = vadd.f32 %v1118_v27, %v1046_v38  ;;  %v1384_v50 = vmul.bf16 %v2780_v47, %v3336_v57 }
 0x15f   :  { %v1249_v53 = vpack.c.bf16 %v1190_v48, %v1189_v45  ;;  %v792_v43 = vpop.f32.mrb[52].mxu0  ;;  %v1387_v55 = vsel %vm1386_vm5, %v3336_v57, %v1384_v50 }
 0x160   :  { %v1047_v58 = vmul.f32 %v792_v43, %v792_v43  ;;  %v794_v59 = vpop.f32.mrb[53].mxu0  ;;  %v1393_v60 = vsel %vm1389_vm6, %v1391_v52, %v1387_v55 }
 0x161   :  { %v1119_v61 = vmul.f32 %v794_v59, %v794_v59  ;;  %v796_v54 = vpop.f32.mrb[54].mxu0  ;;  %2661 = vmatprep.mubr.bf16.mxu1 %v1393_v60  ;;  %2783 = vrsqrt.bf16 %v1249_v53  ;;  %vm1408_vm9 = vcmp.eq.bf16.partialorder %v1249_v53, 2139127680  ;;  %v1413_v26 = vand.u32 2147516416, %v1249_v53 }
 0x162   :  { %v1048_v63 = vmul.f32 %v796_v54, %v796_v54  ;;  %v798_v1 = vpop.f32.mrb[55].mxu0  ;;  %vm1411_vm10 = vcmp.eq.bf16.partialorder %v1249_v53, 0 }
 0x163   :  { %v1191_v2 = vadd.f32 %v1119_v61, %v1047_v58  ;;  %v1120_v3 = vmul.f32 %v798_v1, %v798_v1 }
 0x164   :  { %v2782_v5 = vpop.eup %2781 }
 0x165   :  { %v1192_v7 = vadd.f32 %v1120_v3, %v1048_v63  ;;  %v1395_v8 = vmul.bf16 %v2782_v5, %v1248_v23 }
 0x167   :  { %v1250_v10 = vpack.c.bf16 %v1192_v7, %v1191_v2  ;;  %v802_v57 = vpop.f32.mrb[56].mxu0  ;;  %v1398_v11 = vsel %vm1397_vm7, %v1248_v23, %v1395_v8 }
 0x168   :  { %v1049_v13 = vmul.f32 %v802_v57, %v802_v57  ;;  %v804_v62 = vpop.f32.mrb[57].mxu0  ;;  %v1404_v14 = vsel %vm1400_vm8, %v1402_v9, %v1398_v11 }
 0x169   :  { %v1121_v15 = vmul.f32 %v804_v62, %v804_v62  ;;  %v806_v17 = vpop.f32.mrb[58].mxu0  ;;  %2662 = vmatmul.mubr.bf16.gmra.mrb[56].mxu1 %v1404_v14  ;;  %2785 = vrsqrt.bf16 %v1250_v10  ;;  %vm1419_vm11 = vcmp.eq.bf16.partialorder %v1250_v10, 2139127680  ;;  %v1424_v27 = vand.u32 2147516416, %v1250_v10 }
 0x16a   :  { %v1050_v18 = vmul.f32 %v806_v17, %v806_v17  ;;  %v808_v6 = vpop.f32.mrb[59].mxu0  ;;  %vm1422_vm12 = vcmp.eq.bf16.partialorder %v1250_v10, 0 }
 0x16b   :  { %v1193_v19 = vadd.f32 %v1121_v15, %v1049_v13  ;;  %v1122_v20 = vmul.f32 %v808_v6, %v808_v6 }
 0x16c   :  { %v2784_v21 = vpop.eup %2783 }
 0x16d   :  { %v1194_v24 = vadd.f32 %v1122_v20, %v1050_v18  ;;  %v1406_v25 = vmul.bf16 %v2784_v21, %v1249_v53 }
 0x16f   :  { %v1251_v28 = vpack.c.bf16 %v1194_v24, %v1193_v19  ;;  %v812_v29 = vpop.f32.mrb[60].mxu0  ;;  %v1409_v30 = vsel %vm1408_vm9, %v1249_v53, %v1406_v25 }
 0x170   :  { %v1051_v23 = vmul.f32 %v812_v29, %v812_v29  ;;  %v814_v31 = vpop.f32.mrb[61].mxu0  ;;  %v1415_v32 = vsel %vm1411_vm10, %v1413_v26, %v1409_v30 }
 0x171   :  { %v1123_v35 = vmul.f32 %v814_v31, %v814_v31  ;;  %v816_v36 = vpop.f32.mrb[62].mxu0  ;;  %2665 = vmatprep.mubr.bf16.mxu1 %v1415_v32  ;;  %2787 = vrsqrt.bf16 %v1251_v28  ;;  %vm1430_vm13 = vcmp.eq.bf16.partialorder %v1251_v28, 2139127680  ;;  %v1435_v63 = vand.u32 2147516416, %v1251_v28 }
 0x172   :  { %v1052_v37 = vmul.f32 %v816_v36, %v816_v36  ;;  %v818_v38 = vpop.f32.mrb[63].mxu0  ;;  %vm1433_vm14 = vcmp.eq.bf16.partialorder %v1251_v28, 0 }
 0x173   :  { %v1195_v39 = vadd.f32 %v1123_v35, %v1051_v23  ;;  %v1124_v41 = vmul.f32 %v818_v38, %v818_v38 }
 0x174   :  { %v2786_v42 = vpop.eup %2785 }
 0x175   :  { %v1196_v44 = vadd.f32 %v1124_v41, %v1052_v37  ;;  %v1417_v45 = vmul.bf16 %v2786_v42, %v1250_v10 }
 0x177   :  { %v1252_v46 = vpack.c.bf16 %v1196_v44, %v1195_v39  ;;  %v822_v47 = vpop.f32.mrb[64].mxu0  ;;  %v1420_v34 = vsel %vm1419_vm11, %v1250_v10, %v1417_v45 }
 0x178   :  { %v1053_v48 = vmul.f32 %v822_v47, %v822_v47  ;;  %v824_v50 = vpop.f32.mrb[65].mxu0  ;;  %v1426_v51 = vsel %vm1422_vm12, %v1424_v27, %v1420_v34 }
 0x179   :  { %v1125_v52 = vmul.f32 %v824_v50, %v824_v50  ;;  %v826_v53 = vpop.f32.mrb[66].mxu0  ;;  %2666 = vmatmul.mubr.bf16.gmra.mrb[60].mxu1 %v1426_v51  ;;  %2789 = vrsqrt.bf16 %v1252_v46  ;;  %vm1441_vm15 = vcmp.eq.bf16.partialorder %v1252_v46, 2139127680  ;;  %v1446_v18 = vand.u32 2147516416, %v1252_v46 }
 0x17a   :  { %v1054_v43 = vmul.f32 %v826_v53, %v826_v53  ;;  %v828_v55 = vpop.f32.mrb[67].mxu0  ;;  %vm1444_vm0 = vcmp.eq.bf16.partialorder %v1252_v46, 0 }
 0x17b   :  { %v1197_v58 = vadd.f32 %v1125_v52, %v1053_v48  ;;  %v1126_v59 = vmul.f32 %v828_v55, %v828_v55 }
 0x17c   :  { %v2788_v60 = vpop.eup %2787 }
 0x17d   :  { %v1198_v61 = vadd.f32 %v1126_v59, %v1054_v43  ;;  %v1428_v54 = vmul.bf16 %v2788_v60, %v1251_v28 }
 0x17f   :  { %v1253_v1 = vpack.c.bf16 %v1198_v61, %v1197_v58  ;;  %v832_v2 = vpop.f32.mrb[68].mxu0  ;;  %v1431_v3 = vsel %vm1430_vm13, %v1251_v28, %v1428_v54 }
 0x180   :  { %v1055_v5 = vmul.f32 %v832_v2, %v832_v2  ;;  %v834_v7 = vpop.f32.mrb[69].mxu0  ;;  %v1437_v8 = vsel %vm1433_vm14, %v1435_v63, %v1431_v3 }
 0x181   :  { %v1127_v9 = vmul.f32 %v834_v7, %v834_v7  ;;  %v836_v10 = vpop.f32.mrb[70].mxu0  ;;  %2669 = vmatprep.mubr.bf16.mxu1 %v1437_v8  ;;  %2791 = vrsqrt.bf16 %v1253_v1  ;;  %vm1452_vm1 = vcmp.eq.bf16.partialorder %v1253_v1, 2139127680  ;;  %v1457_v37 = vand.u32 2147516416, %v1253_v1 }
 0x182   :  { %v1056_v57 = vmul.f32 %v836_v10, %v836_v10  ;;  %v838_v11 = vpop.f32.mrb[71].mxu0  ;;  %vm1455_vm2 = vcmp.eq.bf16.partialorder %v1253_v1, 0 }
 0x183   :  { %v1199_v13 = vadd.f32 %v1127_v9, %v1055_v5  ;;  %v1128_v62 = vmul.f32 %v838_v11, %v838_v11 }
 0x184   :  { %v2790_v14 = vpop.eup %2789 }
 0x185   :  { %v1200_v15 = vadd.f32 %v1128_v62, %v1056_v57  ;;  %v1439_v17 = vmul.bf16 %v2790_v14, %v1252_v46 }
 0x187   :  { %v1254_v6 = vpack.c.bf16 %v1200_v15, %v1199_v13  ;;  %v842_v19 = vpop.f32.mrb[72].mxu0  ;;  %v1442_v20 = vsel %vm1441_vm15, %v1252_v46, %v1439_v17 }
 0x188   :  { %v1057_v21 = vmul.f32 %v842_v19, %v842_v19  ;;  %v844_v24 = vpop.f32.mrb[73].mxu0  ;;  %v1448_v25 = vsel %vm1444_vm0, %v1446_v18, %v1442_v20 }
 0x189   :  { %v1129_v26 = vmul.f32 %v844_v24, %v844_v24  ;;  %v846_v28 = vpop.f32.mrb[74].mxu0  ;;  %2670 = vmatmul.mubr.bf16.gmra.mrb[64].mxu1 %v1448_v25  ;;  %2793 = vrsqrt.bf16 %v1254_v6  ;;  %vm1463_vm3 = vcmp.eq.bf16.partialorder %v1254_v6, 2139127680  ;;  %v1468_v43 = vand.u32 2147516416, %v1254_v6 }
 0x18a   :  { %v1058_v29 = vmul.f32 %v846_v28, %v846_v28  ;;  %v848_v30 = vpop.f32.mrb[75].mxu0  ;;  %vm1466_vm4 = vcmp.eq.bf16.partialorder %v1254_v6, 0 }
 0x18b   :  { %v1201_v23 = vadd.f32 %v1129_v26, %v1057_v21  ;;  %v1130_v31 = vmul.f32 %v848_v30, %v848_v30 }
 0x18c   :  { %v2792_v32 = vpop.eup %2791 }
 0x18d   :  { %v1202_v35 = vadd.f32 %v1130_v31, %v1058_v29  ;;  %v1450_v36 = vmul.bf16 %v2792_v32, %v1253_v1 }
 0x18f   :  { %v1255_v38 = vpack.c.bf16 %v1202_v35, %v1201_v23  ;;  %v852_v39 = vpop.f32.mrb[76].mxu0  ;;  %v1453_v41 = vsel %vm1452_vm1, %v1253_v1, %v1450_v36 }
 0x190   :  { %v1059_v42 = vmul.f32 %v852_v39, %v852_v39  ;;  %v854_v44 = vpop.f32.mrb[77].mxu0  ;;  %v1459_v45 = vsel %vm1455_vm2, %v1457_v37, %v1453_v41 }
 0x191   :  { %v1131_v27 = vmul.f32 %v854_v44, %v854_v44  ;;  %v856_v46 = vpop.f32.mrb[78].mxu0  ;;  %2673 = vmatprep.mubr.bf16.mxu1 %v1459_v45  ;;  %2795 = vrsqrt.bf16 %v1255_v38  ;;  %vm1474_vm5 = vcmp.eq.bf16.partialorder %v1255_v38, 2139127680  ;;  %v1479_v57 = vand.u32 2147516416, %v1255_v38 }
 0x192   :  { %v1060_v47 = vmul.f32 %v856_v46, %v856_v46  ;;  %v858_v34 = vpop.f32.mrb[79].mxu0  ;;  %vm1477_vm6 = vcmp.eq.bf16.partialorder %v1255_v38, 0 }
 0x193   :  { %v1203_v48 = vadd.f32 %v1131_v27, %v1059_v42  ;;  %v1132_v50 = vmul.f32 %v858_v34, %v858_v34 }
 0x194   :  { %v2794_v51 = vpop.eup %2793 }
 0x195   :  { %v1204_v52 = vadd.f32 %v1132_v50, %v1060_v47  ;;  %v1461_v53 = vmul.bf16 %v2794_v51, %v1254_v6 }
 0x197   :  { %v1256_v55 = vpack.c.bf16 %v1204_v52, %v1203_v48  ;;  %v862_v58 = vpop.f32.mrb[80].mxu0  ;;  %v1464_v59 = vsel %vm1463_vm3, %v1254_v6, %v1461_v53 }
 0x198   :  { %v1061_v60 = vmul.f32 %v862_v58, %v862_v58  ;;  %v864_v61 = vpop.f32.mrb[81].mxu0  ;;  %v1470_v54 = vsel %vm1466_vm4, %v1468_v43, %v1464_v59 }
 0x199   :  { %v1133_v63 = vmul.f32 %v864_v61, %v864_v61  ;;  %v866_v1 = vpop.f32.mrb[82].mxu0  ;;  %2674 = vmatmul.mubr.bf16.gmra.mrb[68].mxu1 %v1470_v54  ;;  %2797 = vrsqrt.bf16 %v1256_v55  ;;  %vm1485_vm7 = vcmp.eq.bf16.partialorder %v1256_v55, 2139127680  ;;  %v1490_v29 = vand.u32 2147516416, %v1256_v55 }
 0x19a   :  { %v1062_v2 = vmul.f32 %v866_v1, %v866_v1  ;;  %v868_v3 = vpop.f32.mrb[83].mxu0  ;;  %vm1488_vm8 = vcmp.eq.bf16.partialorder %v1256_v55, 0 }
 0x19b   :  { %v1205_v5 = vadd.f32 %v1133_v63, %v1061_v60  ;;  %v1134_v7 = vmul.f32 %v868_v3, %v868_v3 }
 0x19c   :  { %v2796_v8 = vpop.eup %2795 }
 0x19d   :  { %v1206_v9 = vadd.f32 %v1134_v7, %v1062_v2  ;;  %v1472_v10 = vmul.bf16 %v2796_v8, %v1255_v38 }
 0x19f   :  { %v1257_v11 = vpack.c.bf16 %v1206_v9, %v1205_v5  ;;  %v872_v13 = vpop.f32.mrb[84].mxu0  ;;  %v1475_v62 = vsel %vm1474_vm5, %v1255_v38, %v1472_v10  ;;  %vm1573_vm5 = vcmp.eq.bf16.partialorder %v3280_v22, 2139127680 }
 0x1a0   :  { %v1063_v14 = vmul.f32 %v872_v13, %v872_v13  ;;  %v874_v15 = vpop.f32.mrb[85].mxu0  ;;  %v1481_v17 = vsel %vm1477_vm6, %v1479_v57, %v1475_v62  ;;  %vm1584_vm6 = vcmp.eq.bf16.partialorder %v3290_v49, 2139127680 }
 0x1a1   :  { %v1135_v18 = vmul.f32 %v874_v15, %v874_v15  ;;  %v876_v6 = vpop.f32.mrb[86].mxu0  ;;  %2677 = vmatprep.mubr.bf16.mxu1 %v1481_v17  ;;  %2799 = vrsqrt.bf16 %v1257_v11  ;;  %vm1496_vm9 = vcmp.eq.bf16.partialorder %v1257_v11, 2139127680  ;;  %v1501_v47 = vand.u32 2147516416, %v1257_v11 }
 0x1a2   :  { %v1064_v19 = vmul.f32 %v876_v6, %v876_v6  ;;  %v878_v20 = vpop.f32.mrb[87].mxu0  ;;  %vm1499_vm10 = vcmp.eq.bf16.partialorder %v1257_v11, 0 }
 0x1a3   :  { %v1207_v21 = vadd.f32 %v1135_v18, %v1063_v14  ;;  %v1136_v24 = vmul.f32 %v878_v20, %v878_v20 }
 0x1a4   :  { %v2798_v25 = vpop.eup %2797 }
 0x1a5   :  { %v1208_v26 = vadd.f32 %v1136_v24, %v1064_v19  ;;  %v1483_v28 = vmul.bf16 %v2798_v25, %v1256_v55 }
 0x1a7   :  { %v1258_v30 = vpack.c.bf16 %v1208_v26, %v1207_v21  ;;  %v882_v23 = vpop.f32.mrb[88].mxu0  ;;  %v1486_v31 = vsel %vm1485_vm7, %v1256_v55, %v1483_v28 }
 0x1a8   :  { %v1065_v32 = vmul.f32 %v882_v23, %v882_v23  ;;  %v884_v35 = vpop.f32.mrb[89].mxu0  ;;  %v1492_v36 = vsel %vm1488_vm8, %v1490_v29, %v1486_v31  ;;  %vm1576_vm8 = vcmp.eq.bf16.partialorder %v3280_v22, 0 }
 0x1a9   :  { %v1137_v37 = vmul.f32 %v884_v35, %v884_v35  ;;  %v886_v38 = vpop.f32.mrb[90].mxu0  ;;  %2678 = vmatmul.mubr.bf16.gmra.mrb[72].mxu1 %v1492_v36  ;;  %2801 = vrsqrt.bf16 %v1258_v30  ;;  %vm1507_vm11 = vcmp.eq.bf16.partialorder %v1258_v30, 2139127680  ;;  %v1512_v2 = vand.u32 2147516416, %v1258_v30 }
 0x1aa   :  { %v1066_v39 = vmul.f32 %v886_v38, %v886_v38  ;;  %v888_v41 = vpop.f32.mrb[91].mxu0  ;;  %vm1510_vm12 = vcmp.eq.bf16.partialorder %v1258_v30, 0 }
 0x1ab   :  { %v1209_v42 = vadd.f32 %v1137_v37, %v1065_v32  ;;  %v1138_v44 = vmul.f32 %v888_v41, %v888_v41 }
 0x1ac   :  { %v2800_v45 = vpop.eup %2799 }
 0x1ad   :  { %v1210_v27 = vadd.f32 %v1138_v44, %v1066_v39  ;;  %v1494_v46 = vmul.bf16 %v2800_v45, %v1257_v11 }
 0x1af   :  { %v1259_v34 = vpack.c.bf16 %v1210_v27, %v1209_v42  ;;  %v892_v48 = vpop.f32.mrb[92].mxu0  ;;  %v1497_v50 = vsel %vm1496_vm9, %v1257_v11, %v1494_v46 }
 0x1b0   :  { %v1067_v51 = vmul.f32 %v892_v48, %v892_v48  ;;  %v894_v52 = vpop.f32.mrb[93].mxu0  ;;  %v1503_v53 = vsel %vm1499_vm10, %v1501_v47, %v1497_v50  ;;  %vm1587_vm10 = vcmp.eq.bf16.partialorder %v3290_v49, 0 }
 0x1b1   :  { %v1139_v43 = vmul.f32 %v894_v52, %v894_v52  ;;  %v896_v55 = vpop.f32.mrb[94].mxu0  ;;  %2681 = vmatprep.mubr.bf16.mxu1 %v1503_v53  ;;  %2803 = vrsqrt.bf16 %v1259_v34  ;;  %vm1518_vm13 = vcmp.eq.bf16.partialorder %v1259_v34, 2139127680  ;;  %v1523_v19 = vand.u32 2147516416, %v1259_v34 }
 0x1b2   :  { %v1068_v58 = vmul.f32 %v896_v55, %v896_v55  ;;  %v898_v59 = vpop.f32.mrb[95].mxu0  ;;  %vm1521_vm14 = vcmp.eq.bf16.partialorder %v1259_v34, 0 }
 0x1b3   :  { %v1211_v60 = vadd.f32 %v1139_v43, %v1067_v51  ;;  %v1140_v61 = vmul.f32 %v898_v59, %v898_v59 }
 0x1b4   :  { %v2802_v54 = vpop.eup %2801 }
 0x1b5   :  { %v1212_v63 = vadd.f32 %v1140_v61, %v1068_v58  ;;  %v1505_v1 = vmul.bf16 %v2802_v54, %v1258_v30 }
 0x1b7   :  { %v1260_v3 = vpack.c.bf16 %v1212_v63, %v1211_v60  ;;  %v902_v5 = vpop.f32.mrb[96].mxu0  ;;  %v1508_v7 = vsel %vm1507_vm11, %v1258_v30, %v1505_v1  ;;  %vm1595_vm11 = vcmp.eq.bf16.partialorder %v3300_v12, 2139127680 }
 0x1b8   :  { %v1069_v8 = vmul.f32 %v902_v5, %v902_v5  ;;  %v904_v9 = vpop.f32.mrb[97].mxu0  ;;  %v1514_v10 = vsel %vm1510_vm12, %v1512_v2, %v1508_v7  ;;  %vm1606_vm12 = vcmp.eq.bf16.partialorder %v3310_v40, 2139127680 }
 0x1b9   :  { %v1141_v57 = vmul.f32 %v904_v9, %v904_v9  ;;  %v906_v11 = vpop.f32.mrb[98].mxu0  ;;  %2682 = vmatmul.mubr.bf16.gmra.mrb[76].mxu1 %v1514_v10  ;;  %2805 = vrsqrt.bf16 %v1260_v3  ;;  %vm1529_vm15 = vcmp.eq.bf16.partialorder %v1260_v3, 2139127680  ;;  %v1534_v39 = vand.u32 2147516416, %v1260_v3 }
 0x1ba   :  { %v1070_v13 = vmul.f32 %v906_v11, %v906_v11  ;;  %v908_v62 = vpop.f32.mrb[99].mxu0  ;;  %vm1532_vm0 = vcmp.eq.bf16.partialorder %v1260_v3, 0 }
 0x1bb   :  { %v1213_v14 = vadd.f32 %v1141_v57, %v1069_v8  ;;  %v1142_v15 = vmul.f32 %v908_v62, %v908_v62 }
 0x1bc   :  { %v2804_v17 = vpop.eup %2803 }
 0x1bd   :  { %v1214_v18 = vadd.f32 %v1142_v15, %v1070_v13  ;;  %v1516_v6 = vmul.bf16 %v2804_v17, %v1259_v34  ;;  %v1578_v13 = vand.u32 2147516416, %v3280_v22 }
 0x1bf   :  { %v1261_v20 = vpack.c.bf16 %v1214_v18, %v1213_v14  ;;  %v912_v21 = vpop.f32.mrb[100].mxu0  ;;  %v1519_v24 = vsel %vm1518_vm13, %v1259_v34, %v1516_v6  ;;  %v1589_v14 = vand.u32 2147516416, %v3290_v49  ;;  %vm1598_vm13 = vcmp.eq.bf16.partialorder %v3300_v12, 0 }
 0x1c0   :  { %v1071_v25 = vmul.f32 %v912_v21, %v912_v21  ;;  %v914_v26 = vpop.f32.mrb[101].mxu0  ;;  %v1525_v28 = vsel %vm1521_vm14, %v1523_v19, %v1519_v24  ;;  %vm1609_vm14 = vcmp.eq.bf16.partialorder %v3310_v40, 0 }
 0x1c1   :  { %v1143_v29 = vmul.f32 %v914_v26, %v914_v26  ;;  %v916_v30 = vpop.f32.mrb[102].mxu0  ;;  %2685 = vmatprep.mubr.bf16.mxu1 %v1525_v28  ;;  %2807 = vrsqrt.bf16 %v1261_v20  ;;  %vm1540_vm1 = vcmp.eq.bf16.partialorder %v1261_v20, 2139127680  ;;  %v1545_v58 = vand.u32 2147516416, %v1261_v20 }
 0x1c2   :  { %v1072_v23 = vmul.f32 %v916_v30, %v916_v30  ;;  %v918_v31 = vpop.f32.mrb[103].mxu0  ;;  %vm1543_vm2 = vcmp.eq.bf16.partialorder %v1261_v20, 0  ;;  %v1611_v26 = vand.u32 2147516416, %v3310_v40 }
 0x1c3   :  { %v1215_v32 = vadd.f32 %v1143_v29, %v1071_v25  ;;  %v1144_v35 = vmul.f32 %v918_v31, %v918_v31  ;;  %v1600_v25 = vand.u32 2147516416, %v3300_v12 }
 0x1c4   :  { %v2806_v36 = vpop.eup %2805 }
 0x1c5   :  { %v1216_v37 = vadd.f32 %v1144_v35, %v1072_v23  ;;  %v1527_v38 = vmul.bf16 %v2806_v36, %v1260_v3 }
 0x1c7   :  { %v1262_v41 = vpack.c.bf16 %v1216_v37, %v1215_v32  ;;  %v922_v42 = vpop.f32.mrb[104].mxu0  ;;  %v1530_v44 = vsel %vm1529_vm15, %v1260_v3, %v1527_v38  ;;  %vm1617_vm15 = vcmp.eq.bf16.partialorder %v3320_v4, 2139127680 }
 0x1c8   :  { %v1073_v45 = vmul.f32 %v922_v42, %v922_v42  ;;  %v924_v27 = vpop.f32.mrb[105].mxu0  ;;  %v1536_v46 = vsel %vm1532_vm0, %v1534_v39, %v1530_v44  ;;  %vm1628_vm0 = vcmp.eq.bf16.partialorder %v3330_v33, 2139127680  ;;  %v1633_v39 = vand.u32 2147516416, %v3330_v33 }
 0x1c9   :  { %v1145_v47 = vmul.f32 %v924_v27, %v924_v27  ;;  %v926_v34 = vpop.f32.mrb[106].mxu0  ;;  %2686 = vmatmul.mubr.bf16.gmra.mrb[80].mxu1 %v1536_v46  ;;  %2809 = vrsqrt.bf16 %v1262_v41  ;;  %vm1551_vm3 = vcmp.eq.bf16.partialorder %v1262_v41, 2139127680  ;;  %v1556_v2 = vand.u32 2147516416, %v1262_v41 }
 0x1ca   :  { %v1074_v48 = vmul.f32 %v926_v34, %v926_v34  ;;  %v928_v50 = vpop.f32.mrb[107].mxu0  ;;  %2811 = vrsqrt.bf16 %v3280_v22  ;;  %vm1554_vm4 = vcmp.eq.bf16.partialorder %v1262_v41, 0  ;;  %v1644_v34 = vand.u32 2147516416, %v3340_v0 }
 0x1cb   :  { %v1217_v51 = vadd.f32 %v1145_v47, %v1073_v45  ;;  %v1146_v52 = vmul.f32 %v928_v50, %v928_v50  ;;  %2813 = vrsqrt.bf16 %v3290_v49 }
 0x1cc   :  { %v2808_v53 = vpop.eup %2807 }
 0x1cd   :  { %v1218_v43 = vadd.f32 %v1146_v52, %v1074_v48  ;;  %v1538_v55 = vmul.bf16 %v2808_v53, %v1261_v20 }
 0x1cf   :  { %v1263_v59 = vpack.c.bf16 %v1218_v43, %v1217_v51  ;;  %v1541_v60 = vsel %vm1540_vm1, %v1261_v20, %v1538_v55  ;;  %vm1620_vm1 = vcmp.eq.bf16.partialorder %v3320_v4, 0 }
 0x1d0   :  { %v1547_v61 = vsel %vm1543_vm2, %v1545_v58, %v1541_v60  ;;  %vm1631_vm2 = vcmp.eq.bf16.partialorder %v3330_v33, 0 }
 0x1d1   :  { %2689 = vmatprep.mubr.bf16.mxu1 %v1547_v61  ;;  %2815 = vrsqrt.bf16 %v1263_v59  ;;  %vm1562_vm7 = vcmp.eq.bf16.partialorder %v1263_v59, 2139127680  ;;  %v1567_v62 = vand.u32 2147516416, %v1263_v59  ;;  %vm1565_vm9 = vcmp.eq.bf16.partialorder %v1263_v59, 0 }
 0x1d2   :  { %2817 = vrsqrt.bf16 %v3300_v12 }
 0x1d3   :  { %2819 = vrsqrt.bf16 %v3310_v40 }
 0x1d4   :  { %v2810_v54 = vpop.eup %2809  ;;  %2821 = vrsqrt.bf16 %v3320_v4 }
 0x1d5   :  { %v1549_v63 = vmul.bf16 %v2810_v54, %v1262_v41  ;;  %v2812_v1 = vpop.eup %2811  ;;  %2823 = vrsqrt.bf16 %v3330_v33 }
 0x1d6   :  { %v2814_v5 = vpop.eup %2813  ;;  %v1571_v8 = vmul.bf16 %v2812_v1, %v3280_v22  ;;  %2825 = vrsqrt.bf16 %v3340_v0 }
 0x1d7   :  { %v1552_v3 = vsel %vm1551_vm3, %v1262_v41, %v1549_v63  ;;  %v1582_v9 = vmul.bf16 %v2814_v5, %v3290_v49  ;;  %2827 = vrsqrt.bf16 %v3348_v16  ;;  %vm1639_vm3 = vcmp.eq.bf16.partialorder %v3340_v0, 2139127680 }
 0x1d8   :  { %v1558_v7 = vsel %vm1554_vm4, %v1556_v2, %v1552_v3  ;;  %v1574_v11 = vsel %vm1573_vm5, %v3280_v22, %v1571_v8  ;;  %2829 = vrsqrt.bf16 %v3355_v56  ;;  %vm1650_vm4 = vcmp.eq.bf16.partialorder %v3348_v16, 2139127680 }
 0x1d9   :  { %2690 = vmatmul.mubr.bf16.gmra.mrb[84].mxu1 %v1558_v7  ;;  %v1585_v18 = vsel %vm1584_vm6, %v3290_v49, %v1582_v9  ;;  %v1580_v20 = vsel %vm1576_vm8, %v1578_v13, %v1574_v11  ;;  %vm1642_vm5 = vcmp.eq.bf16.partialorder %v3340_v0, 0  ;;  %vm1653_vm6 = vcmp.eq.bf16.partialorder %v3348_v16, 0 }
 0x1da   :  { %v1591_v21 = vsel %vm1587_vm10, %v1589_v14, %v1585_v18  ;;  %vm1664_vm8 = vcmp.eq.bf16.partialorder %v3355_v56, 0 }
 0x1dc   :  { %v2816_v10 = vpop.eup %2815 }
 0x1dd   :  { %v1560_v57 = vmul.bf16 %v2816_v10, %v1263_v59  ;;  %v2818_v15 = vpop.eup %2817 }
 0x1de   :  { %v2820_v6 = vpop.eup %2819  ;;  %v1593_v24 = vmul.bf16 %v2818_v15, %v3300_v12 }
 0x1df   :  { %v1563_v17 = vsel %vm1562_vm7, %v1263_v59, %v1560_v57  ;;  %v1604_v22 = vmul.bf16 %v2820_v6, %v3310_v40  ;;  %v2822_v28 = vpop.eup %2821  ;;  %vm1661_vm7 = vcmp.eq.bf16.partialorder %v3355_v56, 2139127680 }
 0x1e0   :  { %v1569_v19 = vsel %vm1565_vm9, %v1567_v62, %v1563_v17  ;;  %v1596_v49 = vsel %vm1595_vm11, %v3300_v12, %v1593_v24  ;;  %v2824_v30 = vpop.eup %2823  ;;  %v1615_v32 = vmul.bf16 %v2822_v28, %v3320_v4 }
 0x1e1   :  { %2693 = vmatprep.mubr.bf16.mxu1 %v1569_v19  ;;  %v1607_v29 = vsel %vm1606_vm12, %v3310_v40, %v1604_v22  ;;  %v1602_v23 = vsel %vm1598_vm13, %v1600_v25, %v1596_v49  ;;  %v1626_v35 = vmul.bf16 %v2824_v30, %v3330_v33  ;;  %v1622_v40 = vand.u32 2147516416, %v3320_v4  ;;  %v2826_v41 = vpop.eup %2825 }
 0x1e2   :  { %2694 = vmatmul.mubr.bf16.gmra.mrb[88].mxu1 %v1580_v20  ;;  %v1613_v31 = vsel %vm1609_vm14, %v1611_v26, %v1607_v29  ;;  %v1618_v38 = vsel %vm1617_vm15, %v3320_v4, %v1615_v32  ;;  %v2828_v45 = vpop.eup %2827  ;;  %v1637_v47 = vmul.bf16 %v2826_v41, %v3340_v0 }
 0x1e3   :  { %2697 = vmatprep.mubr.bf16.mxu1 %v1591_v21  ;;  %v1629_v44 = vsel %vm1628_vm0, %v3330_v33, %v1626_v35  ;;  %v1624_v27 = vsel %vm1620_vm1, %v1622_v40, %v1618_v38  ;;  %v1648_v4 = vmul.bf16 %v2828_v45, %v3348_v16  ;;  %v1655_v33 = vand.u32 2147516416, %v3348_v16  ;;  %v2830_v50 = vpop.eup %2829 }
 0x1e4   :  { %v1635_v46 = vsel %vm1631_vm2, %v1633_v39, %v1629_v44  ;;  %v1640_v48 = vsel %vm1639_vm3, %v3340_v0, %v1637_v47  ;;  %v1659_v43 = vmul.bf16 %v2830_v50, %v3355_v56  ;;  %v1666_v0 = vand.u32 2147516416, %v3355_v56 }
 0x1e5   :  { %v1651_v51 = vsel %vm1650_vm4, %v3348_v16, %v1648_v4  ;;  %v1646_v52 = vsel %vm1642_vm5, %v1644_v34, %v1640_v48 }
 0x1e6   :  { %v1657_v53 = vsel %vm1653_vm6, %v1655_v33, %v1651_v51  ;;  %v1662_v60 = vsel %vm1661_vm7, %v3355_v56, %v1659_v43 }
 0x1e7   :  { %v1668_v61 = vsel %vm1664_vm8, %v1666_v0, %v1662_v60 }
 0x1ea   :  { %2698 = vmatmul.mubr.bf16.gmra.mrb[92].mxu1 %v1602_v23 }
 0x1eb   :  { %2701 = vmatprep.mubr.bf16.mxu1 %v1613_v31 }
 0x1ec   :  { %v3388_v36 = vpop.f32.mrb[36].mxu1 }
 0x1ed   :  { %v3392_v12 = vpop.f32.mrb[37].mxu1  ;;  %v1992_v38 = vmax.f32 %v3388_v36, 1e-05 }
 0x1ee   :  { %v3395_v37 = vpop.f32.mrb[38].mxu1  ;;  %v1990_v41 = vmax.f32 %v3392_v12, 1e-05 }
 0x1ef   :  { %v3400_v42 = vpop.f32.mrb[39].mxu1  ;;  %v1993_v45 = vmax.f32 %v3395_v37, 1e-05 }
 0x1f0   :  { %v1991_v47 = vmax.f32 %v3400_v42, 1e-05 }
 0x1f2   :  { %2702 = vmatmul.mubr.bf16.gmra.mrb[96].mxu1 %v1624_v27 }
 0x1f3   :  { %2705 = vmatprep.mubr.bf16.mxu1 %v1635_v46 }
 0x1fa   :  { %2706 = vmatmul.mubr.bf16.gmra.mrb[100].mxu1 %v1646_v52 }
 0x1fb   :  { %2709 = vmatprep.mubr.bf16.mxu1 %v1657_v53 }
 0x1fc   :  { %v3416_v55 = vpop.f32.mrb[40].mxu1 }
 0x1fd   :  { %v3418_v58 = vpop.f32.mrb[41].mxu1 }
 0x1fe   :  { %v3421_v59 = vpop.f32.mrb[42].mxu1 }
 0x1ff   :  { %v3425_v16 = vpop.f32.mrb[43].mxu1 }
 0x202   :  { %2710 = vmatmul.mubr.bf16.gmra.mrb[104].mxu1 %v1668_v61 }
 0x20c   :  { %v3427_v54 = vpop.f32.mrb[44].mxu1 }
 0x20d   :  { %v3429_v63 = vpop.f32.mrb[45].mxu1 }
 0x20e   :  { %v3431_v1 = vpop.f32.mrb[46].mxu1 }
 0x20f   :  { %v3433_v2 = vpop.f32.mrb[47].mxu1 }
 0x21c   :  { %v3435_v3 = vpop.f32.mrb[48].mxu1 }
 0x21d   :  { %v3437_v5 = vpop.f32.mrb[49].mxu1 }
 0x21e   :  { %v3439_v7 = vpop.f32.mrb[50].mxu1 }
 0x21f   :  { %v3441_v8 = vpop.f32.mrb[51].mxu1 }
 0x22c   :  { %v3443_v56 = vpop.f32.mrb[52].mxu1 }
 0x22d   :  { %v3445_v9 = vpop.f32.mrb[53].mxu1 }
 0x22e   :  { %v3447_v10 = vpop.f32.mrb[54].mxu1 }
 0x22f   :  { %v3449_v57 = vpop.f32.mrb[55].mxu1 }
 0x23c   :  { %v3451_v11 = vpop.f32.mrb[56].mxu1 }
 0x23d   :  { %v3453_v13 = vpop.f32.mrb[57].mxu1 }
 0x23e   :  { %v3455_v62 = vpop.f32.mrb[58].mxu1 }
 0x23f   :  { %v3457_v14 = vpop.f32.mrb[59].mxu1 }
 0x24c   :  { %v3459_v15 = vpop.f32.mrb[60].mxu1 }
 0x24d   :  { %v3461_v17 = vpop.f32.mrb[61].mxu1 }
 0x24e   :  { %v3463_v18 = vpop.f32.mrb[62].mxu1 }
 0x24f   :  { %v3465_v6 = vpop.f32.mrb[63].mxu1 }
 0x25c   :  { %v3467_v19 = vpop.f32.mrb[64].mxu1 }
 0x25d   :  { %v3469_v20 = vpop.f32.mrb[65].mxu1 }
 0x25e   :  { %v3471_v21 = vpop.f32.mrb[66].mxu1 }
 0x25f   :  { %v3473_v24 = vpop.f32.mrb[67].mxu1 }
 0x26c   :  { %v3475_v22 = vpop.f32.mrb[68].mxu1 }
 0x26d   :  { %v3477_v25 = vpop.f32.mrb[69].mxu1 }
 0x26e   :  { %v3479_v49 = vpop.f32.mrb[70].mxu1 }
 0x26f   :  { %v3481_v26 = vpop.f32.mrb[71].mxu1 }
 0x27c   :  { %v2679_v28 = vpop.f32.mrb[72].mxu1 }
 0x27d   :  { %v2028_v29 = vmax.f32 %v2679_v28, 1e-05  ;;  %v1847_v30 = vpop.f32.mrb[73].mxu1 }
 0x27e   :  { %v2026_v23 = vmax.f32 %v1847_v30, 1e-05  ;;  %v2680_v31 = vpop.f32.mrb[74].mxu1  ;;  %v1996_v30 = vmax.f32 %v3416_v55, 1e-05 }
 0x27f   :  { %2831 = vrcp.f32 %v2028_v29  ;;  %v2029_v32 = vmax.f32 %v2680_v31, 1e-05  ;;  %v1850_v35 = vpop.f32.mrb[75].mxu1 }
 0x280   :  { %2833 = vrcp.f32 %v2026_v23  ;;  %v2027_v40 = vmax.f32 %v1850_v35, 1e-05 }
 0x281   :  { %2835 = vrcp.f32 %v2029_v32  ;;  %v1994_v32 = vmax.f32 %v3418_v58, 1e-05 }
 0x282   :  { %2837 = vrcp.f32 %v2027_v40 }
 0x289   :  { %v2832_v39 = vpop.eup %2831 }
 0x28a   :  { %v2834_v44 = vpop.eup %2833  ;;  %v2067_v27 = vmul.f32 %v2832_v39, %v1992_v38  ;;  %v1997_v39 = vmax.f32 %v3421_v59, 1e-05 }
 0x28b   :  { %v2836_v46 = vpop.eup %2835  ;;  %v2063_v4 = vmul.f32 %v2834_v44, %v1990_v41  ;;  %v1995_v41 = vmax.f32 %v3425_v16, 1e-05 }
 0x28c   :  { %v2838_v34 = vpop.eup %2837  ;;  %2839 = vlog2.f32 %v2067_v27  ;;  %v2069_v48 = vmul.f32 %v2836_v46, %v1993_v45  ;;  %v2683_v33 = vpop.f32.mrb[76].mxu1 }
 0x28d   :  { %2841 = vlog2.f32 %v2063_v4  ;;  %v2065_v50 = vmul.f32 %v2838_v34, %v1991_v47  ;;  %v2032_v51 = vmax.f32 %v2683_v33, 1e-05  ;;  %v1863_v52 = vpop.f32.mrb[77].mxu1 }
 0x28e   :  { %2843 = vlog2.f32 %v2069_v48  ;;  %v2030_v36 = vmax.f32 %v1863_v52, 1e-05  ;;  %v2684_v53 = vpop.f32.mrb[78].mxu1 }
 0x28f   :  { %2845 = vlog2.f32 %v2065_v50  ;;  %v2033_v12 = vmax.f32 %v2684_v53, 1e-05  ;;  %v1866_v43 = vpop.f32.mrb[79].mxu1 }
 0x290   :  { %2847 = vrcp.f32 %v2032_v51  ;;  %v2031_v37 = vmax.f32 %v1866_v43, 1e-05 }
 0x291   :  { %2849 = vrcp.f32 %v2030_v36 }
 0x292   :  { %2851 = vrcp.f32 %v2033_v12 }
 0x293   :  { %2853 = vrcp.f32 %v2031_v37 }
 0x296   :  { %v2840_v42 = vpop.eup %2839 }
 0x297   :  { %v2842_v0 = vpop.eup %2841  ;;  %v2139_v60 = vmul.f32 0.6931472, %v2840_v42 }
 0x298   :  { %v2844_v61 = vpop.eup %2843  ;;  %v2135_v28 = vmul.f32 0.6931472, %v2842_v0 }
 0x299   :  { %v2846_v29 = vpop.eup %2845  ;;  %v2141_v23 = vmul.f32 0.6931472, %v2844_v61  ;;  %v2208_v44 = vand.u32 2147483647, %v2139_v60 }
 0x29a   :  { %v2848_v31 = vpop.eup %2847  ;;  %v2206_v35 = vand.u32 2147483647, %v2135_v28  ;;  %v2137_v40 = vmul.f32 0.6931472, %v2846_v29 }
 0x29b   :  { %v2850_v38 = vpop.eup %2849  ;;  %v2075_v45 = vmul.f32 %v2848_v31, %v1996_v30  ;;  %v2209_v46 = vand.u32 2147483647, %v2141_v23  ;;  %v2244_v12 = vmul.f32 0.4342945, %v2208_v44 }
 0x29c   :  { %v2852_v27 = vpop.eup %2851  ;;  %v2207_v47 = vand.u32 2147483647, %v2137_v40  ;;  %v2071_v4 = vmul.f32 %v2850_v38, %v1994_v32  ;;  %v2687_v34 = vpop.f32.mrb[80].mxu1  ;;  %v2242_v55 = vmul.f32 0.4342945, %v2206_v35 }
 0x29d   :  { %v2854_v48 = vpop.eup %2853  ;;  %2855 = vlog2.f32 %v2075_v45  ;;  %v2077_v33 = vmul.f32 %v2852_v27, %v1997_v39  ;;  %v2036_v50 = vmax.f32 %v2687_v34, 1e-05  ;;  %v1879_v58 = vpop.f32.mrb[81].mxu1  ;;  %v2245_v42 = vmul.f32 0.4342945, %v2209_v46 }
 0x29e   :  { %v2243_v51 = vmul.f32 0.4342945, %v2207_v47  ;;  %2857 = vlog2.f32 %v2071_v4  ;;  %v2073_v52 = vmul.f32 %v2854_v48, %v1995_v41  ;;  %v2034_v36 = vmax.f32 %v1879_v58, 1e-05  ;;  %v2688_v59 = vpop.f32.mrb[82].mxu1 }
 0x29f   :  { %2859 = vlog2.f32 %v2077_v33  ;;  %v2037_v16 = vmax.f32 %v2688_v59, 1e-05  ;;  %v1882_v53 = vpop.f32.mrb[83].mxu1  ;;  %v2000_v32 = vmax.f32 %v3427_v54, 1e-05 }
 0x2a0   :  { %v2425_v43 = vadd.f32 %v2243_v51, %v2242_v55  ;;  %2861 = vlog2.f32 %v2073_v52  ;;  %v2035_v37 = vmax.f32 %v1882_v53, 1e-05  ;;  %v1998_v38 = vmax.f32 %v3429_v63, 1e-05 }
 0x2a1   :  { %2863 = vrcp.f32 %v2036_v50  ;;  %v2001_v45 = vmax.f32 %v3431_v1, 1e-05  ;;  %v1999_v27 = vmax.f32 %v3433_v2, 1e-05 }
 0x2a2   :  { %v2426_v0 = vadd.f32 %v2425_v43, %v2244_v12  ;;  %2865 = vrcp.f32 %v2034_v36 }
 0x2a3   :  { %2867 = vrcp.f32 %v2037_v16 }
 0x2a4   :  { %v2427_v60 = vadd.f32 %v2426_v0, %v2245_v42  ;;  %2869 = vrcp.f32 %v2035_v37 }
 0x2a7   :  { %v2856_v61 = vpop.eup %2855 }
 0x2a8   :  { %v2858_v28 = vpop.eup %2857  ;;  %v2147_v30 = vmul.f32 0.6931472, %v2856_v61 }
 0x2a9   :  { %v2860_v29 = vpop.eup %2859  ;;  %v2143_v23 = vmul.f32 0.6931472, %v2858_v28 }
 0x2aa   :  { %v2862_v31 = vpop.eup %2861  ;;  %v2149_v35 = vmul.f32 0.6931472, %v2860_v29  ;;  %v2212_v34 = vand.u32 2147483647, %v2147_v30 }
 0x2ab   :  { %v2864_v40 = vpop.eup %2863  ;;  %v2210_v39 = vand.u32 2147483647, %v2143_v23  ;;  %v2145_v41 = vmul.f32 0.6931472, %v2862_v31 }
 0x2ac   :  { %v2866_v44 = vpop.eup %2865  ;;  %v2083_v46 = vmul.f32 %v2864_v40, %v2000_v32  ;;  %v2691_v47 = vpop.f32.mrb[84].mxu1  ;;  %v2213_v54 = vand.u32 2147483647, %v2149_v35  ;;  %v2248_v12 = vmul.f32 0.4342945, %v2212_v34 }
 0x2ad   :  { %v2868_v4 = vpop.eup %2867  ;;  %v2246_v48 = vmul.f32 0.4342945, %v2210_v39  ;;  %v2211_v55 = vand.u32 2147483647, %v2145_v41  ;;  %v2079_v33 = vmul.f32 %v2866_v44, %v1998_v38  ;;  %v2040_v51 = vmax.f32 %v2691_v47, 1e-05 }
 0x2ae   :  { %v2870_v50 = vpop.eup %2869  ;;  %2871 = vlog2.f32 %v2083_v46  ;;  %v2085_v58 = vmul.f32 %v2868_v4, %v2001_v45  ;;  %v1895_v63 = vpop.f32.mrb[85].mxu1  ;;  %v2249_v42 = vmul.f32 0.4342945, %v2213_v54  ;;  %v2002_v4 = vmax.f32 %v3437_v5, 1e-05 }
 0x2af   :  { %v2428_v52 = vadd.f32 %v2427_v60, %v2246_v48  ;;  %v2247_v36 = vmul.f32 0.4342945, %v2211_v55  ;;  %2873 = vlog2.f32 %v2079_v33  ;;  %v2081_v59 = vmul.f32 %v2870_v50, %v1999_v27  ;;  %v2692_v1 = vpop.f32.mrb[86].mxu1 }
 0x2b0   :  { %2875 = vlog2.f32 %v2085_v58  ;;  %v2038_v2 = vmax.f32 %v1895_v63, 1e-05  ;;  %v2041_v16 = vmax.f32 %v2692_v1, 1e-05  ;;  %v1898_v53 = vpop.f32.mrb[87].mxu1 }
 0x2b1   :  { %v2429_v43 = vadd.f32 %v2428_v52, %v2247_v36  ;;  %2877 = vlog2.f32 %v2081_v59  ;;  %v2039_v37 = vmax.f32 %v1898_v53, 1e-05  ;;  %v2004_v27 = vmax.f32 %v3435_v3, 1e-05 }
 0x2b2   :  { %2879 = vrcp.f32 %v2040_v51  ;;  %v2005_v33 = vmax.f32 %v3439_v7, 1e-05  ;;  %v2003_v50 = vmax.f32 %v3441_v8, 1e-05  ;;  %v2008_v8 = vmax.f32 %v3443_v56, 1e-05 }
 0x2b3   :  { %v2430_v0 = vadd.f32 %v2429_v43, %v2248_v12  ;;  %2881 = vrcp.f32 %v2038_v2 }
 0x2b4   :  { %2883 = vrcp.f32 %v2041_v16 }
 0x2b5   :  { %v2431_v61 = vadd.f32 %v2430_v0, %v2249_v42  ;;  %2885 = vrcp.f32 %v2039_v37  ;;  %v2695_v60 = vpop.f32.mrb[88].mxu1 }
 0x2b6   :  { %v2044_v28 = vmax.f32 %v2695_v60, 1e-05  ;;  %v1911_v29 = vpop.f32.mrb[89].mxu1  ;;  %v2006_v60 = vmax.f32 %v3445_v9, 1e-05 }
 0x2b7   :  { %v2042_v30 = vmax.f32 %v1911_v29, 1e-05  ;;  %v2696_v23 = vpop.f32.mrb[90].mxu1 }
 0x2b8   :  { %v2872_v31 = vpop.eup %2871  ;;  %2887 = vrcp.f32 %v2044_v28  ;;  %v2045_v32 = vmax.f32 %v2696_v23, 1e-05  ;;  %v1914_v35 = vpop.f32.mrb[91].mxu1  ;;  %v2009_v23 = vmax.f32 %v3447_v10, 1e-05 }
 0x2b9   :  { %v2874_v40 = vpop.eup %2873  ;;  %2889 = vrcp.f32 %v2042_v30  ;;  %v2043_v38 = vmax.f32 %v1914_v35, 1e-05  ;;  %v2155_v41 = vmul.f32 0.6931472, %v2872_v31 }
 0x2ba   :  { %v2876_v39 = vpop.eup %2875  ;;  %v2151_v44 = vmul.f32 0.6931472, %v2874_v40  ;;  %2891 = vrcp.f32 %v2045_v32 }
 0x2bb   :  { %v2878_v45 = vpop.eup %2877  ;;  %v2157_v46 = vmul.f32 0.6931472, %v2876_v39  ;;  %2893 = vrcp.f32 %v2043_v38  ;;  %v2216_v63 = vand.u32 2147483647, %v2155_v41 }
 0x2bc   :  { %v2880_v47 = vpop.eup %2879  ;;  %v2214_v34 = vand.u32 2147483647, %v2151_v44  ;;  %v2153_v48 = vmul.f32 0.6931472, %v2878_v45 }
 0x2bd   :  { %v2882_v55 = vpop.eup %2881  ;;  %v2091_v54 = vmul.f32 %v2880_v47, %v2004_v27  ;;  %v2699_v58 = vpop.f32.mrb[92].mxu1  ;;  %v2217_v1 = vand.u32 2147483647, %v2157_v46  ;;  %v2252_v28 = vmul.f32 0.4342945, %v2216_v63 }
 0x2be   :  { %v2884_v51 = vpop.eup %2883  ;;  %v2250_v52 = vmul.f32 0.4342945, %v2214_v34  ;;  %v2215_v36 = vand.u32 2147483647, %v2153_v48  ;;  %v2087_v59 = vmul.f32 %v2882_v55, %v2002_v4  ;;  %v2048_v16 = vmax.f32 %v2699_v58, 1e-05 }
 0x2bf   :  { %v2886_v3 = vpop.eup %2885  ;;  %2895 = vlog2.f32 %v2091_v54  ;;  %v2093_v2 = vmul.f32 %v2884_v51, %v2005_v33  ;;  %v1927_v5 = vpop.f32.mrb[93].mxu1  ;;  %v2253_v35 = vmul.f32 0.4342945, %v2217_v1  ;;  %v2012_v33 = vmax.f32 %v3451_v11, 1e-05 }
 0x2c0   :  { %v2432_v53 = vadd.f32 %v2431_v61, %v2250_v52  ;;  %v2251_v12 = vmul.f32 0.4342945, %v2215_v36  ;;  %2897 = vlog2.f32 %v2087_v59  ;;  %v2089_v43 = vmul.f32 %v2886_v3, %v2003_v50  ;;  %v2700_v7 = vpop.f32.mrb[94].mxu1 }
 0x2c1   :  { %2899 = vlog2.f32 %v2093_v2  ;;  %v2046_v37 = vmax.f32 %v1927_v5, 1e-05  ;;  %v1930_v42 = vpop.f32.mrb[95].mxu1  ;;  %v2007_v61 = vmax.f32 %v3449_v57, 1e-05 }
 0x2c2   :  { %v2888_v0 = vpop.eup %2887  ;;  %v2433_v29 = vadd.f32 %v2432_v53, %v2251_v12  ;;  %2901 = vlog2.f32 %v2089_v43  ;;  %v2049_v41 = vmax.f32 %v2700_v7, 1e-05  ;;  %v2047_v27 = vmax.f32 %v1930_v42, 1e-05 }
 0x2c3   :  { %v2890_v30 = vpop.eup %2889  ;;  %v2099_v31 = vmul.f32 %v2888_v0, %v2008_v8  ;;  %2903 = vrcp.f32 %v2048_v16  ;;  %v2010_v51 = vmax.f32 %v3453_v13, 1e-05  ;;  %v2013_v63 = vmax.f32 %v3455_v62, 1e-05 }
 0x2c4   :  { %v2892_v32 = vpop.eup %2891  ;;  %v2434_v40 = vadd.f32 %v2433_v29, %v2252_v28  ;;  %v2095_v56 = vmul.f32 %v2890_v30, %v2006_v60  ;;  %2905 = vrcp.f32 %v2046_v37  ;;  %v2011_v59 = vmax.f32 %v3457_v14, 1e-05 }
 0x2c5   :  { %v2894_v38 = vpop.eup %2893  ;;  %2907 = vlog2.f32 %v2099_v31  ;;  %v2101_v39 = vmul.f32 %v2892_v32, %v2009_v23  ;;  %v2703_v9 = vpop.f32.mrb[96].mxu1  ;;  %v2016_v3 = vmax.f32 %v3459_v15, 1e-05  ;;  %v2014_v12 = vmax.f32 %v3461_v17, 1e-05 }
 0x2c6   :  { %v2435_v44 = vadd.f32 %v2434_v40, %v2253_v35  ;;  %2909 = vlog2.f32 %v2095_v56  ;;  %v2097_v45 = vmul.f32 %v2894_v38, %v2007_v61  ;;  %v1943_v46 = vpop.f32.mrb[97].mxu1  ;;  %v2052_v10 = vmax.f32 %v2703_v9, 1e-05 }
 0x2c7   :  { %2911 = vlog2.f32 %v2101_v39  ;;  %v2704_v57 = vpop.f32.mrb[98].mxu1  ;;  %v2050_v47 = vmax.f32 %v1943_v46, 1e-05  ;;  %v2017_v0 = vmax.f32 %v3463_v18, 1e-05 }
 0x2c8   :  { %2913 = vlog2.f32 %v2097_v45  ;;  %v1946_v4 = vpop.f32.mrb[99].mxu1  ;;  %v2053_v48 = vmax.f32 %v2704_v57, 1e-05 }
 0x2c9   :  { %v2896_v34 = vpop.eup %2895  ;;  %2915 = vrcp.f32 %v2049_v41  ;;  %v2051_v54 = vmax.f32 %v1946_v4, 1e-05 }
 0x2ca   :  { %v2898_v55 = vpop.eup %2897  ;;  %v2163_v50 = vmul.f32 0.6931472, %v2896_v34  ;;  %2917 = vrcp.f32 %v2047_v27 }
 0x2cb   :  { %v2900_v58 = vpop.eup %2899  ;;  %v2159_v52 = vmul.f32 0.6931472, %v2898_v55  ;;  %2919 = vrcp.f32 %v2052_v10  ;;  %v2015_v55 = vmax.f32 %v3465_v6, 1e-05 }
 0x2cc   :  { %v2902_v36 = vpop.eup %2901  ;;  %v2165_v1 = vmul.f32 0.6931472, %v2900_v58  ;;  %2921 = vrcp.f32 %v2050_v47  ;;  %v2220_v13 = vand.u32 2147483647, %v2163_v50 }
 0x2cd   :  { %v2904_v2 = vpop.eup %2903  ;;  %v2218_v16 = vand.u32 2147483647, %v2159_v52  ;;  %v2161_v11 = vmul.f32 0.6931472, %v2902_v36  ;;  %2923 = vrcp.f32 %v2053_v48  ;;  %v2707_v5 = vpop.f32.mrb[100].mxu1 }
 0x2ce   :  { %v2906_v53 = vpop.eup %2905  ;;  %v2107_v43 = vmul.f32 %v2904_v2, %v2012_v33  ;;  %2925 = vrcp.f32 %v2051_v54  ;;  %v1959_v62 = vpop.f32.mrb[101].mxu1  ;;  %v2056_v42 = vmax.f32 %v2707_v5, 1e-05  ;;  %v2221_v60 = vand.u32 2147483647, %v2165_v1 }
 0x2cf   :  { %v2908_v7 = vpop.eup %2907  ;;  %v2254_v8 = vmul.f32 0.4342945, %v2218_v16  ;;  %v2219_v37 = vand.u32 2147483647, %v2161_v11  ;;  %v2103_v14 = vmul.f32 %v2906_v53, %v2010_v51  ;;  %v2054_v28 = vmax.f32 %v1959_v62, 1e-05 }
 0x2d0   :  { %v2910_v15 = vpop.eup %2909  ;;  %2927 = vlog2.f32 %v2107_v43  ;;  %v2708_v17 = vpop.f32.mrb[102].mxu1  ;;  %v2256_v32 = vmul.f32 0.4342945, %v2220_v13  ;;  %v2171_v35 = vmul.f32 0.6931472, %v2908_v7 }
 0x2d1   :  { %v2912_v29 = vpop.eup %2911  ;;  %v2436_v30 = vadd.f32 %v2435_v44, %v2254_v8  ;;  %v2255_v23 = vmul.f32 0.4342945, %v2219_v37  ;;  %v2167_v61 = vmul.f32 0.6931472, %v2910_v15  ;;  %2929 = vlog2.f32 %v2103_v14  ;;  %v1962_v18 = vpop.f32.mrb[103].mxu1 }
 0x2d2   :  { %v2914_v31 = vpop.eup %2913  ;;  %2931 = vrcp.f32 %v2056_v42  ;;  %v2057_v40 = vmax.f32 %v2708_v17, 1e-05  ;;  %v2257_v45 = vmul.f32 0.4342945, %v2221_v60  ;;  %v2173_v27 = vmul.f32 0.6931472, %v2912_v29 }
 0x2d3   :  { %v2916_v56 = vpop.eup %2915  ;;  %v2437_v38 = vadd.f32 %v2436_v30, %v2255_v23  ;;  %v2222_v39 = vand.u32 2147483647, %v2167_v61  ;;  %v2169_v41 = vmul.f32 0.6931472, %v2914_v31  ;;  %2933 = vrcp.f32 %v2054_v28 }
 0x2d4   :  { %v2918_v9 = vpop.eup %2917  ;;  %v2109_v46 = vmul.f32 %v2916_v56, %v2013_v63  ;;  %2935 = vrcp.f32 %v2057_v40  ;;  %v2224_v33 = vand.u32 2147483647, %v2171_v35  ;;  %v2225_v2 = vand.u32 2147483647, %v2173_v27 }
 0x2d5   :  { %v2920_v44 = vpop.eup %2919  ;;  %v2438_v10 = vadd.f32 %v2437_v38, %v2256_v32  ;;  %v2258_v57 = vmul.f32 0.4342945, %v2222_v39  ;;  %v2223_v47 = vand.u32 2147483647, %v2169_v41  ;;  %v2105_v4 = vmul.f32 %v2918_v9, %v2011_v59  ;;  %v2711_v34 = vpop.f32.mrb[104].mxu1 }
 0x2d6   :  { %v2922_v48 = vpop.eup %2921  ;;  %2937 = vlog2.f32 %v2109_v46  ;;  %v2115_v50 = vmul.f32 %v2920_v44, %v2016_v3  ;;  %v1975_v54 = vpop.f32.mrb[105].mxu1  ;;  %v2055_v11 = vmax.f32 %v1962_v18, 1e-05  ;;  %v2060_v6 = vmax.f32 %v2711_v34, 1e-05 }
 0x2d7   :  { %v2924_v58 = vpop.eup %2923  ;;  %v2439_v51 = vadd.f32 %v2438_v10, %v2257_v45  ;;  %v2259_v52 = vmul.f32 0.4342945, %v2223_v47  ;;  %2939 = vlog2.f32 %v2105_v4  ;;  %v2111_v36 = vmul.f32 %v2922_v48, %v2014_v12  ;;  %v2712_v63 = vpop.f32.mrb[106].mxu1 }
 0x2d8   :  { %v2926_v1 = vpop.eup %2925  ;;  %2941 = vlog2.f32 %v2115_v50  ;;  %v2117_v16 = vmul.f32 %v2924_v58, %v2017_v0  ;;  %v1978_v59 = vpop.f32.mrb[107].mxu1  ;;  %v2058_v3 = vmax.f32 %v1975_v54, 1e-05  ;;  %v2020_v62 = vmax.f32 %v3467_v19, 1e-05 }
 0x2d9   :  { %v2440_v5 = vadd.f32 %v2439_v51, %v2258_v57  ;;  %2943 = vlog2.f32 %v2111_v36  ;;  %v2113_v53 = vmul.f32 %v2926_v1, %v2015_v55  ;;  %v2260_v7 = vmul.f32 0.4342945, %v2224_v33 }
 0x2da   :  { %v2928_v13 = vpop.eup %2927  ;;  %2945 = vlog2.f32 %v2117_v16  ;;  %v2018_v37 = vmax.f32 %v3469_v20, 1e-05  ;;  %v2021_v14 = vmax.f32 %v3471_v21, 1e-05  ;;  %v2261_v0 = vmul.f32 0.4342945, %v2225_v2 }
 0x2db   :  { %v2930_v43 = vpop.eup %2929  ;;  %v2441_v8 = vadd.f32 %v2440_v5, %v2259_v52  ;;  %2947 = vlog2.f32 %v2113_v53  ;;  %v2061_v19 = vmax.f32 %v2712_v63, 1e-05  ;;  %v2179_v61 = vmul.f32 0.6931472, %v2928_v13 }
 0x2dc   :  { %v2932_v12 = vpop.eup %2931  ;;  %v2175_v42 = vmul.f32 0.6931472, %v2930_v43  ;;  %2949 = vrcp.f32 %v2055_v11  ;;  %v2059_v32 = vmax.f32 %v1978_v59, 1e-05  ;;  %v2019_v44 = vmax.f32 %v3473_v24, 1e-05 }
 0x2dd   :  { %v2934_v15 = vpop.eup %2933  ;;  %v2442_v60 = vadd.f32 %v2441_v8, %v2260_v7  ;;  %v2123_v28 = vmul.f32 %v2932_v12, %v2020_v62  ;;  %2951 = vrcp.f32 %v2060_v6  ;;  %v2228_v18 = vand.u32 2147483647, %v2179_v61 }
 0x2de   :  { %v2936_v29 = vpop.eup %2935  ;;  %v2226_v30 = vand.u32 2147483647, %v2175_v42  ;;  %v2119_v23 = vmul.f32 %v2934_v15, %v2018_v37  ;;  %2953 = vrcp.f32 %v2058_v3  ;;  %v2024_v10 = vmax.f32 %v3475_v22, 1e-05 }
 0x2df   :  { %v2443_v17 = vadd.f32 %v2442_v60, %v2261_v0  ;;  %v2125_v31 = vmul.f32 %v2936_v29, %v2021_v14  ;;  %v2022_v33 = vmax.f32 %v3477_v25, 1e-05  ;;  %v2264_v50 = vmul.f32 0.4342945, %v2228_v18 }
 0x2e0   :  { %v2938_v35 = vpop.eup %2937  ;;  %v2262_v20 = vmul.f32 0.4342945, %v2226_v30  ;;  %2955 = vlog2.f32 %v2119_v23  ;;  %v2025_v59 = vmax.f32 %v3479_v49, 1e-05  ;;  %v2023_v53 = vmax.f32 %v3481_v26, 1e-05 }
 0x2e1   :  { %v2940_v21 = vpop.eup %2939  ;;  %v2181_v40 = vmul.f32 0.6931472, %v2938_v35  ;;  %2957 = vrcp.f32 %v2061_v19 }
 0x2e2   :  { %v2942_v56 = vpop.eup %2941  ;;  %v2444_v38 = vadd.f32 %v2443_v17, %v2262_v20  ;;  %v2177_v39 = vmul.f32 0.6931472, %v2940_v21  ;;  %2959 = vrcp.f32 %v2059_v32 }
 0x2e3   :  { %v2944_v41 = vpop.eup %2943  ;;  %v2229_v57 = vand.u32 2147483647, %v2181_v40  ;;  %2961 = vlog2.f32 %v2123_v28  ;;  %v2187_v52 = vmul.f32 0.6931472, %v2942_v56 }
 0x2e4   :  { %v2946_v9 = vpop.eup %2945  ;;  %v2227_v45 = vand.u32 2147483647, %v2177_v39  ;;  %v2183_v27 = vmul.f32 0.6931472, %v2944_v41  ;;  %2963 = vlog2.f32 %v2125_v31 }
 0x2e5   :  { %v2948_v46 = vpop.eup %2947  ;;  %v2265_v1 = vmul.f32 0.4342945, %v2229_v57  ;;  %v2189_v11 = vmul.f32 0.6931472, %v2946_v9  ;;  %v2232_v6 = vand.u32 2147483647, %v2187_v52 }
 0x2e6   :  { %v2950_v47 = vpop.eup %2949  ;;  %v2263_v4 = vmul.f32 0.4342945, %v2227_v45  ;;  %v2230_v34 = vand.u32 2147483647, %v2183_v27  ;;  %v2185_v48 = vmul.f32 0.6931472, %v2948_v46 }
 0x2e7   :  { %v2952_v55 = vpop.eup %2951  ;;  %v2121_v54 = vmul.f32 %v2950_v47, %v2019_v44  ;;  %v2233_v8 = vand.u32 2147483647, %v2189_v11  ;;  %v2268_v42 = vmul.f32 0.4342945, %v2232_v6 }
 0x2e8   :  { %v2954_v58 = vpop.eup %2953  ;;  %v2445_v51 = vadd.f32 %v2444_v38, %v2263_v4  ;;  %v2231_v36 = vand.u32 2147483647, %v2185_v48  ;;  %v2131_v63 = vmul.f32 %v2952_v55, %v2024_v10  ;;  %v2266_v16 = vmul.f32 0.4342945, %v2230_v34 }
 0x2e9   :  { %2965 = vlog2.f32 %v2121_v54  ;;  %v2127_v24 = vmul.f32 %v2954_v58, %v2022_v33  ;;  %v2269_v0 = vmul.f32 0.4342945, %v2233_v8 }
 0x2ea   :  { %v2956_v22 = vpop.eup %2955  ;;  %v2446_v2 = vadd.f32 %v2445_v51, %v2264_v50  ;;  %v2267_v3 = vmul.f32 0.4342945, %v2231_v36 }
 0x2eb   :  { %v2191_v5 = vmul.f32 0.6931472, %v2956_v22  ;;  %2967 = vlog2.f32 %v2127_v24  ;;  %v2958_v25 = vpop.eup %2957 }
 0x2ec   :  { %v2447_v13 = vadd.f32 %v2446_v2, %v2265_v1  ;;  %v2960_v43 = vpop.eup %2959  ;;  %2969 = vlog2.f32 %v2131_v63  ;;  %v2133_v62 = vmul.f32 %v2958_v25, %v2025_v59 }
 0x2ed   :  { %v2234_v12 = vand.u32 2147483647, %v2191_v5  ;;  %v2129_v37 = vmul.f32 %v2960_v43, %v2023_v53  ;;  %v2962_v14 = vpop.eup %2961 }
 0x2ee   :  { %v2448_v7 = vadd.f32 %v2447_v13, %v2266_v16  ;;  %2971 = vlog2.f32 %v2133_v62  ;;  %v2964_v49 = vpop.eup %2963  ;;  %v2195_v28 = vmul.f32 0.6931472, %v2962_v14 }
 0x2ef   :  { %2973 = vlog2.f32 %v2129_v37  ;;  %v2270_v26 = vmul.f32 0.4342945, %v2234_v12  ;;  %v2197_v23 = vmul.f32 0.6931472, %v2964_v49 }
 0x2f0   :  { %v2449_v15 = vadd.f32 %v2448_v7, %v2267_v3  ;;  %v2236_v17 = vand.u32 2147483647, %v2195_v28 }
 0x2f1   :  { %v2237_v21 = vand.u32 2147483647, %v2197_v23 }
 0x2f2   :  { %v2450_v60 = vadd.f32 %v2449_v15, %v2268_v42  ;;  %v2272_v41 = vmul.f32 0.4342945, %v2236_v17 }
 0x2f3   :  { %v2966_v29 = vpop.eup %2965  ;;  %v2273_v27 = vmul.f32 0.4342945, %v2237_v21 }
 0x2f4   :  { %v2451_v30 = vadd.f32 %v2450_v60, %v2269_v0  ;;  %v2193_v19 = vmul.f32 0.6931472, %v2966_v29 }
 0x2f5   :  { %v2968_v61 = vpop.eup %2967 }
 0x2f6   :  { %v2452_v31 = vadd.f32 %v2451_v30, %v2270_v26  ;;  %v2235_v32 = vand.u32 2147483647, %v2193_v19  ;;  %v2199_v35 = vmul.f32 0.6931472, %v2968_v61  ;;  %v2970_v20 = vpop.eup %2969 }
 0x2f7   :  { %v2203_v9 = vmul.f32 0.6931472, %v2970_v20 }
 0x2f8   :  { %v2271_v40 = vmul.f32 0.4342945, %v2235_v32  ;;  %v2238_v56 = vand.u32 2147483647, %v2199_v35  ;;  %v2972_v38 = vpop.eup %2971 }
 0x2f9   :  { %v2974_v39 = vpop.eup %2973  ;;  %v2205_v10 = vmul.f32 0.6931472, %v2972_v38  ;;  %v2240_v47 = vand.u32 2147483647, %v2203_v9 }
 0x2fa   :  { %v2453_v18 = vadd.f32 %v2452_v31, %v2271_v40  ;;  %v2201_v45 = vmul.f32 0.6931472, %v2974_v39  ;;  %v2274_v44 = vmul.f32 0.4342945, %v2238_v56 }
 0x2fb   :  { %v2241_v55 = vand.u32 2147483647, %v2205_v10  ;;  %v2276_v33 = vmul.f32 0.4342945, %v2240_v47 }
 0x2fc   :  { %v2454_v46 = vadd.f32 %v2453_v18, %v2272_v41  ;;  %v2239_v57 = vand.u32 2147483647, %v2201_v45 }
 0x2fd   :  { %v2277_v54 = vmul.f32 0.4342945, %v2241_v55 }
 0x2fe   :  { %v2455_v4 = vadd.f32 %v2454_v46, %v2273_v27  ;;  %v2275_v34 = vmul.f32 0.4342945, %v2239_v57 }
 0x300   :  { %v2456_v48 = vadd.f32 %v2455_v4, %v2274_v44 }
 0x302   :  { %v2457_v50 = vadd.f32 %v2456_v48, %v2275_v34 }
 0x304   :  { %v2458_v58 = vadd.f32 %v2457_v50, %v2276_v33 }
 0x306   :  { %v2459_v51 = vadd.f32 %v2458_v58, %v2277_v54 }
 0x308   :  { %v2460_v52 = vmul.f32 0.0007751938, %v2459_v51 }
 0x30a   :  { %2461 = vst [vmem:[%s3525_s3] sm:$0xff] %v2460_v52 }
 0x30b   :  { %2466 = vsyncmov [#allocation5] }
 0x30e   :  { %s2467_s15 = vpop.sfrf %2466 }
 0x30f   :  { %p2579_p0 = scmp.ne.s32.totalorder %s2467_s15, 0 }
 0x311   :  { %2471 = shalt.err (%p2579_p0)  }
 0x312   :  { %2473 = vsyncmov [#allocation5 + $0x1] }
 0x315   :  { %s2474_s16 = vpop.sfrf %2473 }
 0x316   :  { %p2580_p1 = scmp.ne.s32.totalorder %s2474_s16, 0 }
 0x318   :  { %2478 = shalt.err (%p2580_p1)  }

// kernel: multi_resolution_mel_loss.5
= control target key start
LH: loop header
LB: loop body
LE: loop exit
PB: predicated region body
PF: predicated region fallthrough
CT: control target
= control target key end

     0   :  { %s1802_s0 = inlined_call_operand.vmem [shape: bf16[2,96,256], index: 0, kind: input, shape index: {}]   ;;  %s1803_s1 = inlined_call_operand.vmem [shape: bf16[256,256], index: 1, kind: input, shape index: {}]   ;;  %s1804_s2 = inlined_call_operand.vmem [shape: bf16[128,128], index: 2, kind: input, shape index: {}]   ;;  %s1805_s3 = inlined_call_operand.vmem [shape: f32[8,128], index: 3, kind: output, shape index: {}]  }
   0x1   :  { %v57_v0 = vld [vmem:[%s1803_s1] sm:$0xf]  ;;  %v59_v1 = vld [vmem:[%s1803_s1 + $0x8] sm:$0xf]  ;;  %v61_v2 = vld [vmem:[%s1803_s1 + $0x4] sm:$0xf] }
   0x2   :  { %58 = vst [vmem:[#allocation2] sm:$0xf] %v57_v0  ;;  %60 = vst [vmem:[#allocation2 + $0x4] sm:$0xf] %v59_v1  ;;  %v63_v3 = vld [vmem:[%s1803_s1 + $0xc] sm:$0xff]   ;;  %v71_v6 = vld [vmem:[%s1803_s1 + $0x1c] sm:$0xff]  }
   0x3   :  { %62 = vst [vmem:[#allocation2 + $0x8] sm:$0xf] %v61_v2  ;;  %v67_v4 = vld [vmem:[%s1803_s1 + $0x18] sm:$0xf]  ;;  %v69_v5 = vld [vmem:[%s1803_s1 + $0x14] sm:$0xf] }
   0x4   :  { %64 = vst [vmem:[#allocation2 + $0xc] sm:$0xff] %v63_v3   ;;  %68 = vst [vmem:[#allocation2 + $0x14] sm:$0xf] %v67_v4  ;;  %v75_v7 = vld [vmem:[%s1803_s1 + $0x28] sm:$0xf]  ;;  %v79_v9 = vld [vmem:[%s1803_s1 + $0x2c] sm:$0xff]  }
   0x5   :  { %70 = vst [vmem:[#allocation2 + $0x18] sm:$0xf] %v69_v5  ;;  %v77_v8 = vld [vmem:[%s1803_s1 + $0x24] sm:$0xf]  ;;  %72 = vst [vmem:[#allocation2 + $0x1c] sm:$0xff] %v71_v6   ;;  %v87_v12 = vld [vmem:[%s1803_s1 + $0x3c] sm:$0xff]  }
   0x6   :  { %76 = vst [vmem:[#allocation2 + $0x24] sm:$0xf] %v75_v7  ;;  %78 = vst [vmem:[#allocation2 + $0x28] sm:$0xf] %v77_v8  ;;  %v83_v10 = vld [vmem:[%s1803_s1 + $0x38] sm:$0xf] }
   0x7   :  { %v85_v11 = vld [vmem:[%s1803_s1 + $0x34] sm:$0xf]  ;;  %80 = vst [vmem:[#allocation2 + $0x2c] sm:$0xff] %v79_v9   ;;  %84 = vst [vmem:[#allocation2 + $0x34] sm:$0xf] %v83_v10  ;;  %v95_v15 = vld [vmem:[%s1803_s1 + $0x4c] sm:$0xff]  }
   0x8   :  { %86 = vst [vmem:[#allocation2 + $0x38] sm:$0xf] %v85_v11  ;;  %v91_v13 = vld [vmem:[%s1803_s1 + $0x48] sm:$0xf]  ;;  %v93_v14 = vld [vmem:[%s1803_s1 + $0x44] sm:$0xf] }
   0x9   :  { %88 = vst [vmem:[#allocation2 + $0x3c] sm:$0xff] %v87_v12   ;;  %92 = vst [vmem:[#allocation2 + $0x44] sm:$0xf] %v91_v13  ;;  %v99_v16 = vld [vmem:[%s1803_s1 + $0x58] sm:$0xf]  ;;  %v103_v18 = vld [vmem:[%s1803_s1 + $0x5c] sm:$0xff]  }
   0xa   :  { %94 = vst [vmem:[#allocation2 + $0x48] sm:$0xf] %v93_v14  ;;  %v101_v17 = vld [vmem:[%s1803_s1 + $0x54] sm:$0xf]  ;;  %96 = vst [vmem:[#allocation2 + $0x4c] sm:$0xff] %v95_v15   ;;  %v111_v21 = vld [vmem:[%s1803_s1 + $0x6c] sm:$0xff]  }
   0xb   :  { %100 = vst [vmem:[#allocation2 + $0x54] sm:$0xf] %v99_v16  ;;  %102 = vst [vmem:[#allocation2 + $0x58] sm:$0xf] %v101_v17  ;;  %v107_v19 = vld [vmem:[%s1803_s1 + $0x68] sm:$0xf] }
   0xc   :  { %v109_v20 = vld [vmem:[%s1803_s1 + $0x64] sm:$0xf]  ;;  %104 = vst [vmem:[#allocation2 + $0x5c] sm:$0xff] %v103_v18   ;;  %108 = vst [vmem:[#allocation2 + $0x64] sm:$0xf] %v107_v19  ;;  %v119_v24 = vld [vmem:[%s1803_s1 + $0x7c] sm:$0xff]  }
   0xd   :  { %110 = vst [vmem:[#allocation2 + $0x68] sm:$0xf] %v109_v20  ;;  %v115_v22 = vld [vmem:[%s1803_s1 + $0x78] sm:$0xf]  ;;  %v117_v23 = vld [vmem:[%s1803_s1 + $0x74] sm:$0xf] }
   0xe   :  { %112 = vst [vmem:[#allocation2 + $0x6c] sm:$0xff] %v111_v21   ;;  %116 = vst [vmem:[#allocation2 + $0x74] sm:$0xf] %v115_v22  ;;  %v123_v25 = vld [vmem:[%s1803_s1 + $0x88] sm:$0xf]  ;;  %v127_v27 = vld [vmem:[%s1803_s1 + $0x8c] sm:$0xff]  }
   0xf   :  { %118 = vst [vmem:[#allocation2 + $0x78] sm:$0xf] %v117_v23  ;;  %v125_v26 = vld [vmem:[%s1803_s1 + $0x84] sm:$0xf]  ;;  %120 = vst [vmem:[#allocation2 + $0x7c] sm:$0xff] %v119_v24   ;;  %v135_v30 = vld [vmem:[%s1803_s1 + $0x9c] sm:$0xff]  }
  0x10   :  { %124 = vst [vmem:[#allocation2 + $0x84] sm:$0xf] %v123_v25  ;;  %126 = vst [vmem:[#allocation2 + $0x88] sm:$0xf] %v125_v26  ;;  %v131_v28 = vld [vmem:[%s1803_s1 + $0x98] sm:$0xf] }
  0x11   :  { %v133_v29 = vld [vmem:[%s1803_s1 + $0x94] sm:$0xf]  ;;  %128 = vst [vmem:[#allocation2 + $0x8c] sm:$0xff] %v127_v27   ;;  %132 = vst [vmem:[#allocation2 + $0x94] sm:$0xf] %v131_v28  ;;  %v143_v33 = vld [vmem:[%s1803_s1 + $0xac] sm:$0xff]  }
  0x12   :  { %134 = vst [vmem:[#allocation2 + $0x98] sm:$0xf] %v133_v29  ;;  %v139_v31 = vld [vmem:[%s1803_s1 + $0xa8] sm:$0xf]  ;;  %v141_v32 = vld [vmem:[%s1803_s1 + $0xa4] sm:$0xf] }
  0x13   :  { %136 = vst [vmem:[#allocation2 + $0x9c] sm:$0xff] %v135_v30   ;;  %140 = vst [vmem:[#allocation2 + $0xa4] sm:$0xf] %v139_v31  ;;  %v147_v34 = vld [vmem:[%s1803_s1 + $0xb8] sm:$0xf]  ;;  %v151_v36 = vld [vmem:[%s1803_s1 + $0xbc] sm:$0xff]  }
  0x14   :  { %142 = vst [vmem:[#allocation2 + $0xa8] sm:$0xf] %v141_v32  ;;  %v149_v35 = vld [vmem:[%s1803_s1 + $0xb4] sm:$0xf]  ;;  %144 = vst [vmem:[#allocation2 + $0xac] sm:$0xff] %v143_v33   ;;  %v159_v39 = vld [vmem:[%s1803_s1 + $0xcc] sm:$0xff]  }
  0x15   :  { %148 = vst [vmem:[#allocation2 + $0xb4] sm:$0xf] %v147_v34  ;;  %150 = vst [vmem:[#allocation2 + $0xb8] sm:$0xf] %v149_v35  ;;  %v155_v37 = vld [vmem:[%s1803_s1 + $0xc8] sm:$0xf] }
  0x16   :  { %v157_v38 = vld [vmem:[%s1803_s1 + $0xc4] sm:$0xf]  ;;  %152 = vst [vmem:[#allocation2 + $0xbc] sm:$0xff] %v151_v36   ;;  %156 = vst [vmem:[#allocation2 + $0xc4] sm:$0xf] %v155_v37  ;;  %v167_v42 = vld [vmem:[%s1803_s1 + $0xdc] sm:$0xff]  }
  0x17   :  { %158 = vst [vmem:[#allocation2 + $0xc8] sm:$0xf] %v157_v38  ;;  %v163_v40 = vld [vmem:[%s1803_s1 + $0xd8] sm:$0xf]  ;;  %v165_v41 = vld [vmem:[%s1803_s1 + $0xd4] sm:$0xf] }
  0x18   :  { %160 = vst [vmem:[#allocation2 + $0xcc] sm:$0xff] %v159_v39   ;;  %164 = vst [vmem:[#allocation2 + $0xd4] sm:$0xf] %v163_v40  ;;  %v171_v43 = vld [vmem:[%s1803_s1 + $0xe8] sm:$0xf]  ;;  %v175_v45 = vld [vmem:[%s1803_s1 + $0xec] sm:$0xff]  }
  0x19   :  { %166 = vst [vmem:[#allocation2 + $0xd8] sm:$0xf] %v165_v41  ;;  %v173_v44 = vld [vmem:[%s1803_s1 + $0xe4] sm:$0xf]  ;;  %168 = vst [vmem:[#allocation2 + $0xdc] sm:$0xff] %v167_v42  }
  0x1a   :  { %172 = vst [vmem:[#allocation2 + $0xe4] sm:$0xf] %v171_v43  ;;  %174 = vst [vmem:[#allocation2 + $0xe8] sm:$0xf] %v173_v44  ;;  %v179_v46 = vld [vmem:[%s1803_s1 + $0xf8] sm:$0xf] }
  0x1b   :  { %v181_v47 = vld [vmem:[%s1803_s1 + $0xf4] sm:$0xf]  ;;  %176 = vst [vmem:[#allocation2 + $0xec] sm:$0xff] %v175_v45   ;;  %180 = vst [vmem:[#allocation2 + $0xf4] sm:$0xf] %v179_v46 }
  0x1c   :  { %182 = vst [vmem:[#allocation2 + $0xf8] sm:$0xf] %v181_v47  ;;  %v183_v48 = vld [vmem:[%s1803_s1 + $0xfc] sm:$0xf] }
  0x1d   :  { %184 = vst [vmem:[#allocation2 + $0xfc] sm:$0xf] %v183_v48 }
  0x1e   :  { %343 = vsyncadd [#allocation5], 4096  ;;  %v377_v49 = vld [vmem:[%s1804_s2] sm:$0xff]  ;;  %v379_v50 = vld [vmem:[%s1804_s2 + $0x8] sm:$0xff] }
  0x1f   :  { %v381_v51 = vld [vmem:[%s1804_s2 + $0x10] sm:$0xff]  ;;  %v383_v52 = vld [vmem:[%s1804_s2 + $0x18] sm:$0xff]  ;;  %v385_v53 = vld [vmem:[%s1804_s2 + $0x20] sm:$0xff] }
  0x20   :  { %v387_v54 = vld [vmem:[%s1804_s2 + $0x28] sm:$0xff]  ;;  %v389_v55 = vld [vmem:[%s1804_s2 + $0x30] sm:$0xff]  ;;  %v391_v56 = vld [vmem:[%s1804_s2 + $0x38] sm:$0xff] }
  0x21   :  { %400 = vsyncadd [#allocation5 + $0x1], 1024  ;;  %v1508_v57 = vmov 0.0  }
  0x22   :  { %413 = vst [vmem:[%s1805_s3] sm:$0xff] %v1508_v57 }
  0x23   :  { %1504 = dma.done.wait [#allocation5], 4096 }
  0x24   :  { %1505 = vsyncadd [#allocation5], 4294963200 }
  0x25   :  { %1506 = dma.done.wait [#allocation5 + $0x1], 1024 }
  0x26   :  { %1507 = vsyncadd [#allocation5 + $0x1], 4294966272  ;;  %1355 = vmatprep.subr.bf16.mxu1 %v377_v49  ;;  %v423_v58 = vld [vmem:[#allocation2 + $0x8] sm:$0xff]  ;;  %v422_v59 = vld [vmem:[#allocation2] sm:$0xff] }
  0x27   :  { %1356 = vmatpush3.bf16.msra.mxu1 %v377_v49  ;;  %v425_v60 = vld [vmem:[#allocation2 + $0x18] sm:$0xff]  ;;  %606 = vmatprep.subr.bf16.mxu0 %v423_v58  ;;  %v424_v61 = vld [vmem:[#allocation2 + $0x10] sm:$0xff]  ;;  %v427_v62 = vld [vmem:[#allocation2 + $0x28] sm:$0xff] }
  0x28   :  { %1357 = vmatprep.subr.bf16.mxu1 %v379_v50  ;;  %607 = vmatpush1.bf16.msra.mxu0 %v422_v59  ;;  %v426_v63 = vld [vmem:[#allocation2 + $0x20] sm:$0xff]  ;;  %v429_v0 = vld [vmem:[#allocation2 + $0x38] sm:$0xff]  ;;  %v428_v1 = vld [vmem:[#allocation2 + $0x30] sm:$0xff] }
  0x29   :  { %608 = vmatprep.subr.bf16.mxu0 %v425_v60  ;;  %v1398_v2 = vld [vmem:[%s1802_s0 + $0x4] ss:$8 sps:$4 sm:$0xff]   ;;  %v433_v5 = vld [vmem:[#allocation2 + $0x58] sm:$0xff]  ;;  %v432_v6 = vld [vmem:[#allocation2 + $0x50] sm:$0xff] }
  0x2a   :  { %v431_v3 = vld [vmem:[#allocation2 + $0x48] sm:$0xff]  ;;  %638 = vmatprep.mubr.bf16.mxu0 %v1398_v2  ;;  %v430_v4 = vld [vmem:[#allocation2 + $0x40] sm:$0xff]  ;;  %v437_v9 = vld [vmem:[#allocation2 + $0x78] sm:$0xff] }
  0x2b   :  { %1358 = vmatpush3.bf16.msra.mxu1 %v379_v50  ;;  %v435_v7 = vld [vmem:[#allocation2 + $0x68] sm:$0xff]  ;;  %v434_v8 = vld [vmem:[#allocation2 + $0x60] sm:$0xff]  ;;  %v436_v10 = vld [vmem:[#allocation2 + $0x70] sm:$0xff] }
  0x2c   :  { %1359 = vmatprep.subr.bf16.mxu1 %v381_v51  ;;  %609 = vmatpush1.bf16.msra.mxu0 %v424_v61  ;;  %v439_v11 = vld [vmem:[#allocation2 + $0x88] sm:$0xff]  ;;  %v438_v12 = vld [vmem:[#allocation2 + $0x80] sm:$0xff]  ;;  %v441_v13 = vld [vmem:[#allocation2 + $0x98] sm:$0xff] }
  0x2d   :  { %610 = vmatprep.subr.bf16.mxu0 %v427_v62  ;;  %v440_v14 = vld [vmem:[#allocation2 + $0x90] sm:$0xff]  ;;  %v443_v15 = vld [vmem:[#allocation2 + $0xa8] sm:$0xff]  ;;  %v442_v16 = vld [vmem:[#allocation2 + $0xa0] sm:$0xff] }
  0x2e   :  { %v445_v17 = vld [vmem:[#allocation2 + $0xb8] sm:$0xff]  ;;  %v444_v18 = vld [vmem:[#allocation2 + $0xb0] sm:$0xff]  ;;  %v447_v19 = vld [vmem:[#allocation2 + $0xc8] sm:$0xff] }
  0x2f   :  { %1360 = vmatpush3.bf16.msra.mxu1 %v381_v51  ;;  %v446_v20 = vld [vmem:[#allocation2 + $0xc0] sm:$0xff]  ;;  %v449_v21 = vld [vmem:[#allocation2 + $0xd8] sm:$0xff]  ;;  %v448_v22 = vld [vmem:[#allocation2 + $0xd0] sm:$0xff] }
  0x30   :  { %1361 = vmatprep.subr.bf16.mxu1 %v383_v52  ;;  %611 = vmatpush1.bf16.msra.mxu0 %v426_v63  ;;  %v451_v23 = vld [vmem:[#allocation2 + $0xe8] sm:$0xff]  ;;  %v450_v24 = vld [vmem:[#allocation2 + $0xe0] sm:$0xff]  ;;  %v453_v25 = vld [vmem:[#allocation2 + $0xf8] sm:$0xff] }
  0x31   :  { %612 = vmatprep.subr.bf16.mxu0 %v429_v0  ;;  %v452_v26 = vld [vmem:[#allocation2 + $0xf0] sm:$0xff]  ;;  %v1396_v27 = vld [vmem:[%s1802_s0] ss:$8 sps:$4 sm:$0xff]   ;;  %v1402_v30 = vld [vmem:[%s1802_s0 + $0x24] ss:$8 sps:$4 sm:$0xff]  }
  0x32   :  { %v1399_v28 = vld [vmem:[%s1802_s0 + $0x14] ss:$8 sps:$4 sm:$0xff]   ;;  %v1401_v29 = vld [vmem:[%s1802_s0 + $0x10] ss:$8 sps:$4 sm:$0xff]   ;;  %v1404_v31 = vld [vmem:[%s1802_s0 + $0x20] ss:$8 sps:$4 sm:$0xff]  }
  0x33   :  { %1362 = vmatpush3.bf16.msra.mxu1 %v383_v52  ;;  %v1405_v32 = vld [vmem:[%s1802_s0 + $0x34] ss:$8 sps:$4 sm:$0xff]   ;;  %v1407_v33 = vld [vmem:[%s1802_s0 + $0x30] ss:$8 sps:$4 sm:$0xff]   ;;  %v1408_v34 = vld [vmem:[%s1802_s0 + $0x44] ss:$8 sps:$4 sm:$0xff]  }
  0x34   :  { %1363 = vmatprep.subr.bf16.mxu1 %v385_v53  ;;  %613 = vmatpush1.bf16.msra.mxu0 %v428_v1  ;;  %v1410_v35 = vld [vmem:[%s1802_s0 + $0x40] ss:$8 sps:$4 sm:$0xff]   ;;  %v1411_v36 = vld [vmem:[%s1802_s0 + $0x54] ss:$8 sps:$4 sm:$0xff]   ;;  %v1413_v37 = vld [vmem:[%s1802_s0 + $0x50] ss:$8 sps:$4 sm:$0xff]  }
  0x35   :  { %614 = vmatprep.subr.bf16.mxu0 %v431_v3  ;;  %v1414_v38 = vld [vmem:[%s1802_s0 + $0x64] ss:$8 sps:$4 sm:$0xff]   ;;  %v1416_v39 = vld [vmem:[%s1802_s0 + $0x60] ss:$8 sps:$4 sm:$0xff]   ;;  %v1417_v40 = vld [vmem:[%s1802_s0 + $0x74] ss:$8 sps:$4 sm:$0xff]  }
  0x36   :  { %v1419_v41 = vld [vmem:[%s1802_s0 + $0x70] ss:$8 sps:$4 sm:$0xff]   ;;  %v1420_v42 = vld [vmem:[%s1802_s0 + $0x84] ss:$8 sps:$4 sm:$0xff]   ;;  %v1422_v43 = vld [vmem:[%s1802_s0 + $0x80] ss:$8 sps:$4 sm:$0xff]  }
  0x37   :  { %1364 = vmatpush3.bf16.msra.mxu1 %v385_v53  ;;  %v1423_v44 = vld [vmem:[%s1802_s0 + $0x94] ss:$8 sps:$4 sm:$0xff]   ;;  %v1425_v45 = vld [vmem:[%s1802_s0 + $0x90] ss:$8 sps:$4 sm:$0xff]   ;;  %v1426_v46 = vld [vmem:[%s1802_s0 + $0xa4] ss:$8 sps:$4 sm:$0xff]  }
  0x38   :  { %1365 = vmatprep.subr.bf16.mxu1 %v387_v54  ;;  %615 = vmatpush1.bf16.msra.mxu0 %v430_v4  ;;  %v1428_v47 = vld [vmem:[%s1802_s0 + $0xa0] ss:$8 sps:$4 sm:$0xff]   ;;  %v1429_v48 = vld [vmem:[%s1802_s0 + $0xb4] ss:$8 sps:$4 sm:$0xff]   ;;  %v1431_v49 = vld [vmem:[%s1802_s0 + $0xb0] ss:$8 sps:$4 sm:$0xff]  }
  0x39   :  { %616 = vmatprep.subr.bf16.mxu0 %v433_v5 }
  0x3b   :  { %1366 = vmatpush3.bf16.msra.mxu1 %v387_v54 }
  0x3c   :  { %1367 = vmatprep.subr.bf16.mxu1 %v389_v55  ;;  %617 = vmatpush1.bf16.msra.mxu0 %v432_v6 }
  0x3d   :  { %618 = vmatprep.subr.bf16.mxu0 %v435_v7 }
  0x3f   :  { %1368 = vmatpush3.bf16.msra.mxu1 %v389_v55 }
  0x40   :  { %1369 = vmatprep.subr.bf16.mxu1 %v391_v56  ;;  %619 = vmatpush1.bf16.msra.mxu0 %v434_v8 }
  0x41   :  { %620 = vmatprep.subr.bf16.mxu0 %v437_v9 }
  0x43   :  { %1370 = vmatpush3.bf16.msra.mxu1 %v391_v56 }
  0x44   :  { %621 = vmatpush1.bf16.msra.mxu0 %v436_v10 }
  0x45   :  { %622 = vmatprep.subr.bf16.mxu0 %v439_v11 }
  0x48   :  { %623 = vmatpush1.bf16.msra.mxu0 %v438_v12 }
  0x49   :  { %624 = vmatprep.subr.bf16.mxu0 %v441_v13 }
  0x4c   :  { %625 = vmatpush1.bf16.msra.mxu0 %v440_v14 }
  0x4d   :  { %626 = vmatprep.subr.bf16.mxu0 %v443_v15 }
  0x50   :  { %627 = vmatpush1.bf16.msra.mxu0 %v442_v16 }
  0x51   :  { %628 = vmatprep.subr.bf16.mxu0 %v445_v17 }
  0x54   :  { %629 = vmatpush1.bf16.msra.mxu0 %v444_v18 }
  0x55   :  { %630 = vmatprep.subr.bf16.mxu0 %v447_v19 }
  0x58   :  { %631 = vmatpush1.bf16.msra.mxu0 %v446_v20 }
  0x59   :  { %632 = vmatprep.subr.bf16.mxu0 %v449_v21 }
  0x5c   :  { %633 = vmatpush1.bf16.msra.mxu0 %v448_v22 }
  0x5d   :  { %634 = vmatprep.subr.bf16.mxu0 %v451_v23 }
  0x60   :  { %635 = vmatpush1.bf16.msra.mxu0 %v450_v24 }
  0x61   :  { %636 = vmatprep.subr.bf16.mxu0 %v453_v25 }
  0x64   :  { %637 = vmatpush1.bf16.msra.mxu0 %v452_v26 }
  0x67   :  { %639 = vmatmul.mubr.bf16.vlgmr.msra.gmra.mrb[0].mxu0 %v1396_v27 }
  0x68   :  { %648 = vmatprep.mubr.bf16.mxu0 %v1399_v28 }
  0x6f   :  { %649 = vmatmul.mubr.bf16.gmra.mrb[4].mxu0 %v1401_v29 }
  0x70   :  { %658 = vmatprep.mubr.bf16.mxu0 %v1402_v30 }
  0x77   :  { %659 = vmatmul.mubr.bf16.gmra.mrb[8].mxu0 %v1404_v31 }
  0x78   :  { %668 = vmatprep.mubr.bf16.mxu0 %v1405_v32 }
  0x7f   :  { %669 = vmatmul.mubr.bf16.gmra.mrb[12].mxu0 %v1407_v33 }
  0x80   :  { %678 = vmatprep.mubr.bf16.mxu0 %v1408_v34 }
  0x87   :  { %679 = vmatmul.mubr.bf16.gmra.mrb[16].mxu0 %v1410_v35 }
  0x88   :  { %688 = vmatprep.mubr.bf16.mxu0 %v1411_v36 }
  0x8f   :  { %689 = vmatmul.mubr.bf16.gmra.mrb[20].mxu0 %v1413_v37 }
  0x90   :  { %698 = vmatprep.mubr.bf16.mxu0 %v1414_v38 }
  0x97   :  { %699 = vmatmul.mubr.bf16.gmra.mrb[24].mxu0 %v1416_v39 }
  0x98   :  { %708 = vmatprep.mubr.bf16.mxu0 %v1417_v40 }
  0x9f   :  { %709 = vmatmul.mubr.bf16.gmra.mrb[28].mxu0 %v1419_v41 }
  0xa0   :  { %718 = vmatprep.mubr.bf16.mxu0 %v1420_v42 }
  0xa7   :  { %719 = vmatmul.mubr.bf16.gmra.mrb[32].mxu0 %v1422_v43 }
  0xa8   :  { %728 = vmatprep.mubr.bf16.mxu0 %v1423_v44 }
  0xaf   :  { %729 = vmatmul.mubr.bf16.gmra.mrb[36].mxu0 %v1425_v45 }
  0xb0   :  { %738 = vmatprep.mubr.bf16.mxu0 %v1426_v46 }
  0xb7   :  { %739 = vmatmul.mubr.bf16.gmra.mrb[40].mxu0 %v1428_v47 }
  0xb8   :  { %748 = vmatprep.mubr.bf16.mxu0 %v1429_v48 }
  0xbf   :  { %749 = vmatmul.mubr.bf16.gmra.mrb[44].mxu0 %v1431_v49 }
 0x13a   :  { %v640_v50 = vpop.f32.mrb[0].mxu0 }
 0x13b   :  { %v759_v51 = vmul.f32 %v640_v50, %v640_v50  ;;  %v642_v52 = vpop.f32.mrb[1].mxu0 }
 0x13c   :  { %v783_v53 = vmul.f32 %v642_v52, %v642_v52  ;;  %v644_v54 = vpop.f32.mrb[2].mxu0 }
 0x13d   :  { %v760_v55 = vmul.f32 %v644_v54, %v644_v54  ;;  %v646_v56 = vpop.f32.mrb[3].mxu0 }
 0x13e   :  { %v807_v57 = vadd.f32 %v783_v53, %v759_v51  ;;  %v784_v58 = vmul.f32 %v646_v56, %v646_v56 }
 0x140   :  { %v808_v59 = vadd.f32 %v784_v58, %v760_v55 }
 0x142   :  { %v831_v60 = vpack.c.bf16 %v808_v59, %v807_v57  ;;  %v650_v61 = vpop.f32.mrb[4].mxu0 }
 0x143   :  { %v761_v62 = vmul.f32 %v650_v61, %v650_v61  ;;  %v652_v63 = vpop.f32.mrb[5].mxu0 }
 0x144   :  { %v785_v0 = vmul.f32 %v652_v63, %v652_v63  ;;  %v654_v1 = vpop.f32.mrb[6].mxu0  ;;  %1432 = vrsqrt.bf16 %v831_v60  ;;  %vm846_vm0 = vcmp.eq.bf16.partialorder %v831_v60, 2139127680  ;;  %v851_v20 = vand.u32 2147516416, %v831_v60 }
 0x145   :  { %v762_v2 = vmul.f32 %v654_v1, %v654_v1  ;;  %v656_v3 = vpop.f32.mrb[7].mxu0  ;;  %vm849_vm1 = vcmp.eq.bf16.partialorder %v831_v60, 0 }
 0x146   :  { %v809_v4 = vadd.f32 %v785_v0, %v761_v62  ;;  %v786_v5 = vmul.f32 %v656_v3, %v656_v3 }
 0x148   :  { %v810_v6 = vadd.f32 %v786_v5, %v762_v2 }
 0x14a   :  { %v832_v7 = vpack.c.bf16 %v810_v6, %v809_v4  ;;  %v660_v8 = vpop.f32.mrb[8].mxu0 }
 0x14b   :  { %v763_v9 = vmul.f32 %v660_v8, %v660_v8  ;;  %v662_v10 = vpop.f32.mrb[9].mxu0 }
 0x14c   :  { %v787_v11 = vmul.f32 %v662_v10, %v662_v10  ;;  %v664_v12 = vpop.f32.mrb[10].mxu0  ;;  %1434 = vrsqrt.bf16 %v832_v7  ;;  %vm857_vm2 = vcmp.eq.bf16.partialorder %v832_v7, 2139127680  ;;  %v862_v36 = vand.u32 2147516416, %v832_v7 }
 0x14d   :  { %v764_v13 = vmul.f32 %v664_v12, %v664_v12  ;;  %v666_v14 = vpop.f32.mrb[11].mxu0  ;;  %vm860_vm3 = vcmp.eq.bf16.partialorder %v832_v7, 0 }
 0x14e   :  { %v811_v15 = vadd.f32 %v787_v11, %v763_v9  ;;  %v788_v16 = vmul.f32 %v666_v14, %v666_v14 }
 0x14f   :  { %v1433_v17 = vpop.eup %1432 }
 0x150   :  { %v812_v18 = vadd.f32 %v788_v16, %v764_v13  ;;  %v844_v19 = vmul.bf16 %v1433_v17, %v831_v60 }
 0x152   :  { %v833_v21 = vpack.c.bf16 %v812_v18, %v811_v15  ;;  %v670_v22 = vpop.f32.mrb[12].mxu0  ;;  %v847_v23 = vsel %vm846_vm0, %v831_v60, %v844_v19 }
 0x153   :  { %v765_v24 = vmul.f32 %v670_v22, %v670_v22  ;;  %v672_v25 = vpop.f32.mrb[13].mxu0  ;;  %v853_v26 = vsel %vm849_vm1, %v851_v20, %v847_v23 }
 0x154   :  { %v789_v27 = vmul.f32 %v672_v25, %v672_v25  ;;  %v674_v28 = vpop.f32.mrb[14].mxu0  ;;  %1371 = vmatprep.mubr.bf16.mxu1 %v853_v26  ;;  %1436 = vrsqrt.bf16 %v833_v21  ;;  %vm868_vm4 = vcmp.eq.bf16.partialorder %v833_v21, 2139127680  ;;  %v873_v52 = vand.u32 2147516416, %v833_v21 }
 0x155   :  { %v766_v29 = vmul.f32 %v674_v28, %v674_v28  ;;  %v676_v30 = vpop.f32.mrb[15].mxu0  ;;  %vm871_vm5 = vcmp.eq.bf16.partialorder %v833_v21, 0 }
 0x156   :  { %v813_v31 = vadd.f32 %v789_v27, %v765_v24  ;;  %v790_v32 = vmul.f32 %v676_v30, %v676_v30 }
 0x157   :  { %v1435_v33 = vpop.eup %1434 }
 0x158   :  { %v814_v34 = vadd.f32 %v790_v32, %v766_v29  ;;  %v855_v35 = vmul.bf16 %v1435_v33, %v832_v7 }
 0x15a   :  { %v834_v37 = vpack.c.bf16 %v814_v34, %v813_v31  ;;  %v680_v38 = vpop.f32.mrb[16].mxu0  ;;  %v858_v39 = vsel %vm857_vm2, %v832_v7, %v855_v35 }
 0x15b   :  { %v767_v40 = vmul.f32 %v680_v38, %v680_v38  ;;  %v682_v41 = vpop.f32.mrb[17].mxu0  ;;  %v864_v42 = vsel %vm860_vm3, %v862_v36, %v858_v39 }
 0x15c   :  { %v791_v43 = vmul.f32 %v682_v41, %v682_v41  ;;  %v684_v44 = vpop.f32.mrb[18].mxu0  ;;  %1372 = vmatmul.mubr.bf16.vlgmr.msra.gmra.mrb[0].mxu1 %v864_v42  ;;  %1438 = vrsqrt.bf16 %v834_v37  ;;  %vm879_vm6 = vcmp.eq.bf16.partialorder %v834_v37, 2139127680  ;;  %v884_v4 = vand.u32 2147516416, %v834_v37 }
 0x15d   :  { %v768_v45 = vmul.f32 %v684_v44, %v684_v44  ;;  %v686_v46 = vpop.f32.mrb[19].mxu0  ;;  %vm882_vm7 = vcmp.eq.bf16.partialorder %v834_v37, 0 }
 0x15e   :  { %v815_v47 = vadd.f32 %v791_v43, %v767_v40  ;;  %v792_v48 = vmul.f32 %v686_v46, %v686_v46 }
 0x15f   :  { %v1437_v49 = vpop.eup %1436 }
 0x160   :  { %v816_v50 = vadd.f32 %v792_v48, %v768_v45  ;;  %v866_v51 = vmul.bf16 %v1437_v49, %v833_v21 }
 0x162   :  { %v835_v53 = vpack.c.bf16 %v816_v50, %v815_v47  ;;  %v690_v54 = vpop.f32.mrb[20].mxu0  ;;  %v869_v55 = vsel %vm868_vm4, %v833_v21, %v866_v51 }
 0x163   :  { %v769_v56 = vmul.f32 %v690_v54, %v690_v54  ;;  %v692_v57 = vpop.f32.mrb[21].mxu0  ;;  %v875_v58 = vsel %vm871_vm5, %v873_v52, %v869_v55 }
 0x164   :  { %v793_v59 = vmul.f32 %v692_v57, %v692_v57  ;;  %v694_v60 = vpop.f32.mrb[22].mxu0  ;;  %1375 = vmatprep.mubr.bf16.mxu1 %v875_v58  ;;  %1440 = vrsqrt.bf16 %v835_v53  ;;  %vm890_vm8 = vcmp.eq.bf16.partialorder %v835_v53, 2139127680  ;;  %v895_v20 = vand.u32 2147516416, %v835_v53 }
 0x165   :  { %v770_v61 = vmul.f32 %v694_v60, %v694_v60  ;;  %v696_v62 = vpop.f32.mrb[23].mxu0  ;;  %vm893_vm9 = vcmp.eq.bf16.partialorder %v835_v53, 0 }
 0x166   :  { %v817_v63 = vadd.f32 %v793_v59, %v769_v56  ;;  %v794_v0 = vmul.f32 %v696_v62, %v696_v62 }
 0x167   :  { %v1439_v1 = vpop.eup %1438 }
 0x168   :  { %v818_v2 = vadd.f32 %v794_v0, %v770_v61  ;;  %v877_v3 = vmul.bf16 %v1439_v1, %v834_v37 }
 0x16a   :  { %v836_v5 = vpack.c.bf16 %v818_v2, %v817_v63  ;;  %v700_v6 = vpop.f32.mrb[24].mxu0  ;;  %v880_v7 = vsel %vm879_vm6, %v834_v37, %v877_v3 }
 0x16b   :  { %v771_v8 = vmul.f32 %v700_v6, %v700_v6  ;;  %v702_v9 = vpop.f32.mrb[25].mxu0  ;;  %v886_v10 = vsel %vm882_vm7, %v884_v4, %v880_v7 }
 0x16c   :  { %v795_v11 = vmul.f32 %v702_v9, %v702_v9  ;;  %v704_v12 = vpop.f32.mrb[26].mxu0  ;;  %1376 = vmatmul.mubr.bf16.gmra.mrb[4].mxu1 %v886_v10  ;;  %1442 = vrsqrt.bf16 %v836_v5  ;;  %vm901_vm10 = vcmp.eq.bf16.partialorder %v836_v5, 2139127680  ;;  %v906_v36 = vand.u32 2147516416, %v836_v5 }
 0x16d   :  { %v772_v13 = vmul.f32 %v704_v12, %v704_v12  ;;  %v706_v14 = vpop.f32.mrb[27].mxu0  ;;  %vm904_vm11 = vcmp.eq.bf16.partialorder %v836_v5, 0 }
 0x16e   :  { %v819_v15 = vadd.f32 %v795_v11, %v771_v8  ;;  %v796_v16 = vmul.f32 %v706_v14, %v706_v14 }
 0x16f   :  { %v1441_v17 = vpop.eup %1440 }
 0x170   :  { %v820_v18 = vadd.f32 %v796_v16, %v772_v13  ;;  %v888_v19 = vmul.bf16 %v1441_v17, %v835_v53 }
 0x172   :  { %v837_v21 = vpack.c.bf16 %v820_v18, %v819_v15  ;;  %v710_v22 = vpop.f32.mrb[28].mxu0  ;;  %v891_v23 = vsel %vm890_vm8, %v835_v53, %v888_v19 }
 0x173   :  { %v773_v24 = vmul.f32 %v710_v22, %v710_v22  ;;  %v712_v25 = vpop.f32.mrb[29].mxu0  ;;  %v897_v26 = vsel %vm893_vm9, %v895_v20, %v891_v23 }
 0x174   :  { %v797_v27 = vmul.f32 %v712_v25, %v712_v25  ;;  %v714_v28 = vpop.f32.mrb[30].mxu0  ;;  %1379 = vmatprep.mubr.bf16.mxu1 %v897_v26  ;;  %1444 = vrsqrt.bf16 %v837_v21  ;;  %vm912_vm12 = vcmp.eq.bf16.partialorder %v837_v21, 2139127680  ;;  %v917_v52 = vand.u32 2147516416, %v837_v21 }
 0x175   :  { %v774_v29 = vmul.f32 %v714_v28, %v714_v28  ;;  %v716_v30 = vpop.f32.mrb[31].mxu0  ;;  %vm915_vm13 = vcmp.eq.bf16.partialorder %v837_v21, 0 }
 0x176   :  { %v821_v31 = vadd.f32 %v797_v27, %v773_v24  ;;  %v798_v32 = vmul.f32 %v716_v30, %v716_v30 }
 0x177   :  { %v1443_v33 = vpop.eup %1442 }
 0x178   :  { %v822_v34 = vadd.f32 %v798_v32, %v774_v29  ;;  %v899_v35 = vmul.bf16 %v1443_v33, %v836_v5 }
 0x17a   :  { %v838_v37 = vpack.c.bf16 %v822_v34, %v821_v31  ;;  %v720_v38 = vpop.f32.mrb[32].mxu0  ;;  %v902_v39 = vsel %vm901_vm10, %v836_v5, %v899_v35 }
 0x17b   :  { %v775_v40 = vmul.f32 %v720_v38, %v720_v38  ;;  %v722_v41 = vpop.f32.mrb[33].mxu0  ;;  %v908_v42 = vsel %vm904_vm11, %v906_v36, %v902_v39 }
 0x17c   :  { %v799_v43 = vmul.f32 %v722_v41, %v722_v41  ;;  %v724_v44 = vpop.f32.mrb[34].mxu0  ;;  %1380 = vmatmul.mubr.bf16.gmra.mrb[8].mxu1 %v908_v42  ;;  %1446 = vrsqrt.bf16 %v838_v37  ;;  %vm923_vm14 = vcmp.eq.bf16.partialorder %v838_v37, 2139127680  ;;  %v928_v4 = vand.u32 2147516416, %v838_v37 }
 0x17d   :  { %v776_v45 = vmul.f32 %v724_v44, %v724_v44  ;;  %v726_v46 = vpop.f32.mrb[35].mxu0  ;;  %vm926_vm15 = vcmp.eq.bf16.partialorder %v838_v37, 0 }
 0x17e   :  { %v823_v47 = vadd.f32 %v799_v43, %v775_v40  ;;  %v800_v48 = vmul.f32 %v726_v46, %v726_v46 }
 0x17f   :  { %v1445_v49 = vpop.eup %1444 }
 0x180   :  { %v824_v50 = vadd.f32 %v800_v48, %v776_v45  ;;  %v910_v51 = vmul.bf16 %v1445_v49, %v837_v21 }
 0x182   :  { %v839_v53 = vpack.c.bf16 %v824_v50, %v823_v47  ;;  %v730_v54 = vpop.f32.mrb[36].mxu0  ;;  %v913_v55 = vsel %vm912_vm12, %v837_v21, %v910_v51 }
 0x183   :  { %v777_v56 = vmul.f32 %v730_v54, %v730_v54  ;;  %v732_v57 = vpop.f32.mrb[37].mxu0  ;;  %v919_v58 = vsel %vm915_vm13, %v917_v52, %v913_v55 }
 0x184   :  { %v801_v59 = vmul.f32 %v732_v57, %v732_v57  ;;  %v734_v60 = vpop.f32.mrb[38].mxu0  ;;  %1383 = vmatprep.mubr.bf16.mxu1 %v919_v58  ;;  %1448 = vrsqrt.bf16 %v839_v53  ;;  %vm934_vm0 = vcmp.eq.bf16.partialorder %v839_v53, 2139127680  ;;  %v939_v20 = vand.u32 2147516416, %v839_v53 }
 0x185   :  { %v778_v61 = vmul.f32 %v734_v60, %v734_v60  ;;  %v736_v62 = vpop.f32.mrb[39].mxu0  ;;  %vm937_vm1 = vcmp.eq.bf16.partialorder %v839_v53, 0 }
 0x186   :  { %v825_v63 = vadd.f32 %v801_v59, %v777_v56  ;;  %v802_v0 = vmul.f32 %v736_v62, %v736_v62 }
 0x187   :  { %v1447_v1 = vpop.eup %1446 }
 0x188   :  { %v826_v2 = vadd.f32 %v802_v0, %v778_v61  ;;  %v921_v3 = vmul.bf16 %v1447_v1, %v838_v37 }
 0x18a   :  { %v840_v5 = vpack.c.bf16 %v826_v2, %v825_v63  ;;  %v740_v6 = vpop.f32.mrb[40].mxu0  ;;  %v924_v7 = vsel %vm923_vm14, %v838_v37, %v921_v3 }
 0x18b   :  { %v779_v8 = vmul.f32 %v740_v6, %v740_v6  ;;  %v742_v9 = vpop.f32.mrb[41].mxu0  ;;  %v930_v10 = vsel %vm926_vm15, %v928_v4, %v924_v7 }
 0x18c   :  { %v803_v11 = vmul.f32 %v742_v9, %v742_v9  ;;  %v744_v12 = vpop.f32.mrb[42].mxu0  ;;  %1384 = vmatmul.mubr.bf16.gmra.mrb[12].mxu1 %v930_v10  ;;  %1450 = vrsqrt.bf16 %v840_v5  ;;  %vm945_vm2 = vcmp.eq.bf16.partialorder %v840_v5, 2139127680  ;;  %v950_v36 = vand.u32 2147516416, %v840_v5 }
 0x18d   :  { %v780_v13 = vmul.f32 %v744_v12, %v744_v12  ;;  %v746_v14 = vpop.f32.mrb[43].mxu0  ;;  %vm948_vm3 = vcmp.eq.bf16.partialorder %v840_v5, 0 }
 0x18e   :  { %v827_v15 = vadd.f32 %v803_v11, %v779_v8  ;;  %v804_v16 = vmul.f32 %v746_v14, %v746_v14 }
 0x18f   :  { %v1449_v17 = vpop.eup %1448 }
 0x190   :  { %v828_v18 = vadd.f32 %v804_v16, %v780_v13  ;;  %v932_v19 = vmul.bf16 %v1449_v17, %v839_v53 }
 0x192   :  { %v841_v21 = vpack.c.bf16 %v828_v18, %v827_v15  ;;  %v750_v22 = vpop.f32.mrb[44].mxu0  ;;  %v935_v23 = vsel %vm934_vm0, %v839_v53, %v932_v19 }
 0x193   :  { %v781_v24 = vmul.f32 %v750_v22, %v750_v22  ;;  %v752_v25 = vpop.f32.mrb[45].mxu0  ;;  %v941_v26 = vsel %vm937_vm1, %v939_v20, %v935_v23 }
 0x194   :  { %v805_v27 = vmul.f32 %v752_v25, %v752_v25  ;;  %v754_v28 = vpop.f32.mrb[46].mxu0  ;;  %1387 = vmatprep.mubr.bf16.mxu1 %v941_v26  ;;  %1452 = vrsqrt.bf16 %v841_v21  ;;  %vm956_vm4 = vcmp.eq.bf16.partialorder %v841_v21, 2139127680  ;;  %v961_v42 = vand.u32 2147516416, %v841_v21 }
 0x195   :  { %v782_v29 = vmul.f32 %v754_v28, %v754_v28  ;;  %v756_v30 = vpop.f32.mrb[47].mxu0  ;;  %vm959_vm5 = vcmp.eq.bf16.partialorder %v841_v21, 0 }
 0x196   :  { %v829_v31 = vadd.f32 %v805_v27, %v781_v24  ;;  %v806_v32 = vmul.f32 %v756_v30, %v756_v30 }
 0x197   :  { %v1451_v33 = vpop.eup %1450 }
 0x198   :  { %v830_v34 = vadd.f32 %v806_v32, %v782_v29  ;;  %v943_v35 = vmul.bf16 %v1451_v33, %v840_v5 }
 0x19a   :  { %v842_v37 = vpack.c.bf16 %v830_v34, %v829_v31  ;;  %v946_v38 = vsel %vm945_vm2, %v840_v5, %v943_v35 }
 0x19b   :  { %v952_v39 = vsel %vm948_vm3, %v950_v36, %v946_v38 }
 0x19c   :  { %1388 = vmatmul.mubr.bf16.gmra.mrb[16].mxu1 %v952_v39  ;;  %1454 = vrsqrt.bf16 %v842_v37  ;;  %vm967_vm6 = vcmp.eq.bf16.partialorder %v842_v37, 2139127680  ;;  %v972_v47 = vand.u32 2147516416, %v842_v37  ;;  %vm970_vm7 = vcmp.eq.bf16.partialorder %v842_v37, 0 }
 0x19f   :  { %v1453_v40 = vpop.eup %1452 }
 0x1a0   :  { %v954_v41 = vmul.bf16 %v1453_v40, %v841_v21 }
 0x1a2   :  { %v957_v43 = vsel %vm956_vm4, %v841_v21, %v954_v41 }
 0x1a3   :  { %v963_v44 = vsel %vm959_vm5, %v961_v42, %v957_v43 }
 0x1a4   :  { %1391 = vmatprep.mubr.bf16.mxu1 %v963_v44 }
 0x1a7   :  { %v1455_v45 = vpop.eup %1454 }
 0x1a8   :  { %v965_v46 = vmul.bf16 %v1455_v45, %v842_v37 }
 0x1aa   :  { %v968_v48 = vsel %vm967_vm6, %v842_v37, %v965_v46 }
 0x1ab   :  { %v974_v49 = vsel %vm970_vm7, %v972_v47, %v968_v48 }
 0x1ac   :  { %1392 = vmatmul.mubr.bf16.gmra.mrb[20].mxu1 %v974_v49 }
 0x22f   :  { %v1373_v50 = vpop.f32.mrb[0].mxu1 }
 0x230   :  { %v1009_v51 = vpop.f32.mrb[1].mxu1  ;;  %v1106_v6 = vmax.f32 %v1373_v50, 1e-05 }
 0x231   :  { %v1374_v52 = vpop.f32.mrb[2].mxu1  ;;  %v1104_v8 = vmax.f32 %v1009_v51, 1e-05 }
 0x232   :  { %v1012_v53 = vpop.f32.mrb[3].mxu1  ;;  %v1107_v10 = vmax.f32 %v1374_v52, 1e-05 }
 0x233   :  { %v1105_v13 = vmax.f32 %v1012_v53, 1e-05 }
 0x23f   :  { %v1775_v54 = vpop.f32.mrb[4].mxu1 }
 0x240   :  { %v1777_v55 = vpop.f32.mrb[5].mxu1  ;;  %v1110_v32 = vmax.f32 %v1775_v54, 1e-05 }
 0x241   :  { %v1779_v56 = vpop.f32.mrb[6].mxu1  ;;  %v1108_v35 = vmax.f32 %v1777_v55, 1e-05 }
 0x242   :  { %v1781_v57 = vpop.f32.mrb[7].mxu1  ;;  %v1111_v39 = vmax.f32 %v1779_v56, 1e-05 }
 0x243   :  { %v1109_v40 = vmax.f32 %v1781_v57, 1e-05 }
 0x24f   :  { %v1783_v58 = vpop.f32.mrb[8].mxu1 }
 0x250   :  { %v1785_v59 = vpop.f32.mrb[9].mxu1 }
 0x251   :  { %v1787_v60 = vpop.f32.mrb[10].mxu1 }
 0x252   :  { %v1789_v61 = vpop.f32.mrb[11].mxu1 }
 0x25f   :  { %v1385_v62 = vpop.f32.mrb[12].mxu1 }
 0x260   :  { %v1118_v63 = vmax.f32 %v1385_v62, 1e-05  ;;  %v1057_v0 = vpop.f32.mrb[13].mxu1 }
 0x261   :  { %v1116_v1 = vmax.f32 %v1057_v0, 1e-05  ;;  %v1386_v2 = vpop.f32.mrb[14].mxu1 }
 0x262   :  { %1456 = vrcp.f32 %v1118_v63  ;;  %v1119_v3 = vmax.f32 %v1386_v2, 1e-05  ;;  %v1060_v4 = vpop.f32.mrb[15].mxu1 }
 0x263   :  { %1458 = vrcp.f32 %v1116_v1  ;;  %v1117_v5 = vmax.f32 %v1060_v4, 1e-05 }
 0x264   :  { %1460 = vrcp.f32 %v1119_v3 }
 0x265   :  { %1462 = vrcp.f32 %v1117_v5 }
 0x26c   :  { %v1457_v7 = vpop.eup %1456 }
 0x26d   :  { %v1459_v9 = vpop.eup %1458  ;;  %v1133_v11 = vmul.f32 %v1457_v7, %v1106_v6 }
 0x26e   :  { %v1461_v12 = vpop.eup %1460  ;;  %v1129_v14 = vmul.f32 %v1459_v9, %v1104_v8 }
 0x26f   :  { %v1463_v15 = vpop.eup %1462  ;;  %1464 = vlog2.f32 %v1133_v11  ;;  %v1135_v16 = vmul.f32 %v1461_v12, %v1107_v10  ;;  %v1389_v17 = vpop.f32.mrb[16].mxu1  ;;  %v1114_v11 = vmax.f32 %v1783_v58, 1e-05 }
 0x270   :  { %1466 = vlog2.f32 %v1129_v14  ;;  %v1131_v18 = vmul.f32 %v1463_v15, %v1105_v13  ;;  %v1122_v19 = vmax.f32 %v1389_v17, 1e-05  ;;  %v1073_v20 = vpop.f32.mrb[17].mxu1  ;;  %v1112_v14 = vmax.f32 %v1785_v59, 1e-05 }
 0x271   :  { %1468 = vlog2.f32 %v1135_v16  ;;  %v1120_v21 = vmax.f32 %v1073_v20, 1e-05  ;;  %v1390_v22 = vpop.f32.mrb[18].mxu1 }
 0x272   :  { %1470 = vlog2.f32 %v1131_v18  ;;  %v1123_v23 = vmax.f32 %v1390_v22, 1e-05  ;;  %v1076_v24 = vpop.f32.mrb[19].mxu1  ;;  %v1115_v18 = vmax.f32 %v1787_v60, 1e-05 }
 0x273   :  { %1472 = vrcp.f32 %v1122_v19  ;;  %v1121_v25 = vmax.f32 %v1076_v24, 1e-05  ;;  %v1113_v19 = vmax.f32 %v1789_v61, 1e-05 }
 0x274   :  { %1474 = vrcp.f32 %v1120_v21 }
 0x275   :  { %1476 = vrcp.f32 %v1123_v23 }
 0x276   :  { %1478 = vrcp.f32 %v1121_v25 }
 0x279   :  { %v1465_v26 = vpop.eup %1464 }
 0x27a   :  { %v1467_v27 = vpop.eup %1466  ;;  %v1157_v28 = vmul.f32 0.6931472, %v1465_v26 }
 0x27b   :  { %v1469_v29 = vpop.eup %1468  ;;  %v1153_v30 = vmul.f32 0.6931472, %v1467_v27 }
 0x27c   :  { %v1471_v31 = vpop.eup %1470  ;;  %v1159_v33 = vmul.f32 0.6931472, %v1469_v29  ;;  %v1178_v41 = vand.u32 2147483647, %v1157_v28 }
 0x27d   :  { %v1473_v34 = vpop.eup %1472  ;;  %v1176_v36 = vand.u32 2147483647, %v1153_v30  ;;  %v1155_v37 = vmul.f32 0.6931472, %v1471_v31 }
 0x27e   :  { %v1475_v38 = vpop.eup %1474  ;;  %v1141_v42 = vmul.f32 %v1473_v34, %v1110_v32  ;;  %v1179_v44 = vand.u32 2147483647, %v1159_v33  ;;  %v1190_v63 = vmul.f32 0.4342945, %v1178_v41 }
 0x27f   :  { %v1477_v43 = vpop.eup %1476  ;;  %v1177_v45 = vand.u32 2147483647, %v1155_v37  ;;  %v1137_v46 = vmul.f32 %v1475_v38, %v1108_v35  ;;  %v1393_v47 = vpop.f32.mrb[20].mxu1  ;;  %v1188_v49 = vmul.f32 0.4342945, %v1176_v36 }
 0x280   :  { %v1479_v48 = vpop.eup %1478  ;;  %1480 = vlog2.f32 %v1141_v42  ;;  %v1143_v50 = vmul.f32 %v1477_v43, %v1111_v39  ;;  %v1126_v51 = vmax.f32 %v1393_v47, 1e-05  ;;  %v1089_v52 = vpop.f32.mrb[21].mxu1  ;;  %v1191_v2 = vmul.f32 0.4342945, %v1179_v44 }
 0x281   :  { %v1189_v53 = vmul.f32 0.4342945, %v1177_v45  ;;  %1482 = vlog2.f32 %v1137_v46  ;;  %v1139_v54 = vmul.f32 %v1479_v48, %v1109_v40  ;;  %v1124_v55 = vmax.f32 %v1089_v52, 1e-05  ;;  %v1394_v56 = vpop.f32.mrb[22].mxu1 }
 0x282   :  { %1484 = vlog2.f32 %v1143_v50  ;;  %v1127_v57 = vmax.f32 %v1394_v56, 1e-05  ;;  %v1092_v62 = vpop.f32.mrb[23].mxu1 }
 0x283   :  { %v1251_v0 = vadd.f32 %v1189_v53, %v1188_v49  ;;  %1486 = vlog2.f32 %v1139_v54  ;;  %v1125_v1 = vmax.f32 %v1092_v62, 1e-05 }
 0x284   :  { %1488 = vrcp.f32 %v1126_v51 }
 0x285   :  { %v1252_v3 = vadd.f32 %v1251_v0, %v1190_v63  ;;  %1490 = vrcp.f32 %v1124_v55 }
 0x286   :  { %1492 = vrcp.f32 %v1127_v57 }
 0x287   :  { %v1253_v4 = vadd.f32 %v1252_v3, %v1191_v2  ;;  %1494 = vrcp.f32 %v1125_v1 }
 0x28a   :  { %v1481_v5 = vpop.eup %1480 }
 0x28b   :  { %v1483_v6 = vpop.eup %1482  ;;  %v1165_v8 = vmul.f32 0.6931472, %v1481_v5 }
 0x28c   :  { %v1485_v7 = vpop.eup %1484  ;;  %v1161_v9 = vmul.f32 0.6931472, %v1483_v6 }
 0x28d   :  { %v1487_v10 = vpop.eup %1486  ;;  %v1167_v12 = vmul.f32 0.6931472, %v1485_v7  ;;  %v1182_v22 = vand.u32 2147483647, %v1165_v8 }
 0x28e   :  { %v1489_v13 = vpop.eup %1488  ;;  %v1180_v15 = vand.u32 2147483647, %v1161_v9  ;;  %v1163_v16 = vmul.f32 0.6931472, %v1487_v10 }
 0x28f   :  { %v1491_v17 = vpop.eup %1490  ;;  %v1149_v20 = vmul.f32 %v1489_v13, %v1114_v11  ;;  %v1183_v27 = vand.u32 2147483647, %v1167_v12  ;;  %v1194_v30 = vmul.f32 0.4342945, %v1182_v22 }
 0x290   :  { %v1493_v21 = vpop.eup %1492  ;;  %v1192_v23 = vmul.f32 0.4342945, %v1180_v15  ;;  %v1181_v24 = vand.u32 2147483647, %v1163_v16  ;;  %v1145_v25 = vmul.f32 %v1491_v17, %v1112_v14 }
 0x291   :  { %v1495_v26 = vpop.eup %1494  ;;  %1496 = vlog2.f32 %v1149_v20  ;;  %v1151_v58 = vmul.f32 %v1493_v21, %v1115_v18  ;;  %v1195_v60 = vmul.f32 0.4342945, %v1183_v27 }
 0x292   :  { %v1254_v28 = vadd.f32 %v1253_v4, %v1192_v23  ;;  %v1193_v29 = vmul.f32 0.4342945, %v1181_v24  ;;  %1498 = vlog2.f32 %v1145_v25  ;;  %v1147_v59 = vmul.f32 %v1495_v26, %v1113_v19 }
 0x293   :  { %1500 = vlog2.f32 %v1151_v58 }
 0x294   :  { %v1255_v31 = vadd.f32 %v1254_v28, %v1193_v29  ;;  %1502 = vlog2.f32 %v1147_v59 }
 0x296   :  { %v1256_v61 = vadd.f32 %v1255_v31, %v1194_v30 }
 0x298   :  { %v1257_v32 = vadd.f32 %v1256_v61, %v1195_v60 }
 0x29b   :  { %v1497_v33 = vpop.eup %1496 }
 0x29c   :  { %v1499_v34 = vpop.eup %1498  ;;  %v1173_v36 = vmul.f32 0.6931472, %v1497_v33 }
 0x29d   :  { %v1501_v35 = vpop.eup %1500  ;;  %v1169_v37 = vmul.f32 0.6931472, %v1499_v34 }
 0x29e   :  { %v1503_v38 = vpop.eup %1502  ;;  %v1175_v40 = vmul.f32 0.6931472, %v1501_v35  ;;  %v1186_v42 = vand.u32 2147483647, %v1173_v36 }
 0x29f   :  { %v1184_v39 = vand.u32 2147483647, %v1169_v37  ;;  %v1171_v41 = vmul.f32 0.6931472, %v1503_v38 }
 0x2a0   :  { %v1187_v46 = vand.u32 2147483647, %v1175_v40  ;;  %v1198_v48 = vmul.f32 0.4342945, %v1186_v42 }
 0x2a1   :  { %v1196_v43 = vmul.f32 0.4342945, %v1184_v39  ;;  %v1185_v44 = vand.u32 2147483647, %v1171_v41 }
 0x2a2   :  { %v1199_v50 = vmul.f32 0.4342945, %v1187_v46 }
 0x2a3   :  { %v1258_v45 = vadd.f32 %v1257_v32, %v1196_v43  ;;  %v1197_v47 = vmul.f32 0.4342945, %v1185_v44 }
 0x2a5   :  { %v1259_v49 = vadd.f32 %v1258_v45, %v1197_v47 }
 0x2a7   :  { %v1260_v51 = vadd.f32 %v1259_v49, %v1198_v48 }
 0x2a9   :  { %v1261_v52 = vadd.f32 %v1260_v51, %v1199_v50 }
 0x2ab   :  { %v1262_v53 = vmul.f32 0.00075757573, %v1261_v52 }
 0x2ad   :  { %1263 = vst [vmem:[%s1805_s3] sm:$0xff] %v1262_v53 }
 0x2ae   :  { %1268 = vsyncmov [#allocation5] }
 0x2b1   :  { %s1269_s1 = vpop.sfrf %1268 }
 0x2b2   :  { %p1333_p0 = scmp.ne.s32.totalorder %s1269_s1, 0 }
 0x2b4   :  { %1273 = shalt.err (%p1333_p0)  }
 0x2b5   :  { %1275 = vsyncmov [#allocation5 + $0x1] }
 0x2b8   :  { %s1276_s11 = vpop.sfrf %1275 }
 0x2b9   :  { %p1334_p1 = scmp.ne.s32.totalorder %s1276_s11, 0 }
 0x2bb   :  { %1280 = shalt.err (%p1334_p1)  }

</bundles_post_ra>
